<compile_context>
chip_gen: v5e
topology: v5e:2x2
jax: 0.10.0
libtpu: 0.0.40
codegen_flags: <defaults>
</compile_context>

<pallas_src>
import functools

import jax
import jax.numpy as jnp
from jax.experimental import pallas as pl
from jax.experimental.pallas import tpu as pltpu

ENCODING_DIM = 32
IN_DIM = 28 * 28   # 784
HIDDEN = 128

# v7x has 64 MiB physical VMEM (32 MiB scoped default); x-in and out tiles are
# double-buffered, so activation buffers ~= 4 * tb * 784 * 4 B.  tb=1024 ~= 13 MiB,
# which stays comfortably double-buffered on all generations (v5e/v6e/v7x).
MAX_BLOCK_BATCH = 1024


def _round_up(n, m):
    return -(-n // m) * m


def _autoencoder_kernel(x_ref,
                        w1_ref, b1_ref,
                        w23_ref, b23_ref,
                        w4_ref, b4_ref,
                        o_ref):
    """Fused forward: relu(x@W1+b1) -> relu(.@W23+b23) -> sigmoid(.@W4+b4).

    Matmul operands are cast to the weight dtype (f32 or bf16); accumulation is
    always f32; bias add / ReLU / sigmoid are f32.
    """
    x = x_ref[...]                                                     # (TB, 784)

    # ---- encoder layer 1 ----
    h1 = jnp.dot(x.astype(w1_ref.dtype), w1_ref[...],
                 preferred_element_type=jnp.float32)                   # (TB, 128)
    h1 = jnp.maximum(h1 + b1_ref[...], 0.0)                            # ReLU

    # ---- folded encoder layer 2 + decoder layer 1 (W23 = W2 @ W3) ----
    h2 = jnp.dot(h1.astype(w23_ref.dtype), w23_ref[...],
                 preferred_element_type=jnp.float32)                   # (TB, 128)
    h2 = jnp.maximum(h2 + b23_ref[...], 0.0)                           # ReLU

    # ---- decoder layer 2 ----
    logits = jnp.dot(h2.astype(w4_ref.dtype), w4_ref[...],
                     preferred_element_type=jnp.float32)               # (TB, 784)
    logits = logits + b4_ref[...]

    o_ref[...] = jax.nn.sigmoid(logits).astype(o_ref.dtype)            # Sigmoid


@functools.partial(jax.jit, static_argnames=("block_batch", "use_bf16_matmul"))
def autoencoder_forward(x, params, *, block_batch=512, use_bf16_matmul=False):
    """x: (B, 784) float32. params: dict of (in,out) weights and (1,out) biases."""
    B, D = x.shape
    assert D == IN_DIM
    assert block_batch % 8 == 0 and block_batch > 0

    # Tile size: as large as allowed (amortizes per-grid-step overhead and fills the
    # MXU rows), but never larger than the (8-rounded) batch or the VMEM-safe cap.
    tb = min(block_batch, MAX_BLOCK_BATCH, _round_up(B, 8))
    B_pad = _round_up(B, tb)
    if B_pad != B:
        x = jnp.pad(x, ((0, B_pad - B), (0, 0)))

    w1, b1 = params["w1"], params["b1"]
    w4, b4 = params["w4"], params["b4"]
    # Fold Linear(128,32) -> Linear(32,128) (no nonlinearity between them) into one
    # MXU-friendly 128x128 matmul.  Exact math; only f32 rounding differs.
    w23 = params["w2"] @ params["w3"]                   # (128, 128)
    b23 = params["b2"] @ params["w3"] + params["b3"]    # (1, 128)

    if use_bf16_matmul:
        # bf16 weights halve weight DMA and hit the fast bf16 MXU path on v6e/v7x;
        # activations are cast at the dot inside the kernel, accumulation stays f32.
        w1 = w1.astype(jnp.bfloat16)
        w23 = w23.astype(jnp.bfloat16)
        w4 = w4.astype(jnp.bfloat16)

    # Weights / biases are small (<1 MiB); keep whole copies resident every step.
    full = lambda a: pl.BlockSpec(a.shape, lambda i: (0, 0))

    grid = (B_pad // tb,)
    out = pl.pallas_call(
        _autoencoder_kernel,
        out_shape=jax.ShapeDtypeStruct((B_pad, IN_DIM), x.dtype),
        grid_spec=pltpu.PrefetchScalarGridSpec(
            num_scalar_prefetch=0,
            grid=grid,
            in_specs=[
                pl.BlockSpec((tb, IN_DIM), lambda i: (i, 0)),   # x tile
                full(w1), full(b1),
                full(w23), full(b23),
                full(w4), full(b4),
            ],
            out_specs=pl.BlockSpec((tb, IN_DIM), lambda i: (i, 0)),
        ),
        compiler_params=pltpu.CompilerParams(
            dimension_semantics=("parallel",),          # shards batch grid over v7x's 2 TCs
            vmem_limit_bytes=48 * 1024 * 1024,          # headroom below v7x's 64 MiB
        ),
    )(x, w1, b1, w23, b23, w4, b4)

    if B_pad != B:
        out = out[:B]
    return out


def init_params(key):
    """Deterministic init mirroring torch.nn.Linear default:
    U(-1/sqrt(fan_in), 1/sqrt(fan_in)) for both weight and bias.
    Weights stored as (in_features, out_features)."""
    dims = [(IN_DIM, HIDDEN), (HIDDEN, ENCODING_DIM),
            (ENCODING_DIM, HIDDEN), (HIDDEN, IN_DIM)]
    params = {}
    keys = jax.random.split(key, 2 * len(dims))
    for idx, (fan_in, fan_out) in enumerate(dims):
        bound = 1.0 / (fan_in ** 0.5)
        w = jax.random.uniform(keys[2 * idx], (fan_in, fan_out),
                               minval=-bound, maxval=bound, dtype=jnp.float32)
        b = jax.random.uniform(keys[2 * idx + 1], (1, fan_out),
                               minval=-bound, maxval=bound, dtype=jnp.float32)
        params[f"w{idx + 1}"] = w
        params[f"b{idx + 1}"] = b
    return params


def reference_forward(x, params):
    """Pure-JAX reference of the (unfused) PyTorch forward pass."""
    h = jnp.maximum(x @ params["w1"] + params["b1"], 0.0)
    z = h @ params["w2"] + params["b2"]
    h = jnp.maximum(z @ params["w3"] + params["b3"], 0.0)
    return jax.nn.sigmoid(h @ params["w4"] + params["b4"])


if __name__ == "__main__":
    key = jax.random.PRNGKey(0)
    pkey, xkey = jax.random.split(key)

    params = init_params(pkey)

    # 1) multi-step batch grid (grid length 2) at f32, strict-ish tolerance
    x = jax.random.uniform(xkey, (256, IN_DIM), dtype=jnp.float32)
    out = jax.block_until_ready(autoencoder_forward(x, params, block_batch=128))
    ref = reference_forward(x, params)
    assert out.shape == (256, IN_DIM)
    assert jnp.allclose(out, ref, atol=1e-4, rtol=1e-4), "f32 mismatch vs reference"

    # 2) batch not a multiple of the tile -> exercises the wrapper padding path
    x_ragged = x[:50]
    out_r = jax.block_until_ready(autoencoder_forward(x_ragged, params))
    assert out_r.shape == (50, IN_DIM)
    assert jnp.allclose(out_r, ref[:50], atol=1e-4, rtol=1e-4), "padded-batch mismatch"

    # 3) bf16 MXU-operand fast path (v6e/v7x), relaxed tolerance
    out_bf16 = jax.block_until_ready(
        autoencoder_forward(x, params, block_batch=128, use_bf16_matmul=True))
    assert jnp.allclose(out_bf16, ref, atol=5e-2, rtol=0.0), "bf16 mismatch vs reference"

    print("KERNEL_OK")
</pallas_src>

<mosaic_0001>
module attributes {stable_mosaic.version = 11 : i64} {
  func.func @_autoencoder_kernel(%arg0: i32, %arg1: memref<128x784xf32, #tpu.memory_space<vmem>>, %arg2: memref<784x128xf32, #tpu.memory_space<vmem>>, %arg3: memref<1x128xf32, #tpu.memory_space<vmem>>, %arg4: memref<128x128xf32, #tpu.memory_space<vmem>>, %arg5: memref<1x128xf32, #tpu.memory_space<vmem>>, %arg6: memref<128x784xf32, #tpu.memory_space<vmem>>, %arg7: memref<1x784xf32, #tpu.memory_space<vmem>>, %arg8: memref<128x784xf32, #tpu.memory_space<vmem>>) attributes {dimension_semantics = [#tpu.dimension_semantics<parallel>], iteration_bounds = array<i64: 2>, scalar_prefetch = 0 : i64, scratch_operands = 0 : i64, tpu.core_type = #tpu.core_type<tc>, window_params = [{transform_indices = @transform_0, window_bounds = array<i64: 128, 784>}, {pipeline_mode = #tpu.pipeline_mode<synchronous>, transform_indices = @transform_1, window_bounds = array<i64: 784, 128>}, {pipeline_mode = #tpu.pipeline_mode<synchronous>, transform_indices = @transform_2, window_bounds = array<i64: 1, 128>}, {pipeline_mode = #tpu.pipeline_mode<synchronous>, transform_indices = @transform_3, window_bounds = array<i64: 128, 128>}, {pipeline_mode = #tpu.pipeline_mode<synchronous>, transform_indices = @transform_4, window_bounds = array<i64: 1, 128>}, {pipeline_mode = #tpu.pipeline_mode<synchronous>, transform_indices = @transform_5, window_bounds = array<i64: 128, 784>}, {pipeline_mode = #tpu.pipeline_mode<synchronous>, transform_indices = @transform_6, window_bounds = array<i64: 1, 784>}, {transform_indices = @transform_7, window_bounds = array<i64: 128, 784>}]} {
    %c0 = arith.constant 0 : index
    %c0_0 = arith.constant 0 : index
    %0 = vector.load %arg1[%c0, %c0_0] : memref<128x784xf32, #tpu.memory_space<vmem>>, vector<128x784xf32>
    %c0_1 = arith.constant 0 : index
    %c0_2 = arith.constant 0 : index
    %1 = vector.load %arg2[%c0_1, %c0_2] : memref<784x128xf32, #tpu.memory_space<vmem>>, vector<784x128xf32>
    %cst = arith.constant dense<0.000000e+00> : vector<128x128xf32>
    %2 = tpu.matmul %0, %1, %cst {dimension_numbers = #tpu.dot_dimension_numbers<[1], [0], [0], [1], [0, 0, 1, 1], [], []>} : vector<128x784xf32>, vector<784x128xf32>, vector<128x128xf32> -> vector<128x128xf32>
    %c0_3 = arith.constant 0 : index
    %c0_4 = arith.constant 0 : index
    %3 = vector.load %arg3[%c0_3, %c0_4] : memref<1x128xf32, #tpu.memory_space<vmem>>, vector<1x128xf32>
    %4 = vector.broadcast %3 : vector<1x128xf32> to vector<128x128xf32>
    %5 = arith.addf %2, %4 : vector<128x128xf32>
    %cst_5 = arith.constant 0.000000e+00 : f32
    %6 = vector.broadcast %cst_5 : f32 to vector<128x128xf32>
    %7 = arith.maximumf %5, %6 : vector<128x128xf32>
    %c0_6 = arith.constant 0 : index
    %c0_7 = arith.constant 0 : index
    %8 = vector.load %arg4[%c0_6, %c0_7] : memref<128x128xf32, #tpu.memory_space<vmem>>, vector<128x128xf32>
    %cst_8 = arith.constant dense<0.000000e+00> : vector<128x128xf32>
    %9 = tpu.matmul %7, %8, %cst_8 {dimension_numbers = #tpu.dot_dimension_numbers<[1], [0], [0], [1], [0, 0, 1, 1], [], []>} : vector<128x128xf32>, vector<128x128xf32>, vector<128x128xf32> -> vector<128x128xf32>
    %c0_9 = arith.constant 0 : index
    %c0_10 = arith.constant 0 : index
    %10 = vector.load %arg5[%c0_9, %c0_10] : memref<1x128xf32, #tpu.memory_space<vmem>>, vector<1x128xf32>
    %11 = vector.broadcast %10 : vector<1x128xf32> to vector<128x128xf32>
    %12 = arith.addf %9, %11 : vector<128x128xf32>
    %cst_11 = arith.constant 0.000000e+00 : f32
    %13 = vector.broadcast %cst_11 : f32 to vector<128x128xf32>
    %14 = arith.maximumf %12, %13 : vector<128x128xf32>
    %c0_12 = arith.constant 0 : index
    %c0_13 = arith.constant 0 : index
    %15 = vector.load %arg6[%c0_12, %c0_13] : memref<128x784xf32, #tpu.memory_space<vmem>>, vector<128x784xf32>
    %cst_14 = arith.constant dense<0.000000e+00> : vector<128x784xf32>
    %16 = tpu.matmul %14, %15, %cst_14 {dimension_numbers = #tpu.dot_dimension_numbers<[1], [0], [0], [1], [0, 0, 1, 1], [], []>} : vector<128x128xf32>, vector<128x784xf32>, vector<128x784xf32> -> vector<128x784xf32>
    %c0_15 = arith.constant 0 : index
    %c0_16 = arith.constant 0 : index
    %17 = vector.load %arg7[%c0_15, %c0_16] : memref<1x784xf32, #tpu.memory_space<vmem>>, vector<1x784xf32>
    %18 = vector.broadcast %17 : vector<1x784xf32> to vector<128x784xf32>
    %19 = arith.addf %16, %18 : vector<128x784xf32>
    %20 = arith.negf %19 : vector<128x784xf32>
    %21 = math.exp %20 : vector<128x784xf32>
    %cst_17 = arith.constant 1.000000e+00 : f32
    %22 = vector.broadcast %cst_17 : f32 to vector<128x784xf32>
    %23 = arith.addf %22, %21 : vector<128x784xf32>
    %24 = arith.divf %22, %23 : vector<128x784xf32>
    %c0_18 = arith.constant 0 : index
    %c0_19 = arith.constant 0 : index
    %25 = vector.load %arg8[%c0_18, %c0_19] : memref<128x784xf32, #tpu.memory_space<vmem>>, vector<128x784xf32>
    tpu.vector_store %arg8[%c0_18, %c0_19], %24 {strides = array<i32>} : memref<128x784xf32, #tpu.memory_space<vmem>>, vector<128x784xf32>,
    return
  }
  func.func @transform_0(%arg0: i32) -> (i32, i32) {
    %c0_i32 = arith.constant 0 : i32
    %c0_i32_0 = arith.constant 0 : i32
    return %arg0, %c0_i32 : i32, i32
  }
  func.func @transform_1(%arg0: i32) -> (i32, i32) {
    %c0_i32 = arith.constant 0 : i32
    %c0_i32_0 = arith.constant 0 : i32
    %c0_i32_1 = arith.constant 0 : i32
    return %c0_i32, %c0_i32_0 : i32, i32
  }
  func.func @transform_2(%arg0: i32) -> (i32, i32) {
    %c0_i32 = arith.constant 0 : i32
    %c0_i32_0 = arith.constant 0 : i32
    %c0_i32_1 = arith.constant 0 : i32
    return %c0_i32, %c0_i32_0 : i32, i32
  }
  func.func @transform_3(%arg0: i32) -> (i32, i32) {
    %c0_i32 = arith.constant 0 : i32
    %c0_i32_0 = arith.constant 0 : i32
    %c0_i32_1 = arith.constant 0 : i32
    return %c0_i32, %c0_i32_0 : i32, i32
  }
  func.func @transform_4(%arg0: i32) -> (i32, i32) {
    %c0_i32 = arith.constant 0 : i32
    %c0_i32_0 = arith.constant 0 : i32
    %c0_i32_1 = arith.constant 0 : i32
    return %c0_i32, %c0_i32_0 : i32, i32
  }
  func.func @transform_5(%arg0: i32) -> (i32, i32) {
    %c0_i32 = arith.constant 0 : i32
    %c0_i32_0 = arith.constant 0 : i32
    %c0_i32_1 = arith.constant 0 : i32
    return %c0_i32, %c0_i32_0 : i32, i32
  }
  func.func @transform_6(%arg0: i32) -> (i32, i32) {
    %c0_i32 = arith.constant 0 : i32
    %c0_i32_0 = arith.constant 0 : i32
    %c0_i32_1 = arith.constant 0 : i32
    return %c0_i32, %c0_i32_0 : i32, i32
  }
  func.func @transform_7(%arg0: i32) -> (i32, i32) {
    %c0_i32 = arith.constant 0 : i32
    %c0_i32_0 = arith.constant 0 : i32
    return %arg0, %c0_i32 : i32, i32
  }
}

</mosaic_0001>

<bundles_post_ra>
// kernel: autoencoder_forward.1
= control target key start
LH: loop header
LB: loop body
LE: loop exit
PB: predicated region body
PF: predicated region fallthrough
CT: control target
= control target key end

     0   :  { %s4698_s24 = smov 0   ;;  %s7905_s0 = inlined_call_operand.vmem [shape: f32[256,784], index: 0, kind: input, shape index: {}]   ;;  %s7906_s1 = inlined_call_operand.vmem [shape: f32[784,128], index: 1, kind: input, shape index: {}]   ;;  %s7907_s2 = inlined_call_operand.vmem [shape: f32[1,128], index: 2, kind: input, shape index: {}]   ;;  %s7908_s3 = inlined_call_operand.vmem [shape: f32[128,128], index: 3, kind: input, shape index: {}]   ;;  %s7909_s4 = inlined_call_operand.vmem [shape: f32[1,128], index: 4, kind: input, shape index: {}]   ;;  %s7910_s5 = inlined_call_operand.vmem [shape: f32[128,784], index: 5, kind: input, shape index: {}]   ;;  %s7911_s6 = inlined_call_operand.vmem [shape: f32[1,784], index: 6, kind: input, shape index: {}]   ;;  %s7912_s7 = inlined_call_operand.vmem [shape: f32[256,784], index: 7, kind: output, shape index: {}]  }
   0x1 LB: > { %s4003_s25 = sadd.s32 4294967295, %s4656_s24   ;;  %p4007_p0 = scmp.ge.s32.totalorder %s4656_s24, 1  ;;  %s4656_s24 = sphi %s4698_s24, %s17_s24  }
   0x2   : > { %p239_p1 = scmp.lt.s32.totalorder %s4656_s24, 3 }
   0x4   : > { %p240_p2 = pnand %p4007_p0, %p239_p1 }
   0x5   : > { %s4008_s22 = sshll.u32 (!%p240_p2), %s4003_s25, 4 }
   0x6   : > { %243 = sbr.rel (%p240_p2) target bundleno = 1035 (0x40b), region = 48  ;;  %p274_p3 = scmp.lt.s32.totalorder (!%p240_p2), %s4008_s22, 31 }
   0xb   : > { %v414_v0 = vld [vmem:[%s7906_s1 + $0x78] sm:$0xff]  ;;  %v413_v1 = vld [vmem:[%s7906_s1 + $0x70] sm:$0xff]  ;;  %v412_v4 = vld [vmem:[%s7906_s1 + $0x68] sm:$0xff]  ;;  %s8098_s22 = smov (!%p274_p3, %s4008_s22), 31  ;;  %vm501_vm0 = vcmask 130048  }
   0xc   : > { %550 = vmatpush.msra.mxu0 %v414_v0  ;;  %4142 = vmatpush.msra.mxu3 %v414_v0  ;;  %v4715_v2 = vld [vmem:[%s7906_s1 + $0x178] sm:$0xff]  ;;  %v4720_v3 = vld [vmem:[%s7906_s1 + $0x170] sm:$0xff]  ;;  %v4734_v6 = vld [vmem:[%s7906_s1 + $0x168] sm:$0xff]  ;;  %s4190_s12 = smul.u32 56, %s8098_s22 }
   0xd   : > { %4174 = vmatpush.msra.mxu2 %v4715_v2  ;;  %v4729_v5 = vld [vmem:[%s7906_s1 + $0xf8] sm:$0xff]  ;;  %v4739_v7 = vld [vmem:[%s7906_s1 + $0xf0] sm:$0xff]  ;;  %v411_v8 = vld [vmem:[%s7906_s1 + $0x60] sm:$0xff] }
   0xe   : > { %551 = vmatpush.msra.mxu0 %v413_v1  ;;  %4143 = vmatpush.msra.mxu3 %v413_v1  ;;  %v4749_v9 = vld [vmem:[%s7906_s1 + $0x160] sm:$0xff]  ;;  %v4754_v10 = vld [vmem:[%s7906_s1 + $0xe8] sm:$0xff]  ;;  %v410_v11 = vld [vmem:[%s7906_s1 + $0x58] sm:$0xff]  ;;  %s4922_s30 = scalar_lea.vmem %s7905_s0, %s4190_s12  ;;  %s5989_s10 = scalar_lea.vmem %s7912_s7, %s4190_s12 }
   0xf   : > { %4175 = vmatpush.msra.mxu2 %v4720_v3  ;;  %4158 = vmatpush.msra.mxu1 %v4729_v5  ;;  %v4764_v12 = vld [vmem:[%s7906_s1 + $0x158] sm:$0xff]  ;;  %v4769_v13 = vld [vmem:[%s7906_s1 + $0xe0] sm:$0xff]  ;;  %v409_v14 = vld [vmem:[%s7906_s1 + $0x50] sm:$0xff] }
  0x10   : > { %552 = vmatpush.msra.mxu0 %v412_v4  ;;  %4144 = vmatpush.msra.mxu3 %v412_v4  ;;  %v4779_v15 = vld [vmem:[%s7906_s1 + $0x150] sm:$0xff]  ;;  %v4784_v16 = vld [vmem:[%s7906_s1 + $0xd8] sm:$0xff]  ;;  %v408_v17 = vld [vmem:[%s7906_s1 + $0x48] sm:$0xff] }
  0x11   : > { %4176 = vmatpush.msra.mxu2 %v4734_v6  ;;  %4159 = vmatpush.msra.mxu1 %v4739_v7  ;;  %v4794_v18 = vld [vmem:[%s7906_s1 + $0x148] sm:$0xff]  ;;  %v4799_v19 = vld [vmem:[%s7906_s1 + $0xd0] sm:$0xff]  ;;  %v407_v20 = vld [vmem:[%s7906_s1 + $0x40] sm:$0xff] }
  0x12   : > { %553 = vmatpush.msra.mxu0 %v411_v8  ;;  %4145 = vmatpush.msra.mxu3 %v411_v8  ;;  %v4811_v21 = vld [vmem:[%s7906_s1 + $0x140] sm:$0xff]  ;;  %v4816_v22 = vld [vmem:[%s7906_s1 + $0xc8] sm:$0xff]  ;;  %v406_v23 = vld [vmem:[%s7906_s1 + $0x38] sm:$0xff] }
  0x13   : > { %4177 = vmatpush.msra.mxu2 %v4749_v9  ;;  %4160 = vmatpush.msra.mxu1 %v4754_v10  ;;  %v4826_v24 = vld [vmem:[%s7906_s1 + $0x138] sm:$0xff]  ;;  %v4831_v25 = vld [vmem:[%s7906_s1 + $0xc0] sm:$0xff]  ;;  %v405_v26 = vld [vmem:[%s7906_s1 + $0x30] sm:$0xff] }
  0x14   : > { %554 = vmatpush.msra.mxu0 %v410_v11  ;;  %4146 = vmatpush.msra.mxu3 %v410_v11  ;;  %v4841_v27 = vld [vmem:[%s7906_s1 + $0x130] sm:$0xff]  ;;  %v4846_v28 = vld [vmem:[%s7906_s1 + $0xb8] sm:$0xff]  ;;  %v404_v29 = vld [vmem:[%s7906_s1 + $0x28] sm:$0xff] }
  0x15   : > { %4178 = vmatpush.msra.mxu2 %v4764_v12  ;;  %4161 = vmatpush.msra.mxu1 %v4769_v13  ;;  %v4859_v30 = vld [vmem:[%s7906_s1 + $0x128] sm:$0xff]  ;;  %v4864_v31 = vld [vmem:[%s7906_s1 + $0xb0] sm:$0xff]  ;;  %v403_v32 = vld [vmem:[%s7906_s1 + $0x20] sm:$0xff] }
  0x16   : > { %555 = vmatpush.msra.mxu0 %v409_v14  ;;  %4147 = vmatpush.msra.mxu3 %v409_v14  ;;  %v4874_v33 = vld [vmem:[%s7906_s1 + $0x120] sm:$0xff]  ;;  %v4879_v34 = vld [vmem:[%s7906_s1 + $0xa8] sm:$0xff]  ;;  %v402_v35 = vld [vmem:[%s7906_s1 + $0x18] sm:$0xff] }
  0x17   : > { %4179 = vmatpush.msra.mxu2 %v4779_v15  ;;  %4162 = vmatpush.msra.mxu1 %v4784_v16  ;;  %v4890_v36 = vld [vmem:[%s7906_s1 + $0x118] sm:$0xff]  ;;  %v4895_v37 = vld [vmem:[%s7906_s1 + $0xa0] sm:$0xff]  ;;  %v401_v38 = vld [vmem:[%s7906_s1 + $0x10] sm:$0xff] }
  0x18   : > { %556 = vmatpush.msra.mxu0 %v408_v17  ;;  %4148 = vmatpush.msra.mxu3 %v408_v17  ;;  %v4905_v39 = vld [vmem:[%s7906_s1 + $0x110] sm:$0xff]  ;;  %v4910_v40 = vld [vmem:[%s7906_s1 + $0x98] sm:$0xff]  ;;  %v400_v41 = vld [vmem:[%s7906_s1 + $0x8] sm:$0xff] }
  0x19   : > { %4180 = vmatpush.msra.mxu2 %v4794_v18  ;;  %4163 = vmatpush.msra.mxu1 %v4799_v19  ;;  %v4927_v42 = vld [vmem:[%s7906_s1 + $0x108] sm:$0xff]  ;;  %v4932_v43 = vld [vmem:[%s7906_s1 + $0x90] sm:$0xff]  ;;  %v399_v44 = vld [vmem:[%s7906_s1] sm:$0xff] }
  0x1a   : > { %557 = vmatpush.msra.mxu0 %v407_v20  ;;  %4149 = vmatpush.msra.mxu3 %v407_v20  ;;  %v287_v45 = vld [vmem:[%s4922_s30] sm:$0xff]  ;;  %v462_v47 = vld [vmem:[%s7906_s1 + $0x1f8] sm:$0xff]  ;;  %v4954_v49 = vld [vmem:[%s7906_s1 + $0x88] sm:$0xff] }
  0x1b   : > { %4181 = vmatpush.msra.mxu2 %v4811_v21  ;;  %4164 = vmatpush.msra.mxu1 %v4816_v22  ;;  %v315_v46 = vld [vmem:[%s4922_s30 + $0xe0] sm:$0xff]  ;;  %v317_v50 = vld [vmem:[%s4922_s30 + $0xf0] sm:$0xff]  ;;  %v496_v52 = vld [vmem:[%s7906_s1 + $0x308] sm:$0xff] }
  0x1c   : > { %558 = vmatpush.msra.mxu0 %v406_v23  ;;  %4150 = vmatpush.msra.mxu3 %v406_v23  ;;  %v4949_v48 = vld [vmem:[%s7906_s1 + $0x100] sm:$0xff]  ;;  %v461_v51 = vld [vmem:[%s7906_s1 + $0x1f0] sm:$0xff]  ;;  %v316_v54 = vld [vmem:[%s4922_s30 + $0xe8] sm:$0xff] }
  0x1d   : > { %4182 = vmatpush.msra.mxu2 %v4826_v24  ;;  %4165 = vmatpush.msra.mxu1 %v4831_v25  ;;  %v4969_v53 = vld [vmem:[%s7906_s1 + $0x80] sm:$0xff]  ;;  %v460_v55 = vld [vmem:[%s7906_s1 + $0x1e8] sm:$0xff]  ;;  %v494_v56 = vld [vmem:[%s7906_s1 + $0x2f8] sm:$0xff] }
  0x1e   : > { %559 = vmatpush.msra.mxu0 %v405_v26  ;;  %4151 = vmatpush.msra.mxu3 %v405_v26  ;;  %v294_v57 = vld [vmem:[%s4922_s30 + $0x38] sm:$0xff]  ;;  %v493_v59 = vld [vmem:[%s7906_s1 + $0x2f0] sm:$0xff]  ;;  %v459_v60 = vld [vmem:[%s7906_s1 + $0x1e0] sm:$0xff] }
  0x1f   : > { %4183 = vmatpush.msra.mxu2 %v4841_v27  ;;  %4166 = vmatpush.msra.mxu1 %v4846_v28  ;;  %v322_v58 = vld [vmem:[%s4922_s30 + $0x118] sm:$0xff]  ;;  %v324_v61 = vld [vmem:[%s4922_s30 + $0x128] sm:$0xff]  ;;  %v323_v0 = vld [vmem:[%s4922_s30 + $0x120] sm:$0xff] }
  0x20   : > { %560 = vmatpush.msra.mxu0 %v404_v29  ;;  %4152 = vmatpush.msra.mxu3 %v404_v29  ;;  %v492_v62 = vld [vmem:[%s7906_s1 + $0x2e8] sm:$0xff]  ;;  %v458_v63 = vld [vmem:[%s7906_s1 + $0x1d8] sm:$0xff]  ;;  %v457_v1 = vld [vmem:[%s7906_s1 + $0x1d0] sm:$0xff] }
  0x21   : > { %4184 = vmatpush.msra.mxu2 %v4859_v30  ;;  %4167 = vmatpush.msra.mxu1 %v4864_v31  ;;  %v491_v4 = vld [vmem:[%s7906_s1 + $0x2e0] sm:$0xff]  ;;  %v490_v8 = vld [vmem:[%s7906_s1 + $0x2d8] sm:$0xff]  ;;  %v308_v20 = vld [vmem:[%s4922_s30 + $0xa8] sm:$0xff] }
  0x22   : > { %561 = vmatpush.msra.mxu0 %v403_v32  ;;  %4153 = vmatpush.msra.mxu3 %v403_v32  ;;  %v331_v11 = vld [vmem:[%s4922_s30 + $0x160] sm:$0xff]  ;;  %v454_v17 = vld [vmem:[%s7906_s1 + $0x1b8] sm:$0xff]  ;;  %v452_v32 = vld [vmem:[%s7906_s1 + $0x1a8] sm:$0xff] }
  0x23   : > { %4185 = vmatpush.msra.mxu2 %v4874_v33  ;;  %4168 = vmatpush.msra.mxu1 %v4879_v34  ;;  %v455_v14 = vld [vmem:[%s7906_s1 + $0x1c0] sm:$0xff]  ;;  %v486_v29 = vld [vmem:[%s7906_s1 + $0x2b8] sm:$0xff] }
  0x24   : > { %562 = vmatpush.msra.mxu0 %v402_v35  ;;  %4154 = vmatpush.msra.mxu3 %v402_v35  ;;  %v487_v23 = vld [vmem:[%s7906_s1 + $0x2c0] sm:$0xff]  ;;  %v288_v35 = vld [vmem:[%s4922_s30 + $0x8] sm:$0xff] }
  0x25   : > { %4186 = vmatpush.msra.mxu2 %v4890_v36  ;;  %4169 = vmatpush.msra.mxu1 %v4895_v37  ;;  %v495_v26 = vld [vmem:[%s7906_s1 + $0x300] sm:$0xff] }
  0x26   : > { %563 = vmatpush.msra.mxu0 %v401_v38  ;;  %4155 = vmatpush.msra.mxu3 %v401_v38  ;;  %v485_v38 = vld [vmem:[%s7906_s1 + $0x2b0] sm:$0xff] }
  0x27   : > { %4187 = vmatpush.msra.mxu2 %v4905_v39  ;;  %4170 = vmatpush.msra.mxu1 %v4910_v40 }
  0x28   : > { %564 = vmatpush.msra.mxu0 %v400_v41  ;;  %4156 = vmatpush.msra.mxu3 %v400_v41  ;;  %v344_v41 = vld [vmem:[%s4922_s30 + $0x1c8] sm:$0xff] }
  0x29   : > { %4188 = vmatpush.msra.mxu2 %v4927_v42  ;;  %4171 = vmatpush.msra.mxu1 %v4932_v43 }
  0x2a   : > { %565 = vmatpush.msra.mxu0 %v399_v44  ;;  %4157 = vmatpush.msra.mxu3 %v399_v44  ;;  %v350_v44 = vld [vmem:[%s4922_s30 + $0x1f8] sm:$0xff] }
  0x2b   : > { %566 = vmatmul.f32.vlgmr.msra.gmra.mxu0 %v287_v45  ;;  %578 = vmatmul.f32.vlgmr.msra.gmra.mxu3 %v315_v46  ;;  %v295_v45 = vld [vmem:[%s4922_s30 + $0x40] sm:$0xff]  ;;  %v449_v46 = vld [vmem:[%s7906_s1 + $0x190] sm:$0xff] }
  0x2c   : > { %745 = vmatpush.msrb.mxu3 %v462_v47  ;;  %615 = vmatpush.msrb.mxu0 %v4729_v5  ;;  %v301_v5 = vld [vmem:[%s4922_s30 + $0x70] sm:$0xff]  ;;  %v302_v47 = vld [vmem:[%s4922_s30 + $0x78] sm:$0xff] }
  0x2d   : > { %4189 = vmatpush.msra.mxu2 %v4949_v48  ;;  %4172 = vmatpush.msra.mxu1 %v4954_v49 }
  0x2e   : > { %616 = vmatpush.msrb.mxu0 %v4739_v7  ;;  %708 = vmatmul.f32.vlgmr.msra.gmra.mxu2 %v317_v50  ;;  %v329_v7 = vld [vmem:[%s4922_s30 + $0x150] sm:$0xff]  ;;  %v448_v50 = vld [vmem:[%s7906_s1 + $0x188] sm:$0xff] }
  0x2f   : > { %746 = vmatpush.msrb.mxu3 %v461_v51  ;;  %954 = vmatpush.msrb.mxu2 %v496_v52  ;;  %v309_v51 = vld [vmem:[%s4922_s30 + $0xb0] sm:$0xff]  ;;  %v447_v52 = vld [vmem:[%s7906_s1 + $0x180] sm:$0xff] }
  0x30   : > { %617 = vmatpush.msrb.mxu0 %v4754_v10  ;;  %4173 = vmatpush.msra.mxu1 %v4969_v53  ;;  %v456_v10 = vld [vmem:[%s7906_s1 + $0x1c8] sm:$0xff] }
  0x31   : > { %643 = vmatmul.f32.vlgmr.msra.gmra.mxu1 %v316_v54  ;;  %747 = vmatpush.msrb.mxu3 %v460_v55  ;;  %v289_v54 = vld [vmem:[%s4922_s30 + $0x10] sm:$0xff] }
  0x32   : > { %618 = vmatpush.msrb.mxu0 %v4769_v13  ;;  %875 = vmatpush.msrb.mxu1 %v494_v56  ;;  %v489_v13 = vld [vmem:[%s7906_s1 + $0x2d0] sm:$0xff]  ;;  %v476_v56 = vld [vmem:[%s7906_s1 + $0x268] sm:$0xff] }
  0x33   : > { %569 = vmatmul.f32.gmra.mxu0 %v294_v57  ;;  %581 = vmatmul.f32.gmra.mxu3 %v322_v58  ;;  %v477_v55 = vld [vmem:[%s7906_s1 + $0x270] sm:$0xff]  ;;  %v475_v57 = vld [vmem:[%s7906_s1 + $0x260] sm:$0xff]  ;;  %v378_v58 = vld [vmem:[%s4922_s30 + $0x2d8] sm:$0xff] }
  0x34   : > { %619 = vmatpush.msrb.mxu0 %v4784_v16  ;;  %876 = vmatpush.msrb.mxu1 %v493_v59  ;;  %v330_v16 = vld [vmem:[%s4922_s30 + $0x158] sm:$0xff]  ;;  %v296_v59 = vld [vmem:[%s4922_s30 + $0x48] sm:$0xff] }
  0x35   : > { %748 = vmatpush.msrb.mxu3 %v459_v60  ;;  %955 = vmatpush.msrb.mxu2 %v495_v26  ;;  %v474_v60 = vld [vmem:[%s7906_s1 + $0x258] sm:$0xff]  ;;  %v464_v26 = vld [vmem:[%s7906_s1 + $0x208] sm:$0xff] }
  0x36   : > { %620 = vmatpush.msrb.mxu0 %v4799_v19  ;;  %711 = vmatmul.f32.gmra.mxu2 %v324_v61  ;;  %v488_v19 = vld [vmem:[%s7906_s1 + $0x2c8] sm:$0xff] }
  0x37   : > { %877 = vmatpush.msrb.mxu1 %v492_v62  ;;  %749 = vmatpush.msrb.mxu3 %v458_v63  ;;  %v380_v61 = vld [vmem:[%s4922_s30 + $0x2e8] sm:$0xff]  ;;  %v473_v62 = vld [vmem:[%s7906_s1 + $0x250] sm:$0xff] }
  0x38   : > { %621 = vmatpush.msrb.mxu0 %v4816_v22  ;;  %v336_v22 = vld [vmem:[%s4922_s30 + $0x188] sm:$0xff] }
  0x39   : > { %646 = vmatmul.f32.gmra.mxu1 %v323_v0  ;;  %750 = vmatpush.msrb.mxu3 %v457_v1  ;;  %v472_v63 = vld [vmem:[%s7906_s1 + $0x248] sm:$0xff]  ;;  %v379_v0 = vld [vmem:[%s4922_s30 + $0x2e0] sm:$0xff]  ;;  %v1036_v1 = vld [vmem:[%s7908_s3 + $0x78] sm:$0xff] }
  0x3a   : > { %622 = vmatpush.msrb.mxu0 %v4831_v25  ;;  %878 = vmatpush.msrb.mxu1 %v491_v4  ;;  %v453_v25 = vld [vmem:[%s7906_s1 + $0x1b0] sm:$0xff]  ;;  %v471_v4 = vld [vmem:[%s7906_s1 + $0x240] sm:$0xff] }
  0x3b   : > { %572 = vmatmul.f32.gmra.mxu0 %v301_v5  ;;  %584 = vmatmul.f32.gmra.mxu3 %v329_v7  ;;  %v385_v5 = vld [vmem:[%s4922_s30 + $0x310] sm:$0xff]  ;;  %v303_v7 = vld [vmem:[%s4922_s30 + $0x80] sm:$0xff] }
  0x3c   : > { %623 = vmatpush.msrb.mxu0 %v4846_v28  ;;  %879 = vmatpush.msrb.mxu1 %v490_v8  ;;  %v338_v28 = vld [vmem:[%s4922_s30 + $0x198] sm:$0xff] }
  0x3d   : > { %751 = vmatpush.msrb.mxu3 %v456_v10  ;;  %v470_v8 = vld [vmem:[%s7906_s1 + $0x238] sm:$0xff]  ;;  %v387_v10 = vld [vmem:[%s4922_s30 + $0x320] sm:$0xff] }
  0x3e   : > { %624 = vmatpush.msrb.mxu0 %v4864_v31  ;;  %714 = vmatmul.f32.gmra.mxu2 %v331_v11  ;;  %v337_v31 = vld [vmem:[%s4922_s30 + $0x190] sm:$0xff] }
  0x3f   : > { %880 = vmatpush.msrb.mxu1 %v489_v13  ;;  %752 = vmatpush.msrb.mxu3 %v455_v14  ;;  %v469_v11 = vld [vmem:[%s7906_s1 + $0x230] sm:$0xff]  ;;  %v468_v13 = vld [vmem:[%s7906_s1 + $0x228] sm:$0xff]  ;;  %v386_v14 = vld [vmem:[%s4922_s30 + $0x318] sm:$0xff] }
  0x40   : > { %625 = vmatpush.msrb.mxu0 %v4879_v34  ;;  %v343_v34 = vld [vmem:[%s4922_s30 + $0x1c0] sm:$0xff] }
  0x41   : > { %649 = vmatmul.f32.gmra.mxu1 %v330_v16  ;;  %753 = vmatpush.msrb.mxu3 %v454_v17  ;;  %v1035_v16 = vld [vmem:[%s7908_s3 + $0x70] sm:$0xff]  ;;  %v467_v17 = vld [vmem:[%s7906_s1 + $0x220] sm:$0xff] }
  0x42   : > { %626 = vmatpush.msrb.mxu0 %v4895_v37  ;;  %881 = vmatpush.msrb.mxu1 %v488_v19  ;;  %v345_v37 = vld [vmem:[%s4922_s30 + $0x1d0] sm:$0xff]  ;;  %v392_v19 = vld [vmem:[%s4922_s30 + $0x348] sm:$0xff] }
  0x43   : > { %575 = vmatmul.f32.gmra.mxu0 %v308_v20  ;;  %587 = vmatmul.f32.gmra.mxu3 %v336_v22  ;;  %v310_v20 = vld [vmem:[%s4922_s30 + $0xb8] sm:$0xff] }
  0x44   : > { %627 = vmatpush.msrb.mxu0 %v4910_v40  ;;  %882 = vmatpush.msrb.mxu1 %v487_v23  ;;  %v451_v40 = vld [vmem:[%s7906_s1 + $0x1a0] sm:$0xff]  ;;  %v466_v22 = vld [vmem:[%s7906_s1 + $0x218] sm:$0xff] }
  0x45   : > { %754 = vmatpush.msrb.mxu3 %v453_v25  ;;  %v394_v23 = vld [vmem:[%s4922_s30 + $0x358] sm:$0xff]  ;;  %v465_v25 = vld [vmem:[%s7906_s1 + $0x210] sm:$0xff] }
  0x46   : > { %628 = vmatpush.msrb.mxu0 %v4932_v43  ;;  %717 = vmatmul.f32.gmra.mxu2 %v338_v28  ;;  %v484_v43 = vld [vmem:[%s7906_s1 + $0x2a8] sm:$0xff]  ;;  %v393_v28 = vld [vmem:[%s4922_s30 + $0x350] sm:$0xff] }
  0x47   : > { %883 = vmatpush.msrb.mxu1 %v486_v29  ;;  %755 = vmatpush.msrb.mxu3 %v452_v32  ;;  %v463_v29 = vld [vmem:[%s7906_s1 + $0x200] sm:$0xff] }
  0x48   : > { %629 = vmatpush.msrb.mxu0 %v4954_v49  ;;  %v482_v49 = vld [vmem:[%s7906_s1 + $0x298] sm:$0xff]  ;;  %v291_v32 = vld [vmem:[%s4922_s30 + $0x20] sm:$0xff] }
  0x49   : > { %652 = vmatmul.f32.gmra.mxu1 %v337_v31  ;;  %756 = vmatpush.msrb.mxu3 %v451_v40  ;;  %v290_v31 = vld [vmem:[%s4922_s30 + $0x18] sm:$0xff] }
  0x4a   : > { %630 = vmatpush.msrb.mxu0 %v4969_v53  ;;  %884 = vmatpush.msrb.mxu1 %v485_v38  ;;  %v371_v53 = vld [vmem:[%s4922_s30 + $0x2a0] sm:$0xff]  ;;  %v297_v38 = vld [vmem:[%s4922_s30 + $0x50] sm:$0xff]  ;;  %v298_v40 = vld [vmem:[%s4922_s30 + $0x58] sm:$0xff] }
  0x4b   : > { %590 = vmatmul.f32.gmra.mxu3 %v343_v34  ;;  %631 = vmatmul.f32.vlgmr.msrb.gmra.mxu0 %v288_v35  ;;  %v1034_v34 = vld [vmem:[%s7908_s3 + $0x68] sm:$0xff]  ;;  %v293_v35 = vld [vmem:[%s4922_s30 + $0x30] sm:$0xff] }
  0x4c   : > { %680 = vmatpush.msra.mxu0 %v4715_v2  ;;  %885 = vmatpush.msrb.mxu1 %v484_v43  ;;  %v352_v2 = vld [vmem:[%s4922_s30 + $0x208] sm:$0xff] }
  0x4d   : > { %v300_v43 = vld [vmem:[%s4922_s30 + $0x68] sm:$0xff] }
  0x4e   : > { %681 = vmatpush.msra.mxu0 %v4720_v3  ;;  %720 = vmatmul.f32.gmra.mxu2 %v345_v37  ;;  %v450_v3 = vld [vmem:[%s7906_s1 + $0x198] sm:$0xff]  ;;  %v292_v37 = vld [vmem:[%s4922_s30 + $0x28] sm:$0xff] }
  0x4f   : > { %757 = vmatpush.msrb.mxu3 %v450_v3  ;;  %v1032_v3 = vld [vmem:[%s7908_s3 + $0x58] sm:$0xff] }
  0x50   : > { %682 = vmatpush.msra.mxu0 %v4734_v6  ;;  %v351_v6 = vld [vmem:[%s4922_s30 + $0x200] sm:$0xff] }
  0x51   : > { %655 = vmatmul.f32.gmra.mxu1 %v344_v41  ;;  %758 = vmatpush.msrb.mxu3 %v449_v46  ;;  %v1033_v41 = vld [vmem:[%s7908_s3 + $0x60] sm:$0xff] }
  0x52   : > { %683 = vmatpush.msra.mxu0 %v4749_v9  ;;  %v483_v9 = vld [vmem:[%s7906_s1 + $0x2a0] sm:$0xff] }
  0x53   : > { %593 = vmatmul.f32.gmra.mxu3 %v350_v44  ;;  %634 = vmatmul.f32.gmra.mxu0 %v295_v45  ;;  %v299_v44 = vld [vmem:[%s4922_s30 + $0x60] sm:$0xff]  ;;  %v304_v45 = vld [vmem:[%s4922_s30 + $0x88] sm:$0xff] }
  0x54   : > { %684 = vmatpush.msra.mxu0 %v4764_v12  ;;  %886 = vmatpush.msrb.mxu1 %v483_v9  ;;  %v357_v12 = vld [vmem:[%s4922_s30 + $0x230] sm:$0xff]  ;;  %v306_v9 = vld [vmem:[%s4922_s30 + $0x98] sm:$0xff]  ;;  %v311_v46 = vld [vmem:[%s4922_s30 + $0xc0] sm:$0xff] }
  0x55   : > { %759 = vmatpush.msrb.mxu3 %v448_v50  ;;  %v318_v50 = vld [vmem:[%s4922_s30 + $0xf8] sm:$0xff] }
  0x56   : > { %685 = vmatpush.msra.mxu0 %v4779_v15  ;;  %723 = vmatmul.f32.gmra.mxu2 %v352_v2  ;;  %v359_v15 = vld [vmem:[%s4922_s30 + $0x240] sm:$0xff]  ;;  %v305_v2 = vld [vmem:[%s4922_s30 + $0x90] sm:$0xff] }
  0x57   : > { %887 = vmatpush.msrb.mxu1 %v482_v49  ;;  %760 = vmatpush.msrb.mxu3 %v447_v52  ;;  %v313_v49 = vld [vmem:[%s4922_s30 + $0xd0] sm:$0xff] }
  0x58   : > { %686 = vmatpush.msra.mxu0 %v4794_v18  ;;  %v358_v18 = vld [vmem:[%s4922_s30 + $0x238] sm:$0xff] }
  0x59   : > { %658 = vmatmul.f32.gmra.mxu1 %v351_v6  ;;  %1041 = vmatpush.msra.mxu3 %v1036_v1  ;;  %v307_v6 = vld [vmem:[%s4922_s30 + $0xa0] sm:$0xff] }
  0x5a   : > { %687 = vmatpush.msra.mxu0 %v4811_v21  ;;  %v364_v21 = vld [vmem:[%s4922_s30 + $0x268] sm:$0xff] }
  0x5b   : > { %596 = vmatmul.f32.gmra.mxu3 %v357_v12  ;;  %637 = vmatmul.f32.gmra.mxu0 %v302_v47  ;;  %v312_v12 = vld [vmem:[%s4922_s30 + $0xc8] sm:$0xff]  ;;  %v1031_v47 = vld [vmem:[%s7908_s3 + $0x50] sm:$0xff] }
  0x5c   : > { %688 = vmatpush.msra.mxu0 %v4826_v24  ;;  %v366_v24 = vld [vmem:[%s4922_s30 + $0x278] sm:$0xff]  ;;  %1042 = vmatpush.msra.mxu3 %v1035_v16 }
  0x5e   : > { %689 = vmatpush.msra.mxu0 %v4841_v27  ;;  %726 = vmatmul.f32.gmra.mxu2 %v359_v15  ;;  %v481_v27 = vld [vmem:[%s7906_s1 + $0x290] sm:$0xff]  ;;  %v314_v15 = vld [vmem:[%s4922_s30 + $0xd8] sm:$0xff] }
  0x5f   : > { %888 = vmatpush.msrb.mxu1 %v481_v27  ;;  %1043 = vmatpush.msra.mxu3 %v1034_v34  ;;  %v321_v27 = vld [vmem:[%s4922_s30 + $0x110] sm:$0xff] }
  0x60   : > { %690 = vmatpush.msra.mxu0 %v4859_v30  ;;  %v365_v30 = vld [vmem:[%s4922_s30 + $0x270] sm:$0xff] }
  0x61   : > { %661 = vmatmul.f32.gmra.mxu1 %v358_v18  ;;  %1044 = vmatpush.msra.mxu3 %v1033_v41  ;;  %v1026_v41 = vld [vmem:[%s7908_s3 + $0x28] sm:$0xff] }
  0x62   : > { %691 = vmatpush.msra.mxu0 %v4874_v33  ;;  %v480_v33 = vld [vmem:[%s7906_s1 + $0x288] sm:$0xff] }
  0x63   : > { %599 = vmatmul.f32.gmra.mxu3 %v364_v21  ;;  %640 = vmatmul.f32.gmra.mxu0 %v309_v51  ;;  %v319_v21 = vld [vmem:[%s4922_s30 + $0x100] sm:$0xff]  ;;  %v1030_v51 = vld [vmem:[%s7908_s3 + $0x48] sm:$0xff] }
  0x64   : > { %692 = vmatpush.msra.mxu0 %v4890_v36  ;;  %889 = vmatpush.msrb.mxu1 %v480_v33  ;;  %v478_v36 = vld [vmem:[%s7906_s1 + $0x278] sm:$0xff]  ;;  %v320_v33 = vld [vmem:[%s4922_s30 + $0x108] sm:$0xff] }
  0x65   : > { %1045 = vmatpush.msra.mxu3 %v1032_v3  ;;  %v348_v3 = vld [vmem:[%s4922_s30 + $0x1e8] sm:$0xff] }
  0x66   : > { %693 = vmatpush.msra.mxu0 %v4905_v39  ;;  %729 = vmatmul.f32.gmra.mxu2 %v366_v24  ;;  %v373_v39 = vld [vmem:[%s4922_s30 + $0x2b0] sm:$0xff]  ;;  %v5237_v24 = vld [vmem:[%s7907_s2] ss:$0 sm:$0xff] }
  0x67   : > { %1046 = vmatpush.msra.mxu3 %v1031_v47  ;;  %v1025_v47 = vld [vmem:[%s7908_s3 + $0x20] sm:$0xff] }
  0x68   : > { %694 = vmatpush.msra.mxu0 %v4927_v42  ;;  %v479_v42 = vld [vmem:[%s7906_s1 + $0x280] sm:$0xff] }
  0x69   : > { %664 = vmatmul.f32.gmra.mxu1 %v365_v30  ;;  %1047 = vmatpush.msra.mxu3 %v1030_v51 }
  0x6a   : > { %695 = vmatpush.msra.mxu0 %v4949_v48  ;;  %890 = vmatpush.msrb.mxu1 %v479_v42  ;;  %v372_v48 = vld [vmem:[%s4922_s30 + $0x2a8] sm:$0xff] }
  0x6b   : > { %602 = vmatmul.f32.gmra.mxu3 %v371_v53  ;;  %696 = vmatmul.f32.vlgmr.msra.gmra.mxu0 %v289_v54 }
  0x6c   : > { %810 = vmatpush.msrb.mxu0 %v478_v36  ;;  %v325_v36 = vld [vmem:[%s4922_s30 + $0x130] sm:$0xff] }
  0x6e   : > { %732 = vmatmul.f32.gmra.mxu2 %v373_v39  ;;  %811 = vmatpush.msrb.mxu0 %v477_v55  ;;  %v326_v39 = vld [vmem:[%s4922_s30 + $0x138] sm:$0xff] }
  0x70   : > { %812 = vmatpush.msrb.mxu0 %v476_v56  ;;  %v1029_v56 = vld [vmem:[%s7908_s3 + $0x40] sm:$0xff] }
  0x71   : > { %667 = vmatmul.f32.gmra.mxu1 %v372_v48  ;;  %1048 = vmatpush.msra.mxu3 %v1029_v56  ;;  %v367_v56 = vld [vmem:[%s4922_s30 + $0x280] sm:$0xff] }
  0x72   : > { %813 = vmatpush.msrb.mxu0 %v475_v57  ;;  %v328_v57 = vld [vmem:[%s4922_s30 + $0x148] sm:$0xff] }
  0x73   : > { %605 = vmatmul.f32.gmra.mxu3 %v378_v58  ;;  %699 = vmatmul.f32.gmra.mxu0 %v296_v59 }
  0x74   : > { %814 = vmatpush.msrb.mxu0 %v474_v60  ;;  %v327_v60 = vld [vmem:[%s4922_s30 + $0x140] sm:$0xff] }
  0x76   : > { %735 = vmatmul.f32.gmra.mxu2 %v380_v61  ;;  %815 = vmatpush.msrb.mxu0 %v473_v62 }
  0x78   : > { %816 = vmatpush.msrb.mxu0 %v472_v63  ;;  %v332_v63 = vld [vmem:[%s4922_s30 + $0x168] sm:$0xff] }
  0x79   : > { %670 = vmatmul.f32.gmra.mxu1 %v379_v0  ;;  %v333_v0 = vld [vmem:[%s4922_s30 + $0x170] sm:$0xff] }
  0x7a   : > { %817 = vmatpush.msrb.mxu0 %v471_v4 }
  0x7b   : > { %608 = vmatmul.f32.gmra.mxu3 %v385_v5  ;;  %702 = vmatmul.f32.gmra.mxu0 %v303_v7  ;;  %v1028_v5 = vld [vmem:[%s7908_s3 + $0x38] sm:$0xff] }
  0x7c   : > { %818 = vmatpush.msrb.mxu0 %v470_v8  ;;  %1049 = vmatpush.msra.mxu3 %v1028_v5  ;;  %v335_v8 = vld [vmem:[%s4922_s30 + $0x180] sm:$0xff] }
  0x7d   : > { %v375_v5 = vld [vmem:[%s4922_s30 + $0x2c0] sm:$0xff] }
  0x7e   : > { %738 = vmatmul.f32.gmra.mxu2 %v387_v10  ;;  %819 = vmatpush.msrb.mxu0 %v469_v11 }
  0x80   : > { %820 = vmatpush.msrb.mxu0 %v468_v13  ;;  %v334_v13 = vld [vmem:[%s4922_s30 + $0x178] sm:$0xff] }
  0x81   : > { %673 = vmatmul.f32.gmra.mxu1 %v386_v14 }
  0x82   : > { %821 = vmatpush.msrb.mxu0 %v467_v17  ;;  %v339_v17 = vld [vmem:[%s4922_s30 + $0x1a0] sm:$0xff] }
  0x83   : > { %611 = vmatmul.f32.gmra.mxu3 %v392_v19  ;;  %705 = vmatmul.f32.gmra.mxu0 %v310_v20  ;;  %v340_v19 = vld [vmem:[%s4922_s30 + $0x1a8] sm:$0xff] }
  0x84   : > { %822 = vmatpush.msrb.mxu0 %v466_v22 }
  0x86   : > { %741 = vmatmul.f32.gmra.mxu2 %v394_v23  ;;  %823 = vmatpush.msrb.mxu0 %v465_v25  ;;  %v1027_v23 = vld [vmem:[%s7908_s3 + $0x30] sm:$0xff] }
  0x87   : > { %1050 = vmatpush.msra.mxu3 %v1027_v23 }
  0x88   : > { %824 = vmatpush.msrb.mxu0 %v464_v26  ;;  %v342_v26 = vld [vmem:[%s4922_s30 + $0x1b8] sm:$0xff] }
  0x89   : > { %676 = vmatmul.f32.gmra.mxu1 %v393_v28  ;;  %1051 = vmatpush.msra.mxu3 %v1026_v41  ;;  %v391_v41 = vld [vmem:[%s4922_s30 + $0x340] sm:$0xff] }
  0x8a   : > { %825 = vmatpush.msrb.mxu0 %v463_v29 }
  0x8b   : > { %761 = vmatmul.f32.vlgmr.msrb.gmra.mxu3 %v290_v31  ;;  %826 = vmatmul.f32.vlgmr.msrb.gmra.mxu0 %v291_v32  ;;  %v341_v31 = vld [vmem:[%s4922_s30 + $0x1b0] sm:$0xff] }
  0x8c   : > { %1052 = vmatpush.msra.mxu3 %v1025_v47  ;;  %v395_v47 = vld [vmem:[%s4922_s30 + $0x360] sm:$0xff] }
  0x8e   : > { %4012 = vmatmul.msk.f32.vlgmr.msrb.gmra.mxu2 %vm501_vm0, %v293_v35  ;;  %v346_v35 = vld [vmem:[%s4922_s30 + $0x1d8] sm:$0xff] }
  0x91   : > { %891 = vmatmul.f32.vlgmr.msrb.gmra.mxu1 %v292_v37  ;;  %v347_v37 = vld [vmem:[%s4922_s30 + $0x1e0] sm:$0xff] }
  0x93   : > { %764 = vmatmul.f32.gmra.mxu3 %v297_v38  ;;  %829 = vmatmul.f32.gmra.mxu0 %v298_v40 }
  0x96   : > { %4013 = vmatmul.msk.f32.gmra.mxu2 %vm501_vm0, %v300_v43 }
  0x99   : > { %894 = vmatmul.f32.gmra.mxu1 %v299_v44  ;;  %v349_v44 = vld [vmem:[%s4922_s30 + $0x1f0] sm:$0xff] }
  0x9b   : > { %767 = vmatmul.f32.gmra.mxu3 %v304_v45  ;;  %832 = vmatmul.f32.gmra.mxu0 %v305_v2 }
  0x9e   : > { %4014 = vmatmul.msk.f32.gmra.mxu2 %vm501_vm0, %v307_v6 }
  0xa1   : > { %897 = vmatmul.f32.gmra.mxu1 %v306_v9  ;;  %v353_v9 = vld [vmem:[%s4922_s30 + $0x210] sm:$0xff] }
  0xa3   : > { %770 = vmatmul.f32.gmra.mxu3 %v311_v46  ;;  %835 = vmatmul.f32.gmra.mxu0 %v312_v12  ;;  %v354_v46 = vld [vmem:[%s4922_s30 + $0x218] sm:$0xff] }
  0xa6   : > { %4015 = vmatmul.msk.f32.gmra.mxu2 %vm501_vm0, %v314_v15  ;;  %v356_v15 = vld [vmem:[%s4922_s30 + $0x228] sm:$0xff] }
  0xa8   : > { %v5227_v18 = vpop.f32.mrf.mxu0 }
  0xa9   : > { %900 = vmatmul.f32.gmra.mxu1 %v313_v49 }
  0xab   : > { %773 = vmatmul.f32.gmra.mxu3 %v318_v50  ;;  %838 = vmatmul.f32.gmra.mxu0 %v319_v21  ;;  %v355_v21 = vld [vmem:[%s4922_s30 + $0x220] sm:$0xff] }
  0xae   : > { %v579_v52 = vpop.f32.mrf.mxu3  ;;  %v644_v30 = vpop.f32.mrf.mxu1  ;;  %4016 = vmatmul.msk.f32.gmra.mxu2 %vm501_vm0, %v321_v27  ;;  %v360_v27 = vld [vmem:[%s4922_s30 + $0x248] sm:$0xff] }
  0xaf   : > { %v580_v53 = vadd.f32 %v5237_v24, %v579_v52  ;;  %v361_v52 = vld [vmem:[%s4922_s30 + $0x250] sm:$0xff] }
  0xb0   : > { %v5243_v54 = vpop.f32.mrf.mxu0 }
  0xb1   : > { %v645_v55 = vadd.f32 %v644_v30, %v580_v53  ;;  %v709_v42 = vpop.f32.mrf.mxu2  ;;  %903 = vmatmul.f32.gmra.mxu1 %v320_v33  ;;  %v1024_v33 = vld [vmem:[%s7908_s3 + $0x18] sm:$0xff]  ;;  %v363_v53 = vld [vmem:[%s4922_s30 + $0x260] sm:$0xff] }
  0xb2   : > { %1053 = vmatpush.msra.mxu3 %v1024_v33 }
  0xb3   : > { %v5250_v48 = vadd.f32 %v709_v42, %v645_v55  ;;  %776 = vmatmul.f32.gmra.mxu3 %v325_v36  ;;  %841 = vmatmul.f32.gmra.mxu0 %v326_v39  ;;  %v362_v55 = vld [vmem:[%s4922_s30 + $0x258] sm:$0xff] }
  0xb6   : > { %v582_v58 = vpop.f32.mrf.mxu3  ;;  %v647_v59 = vpop.f32.mrf.mxu1  ;;  %4017 = vmatmul.msk.f32.gmra.mxu2 %vm501_vm0, %v328_v57  ;;  %v368_v57 = vld [vmem:[%s4922_s30 + $0x288] sm:$0xff] }
  0xb7   : > { %v583_v61 = vadd.f32 %v5237_v24, %v582_v58 }
  0xb8   : > { %v5256_v62 = vpop.f32.mrf.mxu0 }
  0xb9   : > { %v648_v1 = vadd.f32 %v647_v59, %v583_v61  ;;  %v712_v4 = vpop.f32.mrf.mxu2  ;;  %906 = vmatmul.f32.gmra.mxu1 %v327_v60  ;;  %v1023_v59 = vld [vmem:[%s7908_s3 + $0x10] sm:$0xff]  ;;  %v370_v60 = vld [vmem:[%s4922_s30 + $0x298] sm:$0xff] }
  0xba   : > { %1054 = vmatpush.msra.mxu3 %v1023_v59 }
  0xbb   : > { %v5263_v7 = vadd.f32 %v712_v4, %v648_v1  ;;  %779 = vmatmul.f32.gmra.mxu3 %v332_v63  ;;  %844 = vmatmul.f32.gmra.mxu0 %v333_v0  ;;  %v369_v0 = vld [vmem:[%s4922_s30 + $0x290] sm:$0xff]  ;;  %v374_v4 = vld [vmem:[%s4922_s30 + $0x2b8] sm:$0xff] }
  0xbe   : > { %v585_v10 = vpop.f32.mrf.mxu3  ;;  %v650_v11 = vpop.f32.mrf.mxu1  ;;  %4018 = vmatmul.msk.f32.gmra.mxu2 %vm501_vm0, %v335_v8 }
  0xbf   : > { %v586_v14 = vadd.f32 %v5237_v24, %v585_v10  ;;  %v1022_v10 = vld [vmem:[%s7908_s3 + $0x8] sm:$0xff] }
  0xc0   : > { %v5269_v16 = vpop.f32.mrf.mxu0  ;;  %1055 = vmatpush.msra.mxu3 %v1022_v10 }
  0xc1   : > { %v651_v20 = vadd.f32 %v650_v11, %v586_v14  ;;  %v715_v22 = vpop.f32.mrf.mxu2  ;;  %909 = vmatmul.f32.gmra.mxu1 %v334_v13  ;;  %v377_v11 = vld [vmem:[%s4922_s30 + $0x2d0] sm:$0xff] }
  0xc3   : > { %v5276_v25 = vadd.f32 %v715_v22, %v651_v20  ;;  %782 = vmatmul.f32.gmra.mxu3 %v339_v17  ;;  %847 = vmatmul.f32.gmra.mxu0 %v340_v19  ;;  %v376_v17 = vld [vmem:[%s4922_s30 + $0x2c8] sm:$0xff]  ;;  %v381_v20 = vld [vmem:[%s4922_s30 + $0x2f0] sm:$0xff]  ;;  %v382_v22 = vld [vmem:[%s4922_s30 + $0x2f8] sm:$0xff] }
  0xc6   : > { %v588_v28 = vpop.f32.mrf.mxu3  ;;  %v653_v29 = vpop.f32.mrf.mxu1  ;;  %4019 = vmatmul.msk.f32.gmra.mxu2 %vm501_vm0, %v342_v26  ;;  %v1021_v26 = vld [vmem:[%s7908_s3] sm:$0xff] }
  0xc7   : > { %v589_v32 = vadd.f32 %v5237_v24, %v588_v28  ;;  %1056 = vmatpush.msra.mxu3 %v1021_v26  ;;  %v384_v28 = vld [vmem:[%s4922_s30 + $0x308] sm:$0xff] }
  0xc8   : > { %v5282_v34 = vpop.f32.mrf.mxu0 }
  0xc9   : > { %v654_v38 = vadd.f32 %v653_v29, %v589_v32  ;;  %v718_v40 = vpop.f32.mrf.mxu2  ;;  %912 = vmatmul.f32.gmra.mxu1 %v341_v31  ;;  %v383_v32 = vld [vmem:[%s4922_s30 + $0x300] sm:$0xff] }
  0xcb   : > { %v5289_v43 = vadd.f32 %v718_v40, %v654_v38  ;;  %785 = vmatmul.f32.gmra.mxu3 %v346_v35  ;;  %850 = vmatmul.f32.gmra.mxu0 %v347_v37  ;;  %v388_v37 = vld [vmem:[%s4922_s30 + $0x328] sm:$0xff]  ;;  %v389_v38 = vld [vmem:[%s4922_s30 + $0x330] sm:$0xff] }
  0xce   : > { %v5292_v45 = vpop.f32.mrf.mxu3  ;;  %v5294_v2 = vpop.f32.mrf.mxu1  ;;  %4020 = vmatmul.msk.f32.gmra.mxu2 %vm501_vm0, %v349_v44 }
  0xd0   : > { %v5298_v6 = vpop.f32.mrf.mxu0 }
  0xd1   : > { %v5302_v12 = vpop.f32.mrf.mxu2  ;;  %915 = vmatmul.f32.gmra.mxu1 %v348_v3 }
  0xd3   : > { %788 = vmatmul.f32.gmra.mxu3 %v353_v9  ;;  %853 = vmatmul.f32.gmra.mxu0 %v354_v46  ;;  %v390_v9 = vld [vmem:[%s4922_s30 + $0x338] sm:$0xff] }
  0xd6   : > { %v5308_v49 = vpop.f32.mrf.mxu3  ;;  %v5310_v50 = vpop.f32.mrf.mxu1  ;;  %4021 = vmatmul.msk.f32.gmra.mxu2 %vm501_vm0, %v356_v15  ;;  %v396_v15 = vld [vmem:[%s4922_s30 + $0x368] sm:$0xff] }
  0xd8   : > { %v5314_v51 = vpop.f32.mrf.mxu0 }
  0xd9   : > { %v5318_v30 = vpop.f32.mrf.mxu2  ;;  %918 = vmatmul.f32.gmra.mxu1 %v355_v21 }
  0xdb   : > { %791 = vmatmul.f32.gmra.mxu3 %v360_v27  ;;  %856 = vmatmul.f32.gmra.mxu0 %v361_v52  ;;  %v1229_v27 = vld [vmem:[%s7910_s5 + $0x358] sm:$0xff] }
  0xdc   : > { %1380 = vmatpush.msra.mxu2 %v1229_v27  ;;  %v398_v52 = vld [vmem:[%s4922_s30 + $0x378] sm:$0xff] }
  0xde   : > { %v5324_v36 = vpop.f32.mrf.mxu3  ;;  %v5326_v39 = vpop.f32.mrf.mxu1  ;;  %4022 = vmatmul.msk.f32.gmra.mxu2 %vm501_vm0, %v363_v53 }
  0xe0   : > { %v5330_v42 = vpop.f32.mrf.mxu0 }
  0xe1   : > { %v5334_v58 = vpop.f32.mrf.mxu2  ;;  %921 = vmatmul.f32.gmra.mxu1 %v362_v55  ;;  %v397_v55 = vld [vmem:[%s4922_s30 + $0x370] sm:$0xff] }
  0xe3   : > { %794 = vmatmul.f32.gmra.mxu3 %v367_v56  ;;  %859 = vmatmul.f32.gmra.mxu0 %v368_v57  ;;  %v1227_v56 = vld [vmem:[%s7910_s5 + $0x348] sm:$0xff]  ;;  %v1228_v57 = vld [vmem:[%s7910_s5 + $0x350] sm:$0xff] }
  0xe4   : > { %1250 = vmatpush.msra.mxu0 %v1227_v56  ;;  %1315 = vmatpush.msra.mxu1 %v1228_v57 }
  0xe6   : > { %v5340_v61 = vpop.f32.mrf.mxu3  ;;  %v5342_v63 = vpop.f32.mrf.mxu1  ;;  %4023 = vmatmul.msk.f32.gmra.mxu2 %vm501_vm0, %v370_v60  ;;  %v568_v60 = vadd.f32 %v5237_v24, %v5227_v18  ;;  %v1221_v18 = vld [vmem:[%s7910_s5 + $0x318] sm:$0xff] }
  0xe7   : > { %1316 = vmatpush.msra.mxu1 %v1221_v18  ;;  %v1207_v18 = vld [vmem:[%s7910_s5 + $0x2a8] sm:$0xff] }
  0xe8   : > { %v5346_v1 = vpop.f32.mrf.mxu0 }
  0xe9   : > { %v5350_v8 = vpop.f32.mrf.mxu2  ;;  %924 = vmatmul.f32.gmra.mxu1 %v369_v0 }
  0xeb   : > { %797 = vmatmul.f32.gmra.mxu3 %v374_v4  ;;  %862 = vmatmul.f32.gmra.mxu0 %v375_v5  ;;  %v1222_v4 = vld [vmem:[%s7910_s5 + $0x320] sm:$0xff]  ;;  %v633_v5 = vadd.f32 %v5282_v34, %v568_v60 }
  0xec   : > { %1381 = vmatpush.msra.mxu2 %v1222_v4 }
  0xed   : > { %v698_v10 = vadd.f32 %v5346_v1, %v633_v5  ;;  %v1215_v1 = vld [vmem:[%s7910_s5 + $0x2e8] sm:$0xff] }
  0xee   : > { %v5356_v13 = vpop.f32.mrf.mxu3  ;;  %v5358_v14 = vpop.f32.mrf.mxu1  ;;  %4024 = vmatmul.msk.f32.gmra.mxu2 %vm501_vm0, %v377_v11 }
  0xef   : > { %1382 = vmatpush.msra.mxu2 %v1215_v1 }
  0xf0   : > { %v5362_v19 = vpop.f32.mrf.mxu0 }
  0xf1   : > { %v5366_v23 = vpop.f32.mrf.mxu2  ;;  %927 = vmatmul.f32.gmra.mxu1 %v376_v17 }
  0xf3   : > { %800 = vmatmul.f32.gmra.mxu3 %v381_v20  ;;  %865 = vmatmul.f32.gmra.mxu0 %v382_v22  ;;  %v1220_v22 = vld [vmem:[%s7910_s5 + $0x310] sm:$0xff] }
  0xf4   : > { %1251 = vmatpush.msra.mxu0 %v1220_v22 }
  0xf6   : > { %v5372_v29 = vpop.f32.mrf.mxu3  ;;  %v5374_v31 = vpop.f32.mrf.mxu1  ;;  %4025 = vmatmul.msk.f32.gmra.mxu2 %vm501_vm0, %v384_v28  ;;  %v571_v28 = vadd.f32 %v5237_v24, %v5243_v54  ;;  %v1213_v54 = vld [vmem:[%s7910_s5 + $0x2d8] sm:$0xff] }
  0xf7   : > { %1252 = vmatpush.msra.mxu0 %v1213_v54 }
  0xf8   : > { %v5378_v35 = vpop.f32.mrf.mxu0 }
  0xf9   : > { %v5382_v40 = vpop.f32.mrf.mxu2  ;;  %930 = vmatmul.f32.gmra.mxu1 %v383_v32 }
  0xfb   : > { %803 = vmatmul.f32.gmra.mxu3 %v388_v37  ;;  %868 = vmatmul.f32.gmra.mxu0 %v389_v38  ;;  %v636_v37 = vadd.f32 %v5298_v6, %v571_v28  ;;  %v574_v6 = vadd.f32 %v5237_v24, %v5256_v62  ;;  %v1206_v62 = vld [vmem:[%s7910_s5 + $0x2a0] sm:$0xff] }
  0xfc   : > { %1253 = vmatpush.msra.mxu0 %v1206_v62 }
  0xfd   : > { %v639_v60 = vadd.f32 %v5314_v51, %v574_v6  ;;  %v577_v51 = vadd.f32 %v5237_v24, %v5269_v16  ;;  %v1199_v16 = vld [vmem:[%s7910_s5 + $0x268] sm:$0xff] }
  0xfe   : > { %v5385_v44 = vpop.f32.mrf.mxu3  ;;  %v5387_v3 = vpop.f32.mrf.mxu1  ;;  %4026 = vmatmul.msk.f32.gmra.mxu2 %vm501_vm0, %v391_v41  ;;  %v701_v41 = vadd.f32 %v5362_v19, %v636_v37  ;;  %1254 = vmatpush.msra.mxu0 %v1199_v16  ;;  %v1179_v16 = vld [vmem:[%s7910_s5 + $0x1c8] sm:$0xff] }
  0xff   : > { %v704_v5 = vadd.f32 %v5378_v35, %v639_v60  ;;  %v1192_v60 = vld [vmem:[%s7910_s5 + $0x230] sm:$0xff] }
 0x100   : > { %v5391_v46 = vpop.f32.mrf.mxu0  ;;  %1255 = vmatpush.msra.mxu0 %v1192_v60  ;;  %v1172_v60 = vld [vmem:[%s7910_s5 + $0x190] sm:$0xff] }
 0x101   : > { %v5395_v21 = vpop.f32.mrf.mxu2  ;;  %933 = vmatmul.f32.gmra.mxu1 %v390_v9 }
 0x103   : > { %806 = vmatmul.f32.gmra.mxu3 %v395_v47  ;;  %871 = vmatmul.f32.gmra.mxu0 %v396_v15 }
 0x106   : > { %v5401_v33 = vpop.f32.mrf.mxu3  ;;  %v5403_v53 = vpop.f32.mrf.mxu1  ;;  %4027 = vmatmul.msk.f32.gmra.mxu2 %vm501_vm0, %v398_v52 }
 0x108   : > { %v827_v59 = vpop.f32.mrf.mxu0 }
 0x109   : > { %v5415_v0 = vpop.f32.mrf.mxu2  ;;  %936 = vmatmul.f32.gmra.mxu1 %v397_v55  ;;  %v1214_v55 = vld [vmem:[%s7910_s5 + $0x2e0] sm:$0xff] }
 0x10a   : > { %1317 = vmatpush.msra.mxu1 %v1214_v55 }
 0x10c   : > { %1318 = vmatpush.msra.mxu1 %v1207_v18 }
 0x10e   : > { %v762_v11 = vpop.f32.mrf.mxu3  ;;  %v892_v17 = vpop.f32.mrf.mxu1 }
 0x10f   : > { %v763_v20 = vadd.f32 %v762_v11, %v698_v10 }
 0x110   : > { %v830_v26 = vpop.f32.mrf.mxu0 }
 0x111   : > { %v828_v34 = vadd.f32 %v827_v59, %v763_v20  ;;  %v957_v32 = vpop.f32.mrf.mxu2  ;;  %v1208_v59 = vld [vmem:[%s7910_s5 + $0x2b0] sm:$0xff] }
 0x112   : > { %1383 = vmatpush.msra.mxu2 %v1208_v59 }
 0x113   : > { %v893_v38 = vadd.f32 %v892_v17, %v828_v34  ;;  %v1201_v34 = vld [vmem:[%s7910_s5 + $0x278] sm:$0xff] }
 0x114   : > { %1384 = vmatpush.msra.mxu2 %v1201_v34 }
 0x115   : > { %v958_v9 = vadd.f32 %v957_v32, %v893_v38  ;;  %v642_v32 = vadd.f32 %v5330_v42, %v577_v51  ;;  %v1185_v51 = vld [vmem:[%s7910_s5 + $0x1f8] sm:$0xff] }
 0x116   : > { %v765_v47 = vpop.f32.mrf.mxu3  ;;  %v895_v15 = vpop.f32.mrf.mxu1  ;;  %1256 = vmatpush.msra.mxu0 %v1185_v51  ;;  %v1165_v51 = vld [vmem:[%s7910_s5 + $0x158] sm:$0xff] }
 0x117   : > { %v1005_v27 = vmax.f32 %v958_v9, 0.0  ;;  %v766_v52 = vadd.f32 %v765_v47, %v701_v41  ;;  %v707_v37 = vadd.f32 %v5391_v46, %v642_v32  ;;  %v1194_v46 = vld [vmem:[%s7910_s5 + $0x240] sm:$0xff] }
 0x118   : > { %v833_v56 = vpop.f32.mrf.mxu0  ;;  %1385 = vmatpush.msra.mxu2 %v1194_v46  ;;  %v592_v46 = vadd.f32 %v5237_v24, %v5292_v45 }
 0x119   : > { %v831_v19 = vadd.f32 %v830_v26, %v766_v52  ;;  %1057 = vmatmul.f32.vlgmr.msra.gmra.mxu3 %v1005_v27  ;;  %v960_v57 = vpop.f32.mrf.mxu2  ;;  %v1200_v27 = vld [vmem:[%s7910_s5 + $0x270] sm:$0xff] }
 0x11a   : > { %1319 = vmatpush.msra.mxu1 %v1200_v27 }
 0x11b   : > { %v896_v4 = vadd.f32 %v895_v15, %v831_v19 }
 0x11d   : > { %v961_v10 = vadd.f32 %v960_v57, %v896_v4  ;;  %v1193_v4 = vld [vmem:[%s7910_s5 + $0x238] sm:$0xff] }
 0x11e   : > { %v768_v11 = vpop.f32.mrf.mxu3  ;;  %v898_v17 = vpop.f32.mrf.mxu1  ;;  %1320 = vmatpush.msra.mxu1 %v1193_v4 }
 0x11f   : > { %v1006_v20 = vmax.f32 %v961_v10, 0.0  ;;  %v769_v22 = vadd.f32 %v768_v11, %v704_v5 }
 0x120   : > { %v836_v26 = vpop.f32.mrf.mxu0 }
 0x121   : > { %v834_v35 = vadd.f32 %v833_v56, %v769_v22  ;;  %1060 = vmatmul.f32.gmra.mxu3 %v1006_v20  ;;  %v963_v28 = vpop.f32.mrf.mxu2 }
 0x123   : > { %v899_v1 = vadd.f32 %v898_v17, %v834_v35  ;;  %v1187_v17 = vld [vmem:[%s7910_s5 + $0x208] sm:$0xff]  ;;  %v1186_v35 = vld [vmem:[%s7910_s5 + $0x200] sm:$0xff] }
 0x124   : > { %1386 = vmatpush.msra.mxu2 %v1187_v17  ;;  %1321 = vmatpush.msra.mxu1 %v1186_v35 }
 0x125   : > { %v964_v38 = vadd.f32 %v963_v28, %v899_v1  ;;  %v1180_v1 = vld [vmem:[%s7910_s5 + $0x1d0] sm:$0xff] }
 0x126   : > { %v771_v41 = vpop.f32.mrf.mxu3  ;;  %v901_v9 = vpop.f32.mrf.mxu1  ;;  %1387 = vmatpush.msra.mxu2 %v1180_v1  ;;  %1322 = vmatpush.msra.mxu1 %v1179_v16 }
 0x127   : > { %v1007_v47 = vmax.f32 %v964_v38, 0.0  ;;  %v772_v15 = vadd.f32 %v771_v41, %v707_v37 }
 0x128   : > { %v839_v52 = vpop.f32.mrf.mxu0  ;;  %1323 = vmatpush.msra.mxu1 %v1172_v60 }
 0x129   : > { %v837_v42 = vadd.f32 %v836_v26, %v772_v15  ;;  %1063 = vmatmul.f32.gmra.mxu3 %v1007_v47  ;;  %v966_v54 = vpop.f32.mrf.mxu2  ;;  %v1178_v15 = vld [vmem:[%s7910_s5 + $0x1c0] sm:$0xff] }
 0x12a   : > { %1257 = vmatpush.msra.mxu0 %v1178_v15  ;;  %1324 = vmatpush.msra.mxu1 %v1165_v51  ;;  %v1158_v15 = vld [vmem:[%s7910_s5 + $0x120] sm:$0xff] }
 0x12b   : > { %v902_v55 = vadd.f32 %v901_v9, %v837_v42 }
 0x12c   : > { %1325 = vmatpush.msra.mxu1 %v1158_v15 }
 0x12d   : > { %v967_v56 = vadd.f32 %v966_v54, %v902_v55  ;;  %v1173_v54 = vld [vmem:[%s7910_s5 + $0x198] sm:$0xff] }
 0x12e   : > { %v774_v6 = vpop.f32.mrf.mxu3  ;;  %v904_v19 = vpop.f32.mrf.mxu1  ;;  %1388 = vmatpush.msra.mxu2 %v1173_v54 }
 0x12f   : > { %v1008_v57 = vmax.f32 %v967_v56, 0.0  ;;  %v775_v59 = vadd.f32 %v774_v6, %v5250_v48 }
 0x130   : > { %v842_v5 = vpop.f32.mrf.mxu0 }
 0x131   : > { %v840_v10 = vadd.f32 %v839_v52, %v775_v59  ;;  %1066 = vmatmul.f32.gmra.mxu3 %v1008_v57  ;;  %v969_v11 = vpop.f32.mrf.mxu2  ;;  %v1171_v59 = vld [vmem:[%s7910_s5 + $0x188] sm:$0xff] }
 0x132   : > { %1258 = vmatpush.msra.mxu0 %v1171_v59 }
 0x133   : > { %v905_v48 = vadd.f32 %v904_v19, %v840_v10 }
 0x135   : > { %v970_v20 = vadd.f32 %v969_v11, %v905_v48  ;;  %v595_v48 = vadd.f32 %v5237_v24, %v5308_v49 }
 0x136   : > { %v777_v22 = vpop.f32.mrf.mxu3  ;;  %v907_v62 = vpop.f32.mrf.mxu1 }
 0x137   : > { %v1009_v18 = vmax.f32 %v970_v20, 0.0  ;;  %v778_v26 = vadd.f32 %v777_v22, %v5263_v7 }
 0x138   : > { %v845_v28 = vpop.f32.mrf.mxu0 }
 0x139   : > { %v843_v34 = vadd.f32 %v842_v5, %v778_v26  ;;  %1069 = vmatmul.f32.gmra.mxu3 %v1009_v18  ;;  %v972_v32 = vpop.f32.mrf.mxu2  ;;  %v657_v5 = vadd.f32 %v5294_v2, %v592_v46  ;;  %v1164_v2 = vld [vmem:[%s7910_s5 + $0x150] sm:$0xff] }
 0x13a   : > { %1259 = vmatpush.msra.mxu0 %v1164_v2 }
 0x13b   : > { %v908_v7 = vadd.f32 %v907_v62, %v843_v34  ;;  %v722_v17 = vadd.f32 %v5302_v12, %v657_v5  ;;  %v660_v12 = vadd.f32 %v5310_v50, %v595_v48  ;;  %v1159_v34 = vld [vmem:[%s7910_s5 + $0x128] sm:$0xff]  ;;  %v1157_v50 = vld [vmem:[%s7910_s5 + $0x118] sm:$0xff]  ;;  %v1230_v5 = vld [vmem:[%s7910_s5 + $0x360] sm:$0xff] }
 0x13c   : > { %1260 = vmatpush.msra.mxu0 %v1157_v50  ;;  %1445 = vmatpush.msrb.mxu3 %v1230_v5  ;;  %v1139_v5 = vld [vmem:[%s7910_s5 + $0x88] sm:$0xff] }
 0x13d   : > { %v973_v37 = vadd.f32 %v972_v32, %v908_v7  ;;  %v725_v1 = vadd.f32 %v5318_v30, %v660_v12  ;;  %v598_v7 = vadd.f32 %v5237_v24, %v5324_v36  ;;  %v1138_v12 = vld [vmem:[%s7910_s5 + $0x80] sm:$0xff] }
 0x13e   : > { %v780_v38 = vpop.f32.mrf.mxu3  ;;  %v910_v41 = vpop.f32.mrf.mxu1 }
 0x13f   : > { %v1010_v9 = vmax.f32 %v973_v37, 0.0  ;;  %v781_v47 = vadd.f32 %v780_v38, %v5276_v25  ;;  %v663_v30 = vadd.f32 %v5326_v39, %v598_v7  ;;  %v1150_v39 = vld [vmem:[%s7910_s5 + $0xe0] sm:$0xff]  ;;  %v1188_v7 = vld [vmem:[%s7910_s5 + $0x210] sm:$0xff] }
 0x140   : > { %v848_v27 = vpop.f32.mrf.mxu0  ;;  %1261 = vmatpush.msra.mxu0 %v1150_v39 }
 0x141   : > { %v846_v52 = vadd.f32 %v845_v28, %v781_v47  ;;  %1072 = vmatmul.f32.gmra.mxu3 %v1010_v9  ;;  %v975_v42 = vpop.f32.mrf.mxu2  ;;  %v728_v54 = vadd.f32 %v5334_v58, %v663_v30  ;;  %v1131_v30 = vld [vmem:[%s7910_s5 + $0x48] sm:$0xff] }
 0x143   : > { %v911_v25 = vadd.f32 %v910_v41, %v846_v52  ;;  %v1152_v52 = vld [vmem:[%s7910_s5 + $0xf0] sm:$0xff] }
 0x145   : > { %v976_v55 = vadd.f32 %v975_v42, %v911_v25  ;;  %v601_v25 = vadd.f32 %v5237_v24, %v5340_v61 }
 0x146   : > { %v783_v56 = vpop.f32.mrf.mxu3  ;;  %v913_v6 = vpop.f32.mrf.mxu1 }
 0x147   : > { %v1011_v19 = vmax.f32 %v976_v55, 0.0  ;;  %v784_v57 = vadd.f32 %v783_v56, %v5289_v43  ;;  %v1166_v43 = vld [vmem:[%s7910_s5 + $0x160] sm:$0xff]  ;;  %v666_v58 = vadd.f32 %v5342_v63, %v601_v25  ;;  %v1124_v25 = vld [vmem:[%s7910_s5 + $0x10] sm:$0xff] }
 0x148   : > { %v851_v4 = vpop.f32.mrf.mxu0  ;;  %1389 = vmatpush.msra.mxu2 %v1166_v43  ;;  %v604_v43 = vadd.f32 %v5237_v24, %v5356_v13  ;;  %v1209_v13 = vld [vmem:[%s7910_s5 + $0x2b8] sm:$0xff] }
 0x149   : > { %v849_v45 = vadd.f32 %v848_v27, %v784_v57  ;;  %1075 = vmatmul.f32.gmra.mxu3 %v1011_v19  ;;  %v978_v10 = vpop.f32.mrf.mxu2  ;;  %v1151_v57 = vld [vmem:[%s7910_s5 + $0xe8] sm:$0xff]  ;;  %v731_v63 = vadd.f32 %v5350_v8, %v666_v58  ;;  %v1144_v8 = vld [vmem:[%s7910_s5 + $0xb0] sm:$0xff]  ;;  %v1153_v58 = vld [vmem:[%s7910_s5 + $0xf8] sm:$0xff] }
 0x14a   : > { %1390 = vmatpush.msra.mxu2 %v1159_v34  ;;  %1326 = vmatpush.msra.mxu1 %v1151_v57  ;;  %v669_v2 = vadd.f32 %v5358_v14, %v604_v43  ;;  %v1195_v34 = vld [vmem:[%s7910_s5 + $0x248] sm:$0xff]  ;;  %v1132_v43 = vld [vmem:[%s7910_s5 + $0x50] sm:$0xff] }
 0x14b   : > { %v914_v11 = vadd.f32 %v913_v6, %v849_v45 }
 0x14c   : > { %1391 = vmatpush.msra.mxu2 %v1152_v52  ;;  %1327 = vmatpush.msra.mxu1 %v1144_v8  ;;  %v734_v14 = vadd.f32 %v5366_v23, %v669_v2  ;;  %v1137_v23 = vld [vmem:[%s7910_s5 + $0x78] sm:$0xff] }
 0x14d   : > { %v979_v20 = vadd.f32 %v978_v10, %v914_v11  ;;  %v1223_v10 = vld [vmem:[%s7910_s5 + $0x328] sm:$0xff]  ;;  %v1129_v52 = vld [vmem:[%s7910_s5 + $0x38] sm:$0xff] }
 0x14e   : > { %v786_v22 = vpop.f32.mrf.mxu3  ;;  %v916_v62 = vpop.f32.mrf.mxu1  ;;  %1446 = vmatpush.msrb.mxu3 %v1223_v10  ;;  %1328 = vmatpush.msra.mxu1 %v1137_v23  ;;  %v1233_v8 = vld [vmem:[%s7910_s5 + $0x378] sm:$0xff]  ;;  %v1218_v23 = vld [vmem:[%s7910_s5 + $0x300] sm:$0xff] }
 0x14f   : > { %v1012_v18 = vmax.f32 %v979_v20, 0.0  ;;  %v787_v26 = vadd.f32 %v786_v22, %v722_v17  ;;  %v1216_v17 = vld [vmem:[%s7910_s5 + $0x2f0] sm:$0xff] }
 0x150   : > { %v854_v35 = vpop.f32.mrf.mxu0  ;;  %1447 = vmatpush.msrb.mxu3 %v1216_v17 }
 0x151   : > { %v852_v28 = vadd.f32 %v851_v4, %v787_v26  ;;  %1078 = vmatmul.f32.gmra.mxu3 %v1012_v18  ;;  %v981_v49 = vpop.f32.mrf.mxu2  ;;  %v1145_v4 = vld [vmem:[%s7910_s5 + $0xb8] sm:$0xff]  ;;  %v1143_v18 = vld [vmem:[%s7910_s5 + $0xa8] sm:$0xff] }
 0x152   : > { %1392 = vmatpush.msra.mxu2 %v1145_v4  ;;  %1262 = vmatpush.msra.mxu0 %v1143_v18 }
 0x153   : > { %v917_v32 = vadd.f32 %v916_v62, %v852_v28  ;;  %v1202_v28 = vld [vmem:[%s7910_s5 + $0x280] sm:$0xff]  ;;  %1448 = vmatpush.msrb.mxu3 %v1209_v13 }
 0x154   : > { %1393 = vmatpush.msra.mxu2 %v1138_v12 }
 0x155   : > { %v982_v37 = vadd.f32 %v981_v49, %v917_v32  ;;  %1449 = vmatpush.msrb.mxu3 %v1202_v28  ;;  %v607_v32 = vadd.f32 %v5237_v24, %v5372_v29  ;;  %v1181_v29 = vld [vmem:[%s7910_s5 + $0x1d8] sm:$0xff] }
 0x156   : > { %v789_v38 = vpop.f32.mrf.mxu3  ;;  %v919_v41 = vpop.f32.mrf.mxu1  ;;  %1394 = vmatpush.msra.mxu2 %v1131_v30 }
 0x157   : > { %v1013_v9 = vmax.f32 %v982_v37, 0.0  ;;  %v790_v47 = vadd.f32 %v789_v38, %v725_v1  ;;  %1450 = vmatpush.msrb.mxu3 %v1195_v34  ;;  %v672_v50 = vadd.f32 %v5374_v31, %v607_v32  ;;  %v1130_v31 = vld [vmem:[%s7910_s5 + $0x40] sm:$0xff] }
 0x158   : > { %v857_v16 = vpop.f32.mrf.mxu0  ;;  %1329 = vmatpush.msra.mxu1 %v1130_v31  ;;  %1395 = vmatpush.msra.mxu2 %v1124_v25  ;;  %v1203_v25 = vld [vmem:[%s7910_s5 + $0x288] sm:$0xff] }
 0x159   : > { %v855_v27 = vadd.f32 %v854_v35, %v790_v47  ;;  %1081 = vmatmul.f32.gmra.mxu3 %v1013_v9  ;;  %v984_v36 = vpop.f32.mrf.mxu2  ;;  %v1136_v47 = vld [vmem:[%s7910_s5 + $0x70] sm:$0xff] }
 0x15a   : > { %1451 = vmatpush.msrb.mxu3 %v1188_v7  ;;  %1263 = vmatpush.msra.mxu0 %v1136_v47  ;;  %v1217_v47 = vld [vmem:[%s7910_s5 + $0x2f8] sm:$0xff] }
 0x15b   : > { %v920_v42 = vadd.f32 %v919_v41, %v855_v27  ;;  %v1174_v27 = vld [vmem:[%s7910_s5 + $0x1a0] sm:$0xff]  ;;  %1640 = vmatpush.msrb.mxu2 %v1233_v8  ;;  %v1169_v8 = vld [vmem:[%s7910_s5 + $0x178] sm:$0xff] }
 0x15c   : > { %1452 = vmatpush.msrb.mxu3 %v1181_v29  ;;  %1264 = vmatpush.msra.mxu0 %v1129_v52  ;;  %v5680_v29 = vld [vmem:[%s7909_s4] ss:$0 sm:$0xff]  ;;  %v1205_v52 = vld [vmem:[%s7910_s5 + $0x298] sm:$0xff] }
 0x15d   : > { %v985_v46 = vadd.f32 %v984_v36, %v920_v42 }
 0x15e   : > { %v792_v55 = vpop.f32.mrf.mxu3  ;;  %v922_v56 = vpop.f32.mrf.mxu1  ;;  %1453 = vmatpush.msrb.mxu3 %v1174_v27  ;;  %v1210_v27 = vld [vmem:[%s7910_s5 + $0x2c0] sm:$0xff] }
 0x15f   : > { %v1014_v6 = vmax.f32 %v985_v46, 0.0  ;;  %v793_v19 = vadd.f32 %v792_v55, %v728_v54  ;;  %v1167_v54 = vld [vmem:[%s7910_s5 + $0x168] sm:$0xff]  ;;  %v737_v46 = vadd.f32 %v5382_v40, %v672_v50  ;;  %v610_v55 = vadd.f32 %v5237_v24, %v5385_v44  ;;  %v1212_v50 = vld [vmem:[%s7910_s5 + $0x2d0] sm:$0xff] }
 0x160   : > { %v860_v59 = vpop.f32.mrf.mxu0  ;;  %1454 = vmatpush.msrb.mxu3 %v1167_v54 }
 0x161   : > { %v858_v60 = vadd.f32 %v857_v16, %v793_v19  ;;  %1084 = vmatmul.f32.gmra.mxu3 %v1014_v6  ;;  %v987_v61 = vpop.f32.mrf.mxu2  ;;  %v1160_v6 = vld [vmem:[%s7910_s5 + $0x130] sm:$0xff]  ;;  %v675_v40 = vadd.f32 %v5387_v3, %v610_v55  ;;  %v613_v3 = vadd.f32 %v5237_v24, %v5401_v33  ;;  %v1125_v24 = vld [vmem:[%s7910_s5 + $0x18] sm:$0xff]  ;;  %v1198_v55 = vld [vmem:[%s7910_s5 + $0x260] sm:$0xff] }
 0x162   : > { %1455 = vmatpush.msrb.mxu3 %v1160_v6 }
 0x163   : > { %v923_v45 = vadd.f32 %v922_v56, %v858_v60  ;;  %v740_v10 = vadd.f32 %v5395_v21, %v675_v40  ;;  %v1123_v21 = vld [vmem:[%s7910_s5 + $0x8] sm:$0xff]  ;;  %v678_v33 = vadd.f32 %v5403_v53, %v613_v3  ;;  %v1182_v3 = vld [vmem:[%s7910_s5 + $0x1e0] sm:$0xff] }
 0x164   : > { %1456 = vmatpush.msrb.mxu3 %v1153_v58  ;;  %1330 = vmatpush.msra.mxu1 %v1123_v21  ;;  %v1231_v53 = vld [vmem:[%s7910_s5 + $0x368] sm:$0xff]  ;;  %v1170_v21 = vld [vmem:[%s7910_s5 + $0x180] sm:$0xff] }
 0x165   : > { %v988_v11 = vadd.f32 %v987_v61, %v923_v45  ;;  %v1146_v61 = vld [vmem:[%s7910_s5 + $0xc0] sm:$0xff] }
 0x166   : > { %v795_v48 = vpop.f32.mrf.mxu3  ;;  %v925_v20 = vpop.f32.mrf.mxu1  ;;  %1457 = vmatpush.msrb.mxu3 %v1146_v61  ;;  %v1190_v61 = vld [vmem:[%s7910_s5 + $0x220] sm:$0xff] }
 0x167   : > { %v1015_v22 = vmax.f32 %v988_v11, 0.0  ;;  %v796_v62 = vadd.f32 %v795_v48, %v731_v63 }
 0x168   : > { %v863_v26 = vpop.f32.mrf.mxu0  ;;  %1458 = vmatpush.msrb.mxu3 %v1139_v5 }
 0x169   : > { %v861_v51 = vadd.f32 %v860_v59, %v796_v62  ;;  %1087 = vmatmul.f32.gmra.mxu3 %v1015_v22  ;;  %v990_v35 = vpop.f32.mrf.mxu2  ;;  %v1122_v22 = vld [vmem:[%s7910_s5] sm:$0xff] }
 0x16a   : > { %1459 = vmatpush.msrb.mxu3 %v1132_v43  ;;  %1265 = vmatpush.msra.mxu0 %v1122_v22  ;;  %v1177_v43 = vld [vmem:[%s7910_s5 + $0x1b8] sm:$0xff]  ;;  %v1176_v22 = vld [vmem:[%s7910_s5 + $0x1b0] sm:$0xff] }
 0x16b   : > { %v926_v49 = vadd.f32 %v925_v20, %v861_v51 }
 0x16c   : > { %1460 = vmatpush.msrb.mxu3 %v1125_v24  ;;  %1510 = vmatpush.msrb.mxu0 %v1231_v53 }
 0x16d   : > { %v991_v1 = vadd.f32 %v990_v35, %v926_v49  ;;  %v1232_v49 = vld [vmem:[%s7910_s5 + $0x370] sm:$0xff] }
 0x16e   : > { %v798_v37 = vpop.f32.mrf.mxu3  ;;  %v928_v38 = vpop.f32.mrf.mxu1  ;;  %1575 = vmatpush.msrb.mxu1 %v1232_v49 }
 0x16f   : > { %v1016_v41 = vmax.f32 %v991_v1, 0.0  ;;  %v799_v9 = vadd.f32 %v798_v37, %v734_v14 }
 0x170   : > { %v866_v36 = vpop.f32.mrf.mxu0 }
 0x171   : > { %v864_v15 = vadd.f32 %v863_v26, %v799_v9  ;;  %1090 = vmatmul.f32.gmra.mxu3 %v1016_v41  ;;  %v993_v16 = vpop.f32.mrf.mxu2  ;;  %v743_v26 = vadd.f32 %v5415_v0, %v678_v33  ;;  %v1226_v0 = vld [vmem:[%s7910_s5 + $0x340] sm:$0xff]  ;;  %v1225_v41 = vld [vmem:[%s7910_s5 + $0x338] sm:$0xff]  ;;  %v1219_v9 = vld [vmem:[%s7910_s5 + $0x308] sm:$0xff] }
 0x172   : > { %1641 = vmatpush.msrb.mxu2 %v1226_v0  ;;  %1576 = vmatpush.msrb.mxu1 %v1225_v41  ;;  %v1149_v0 = vld [vmem:[%s7910_s5 + $0xd8] sm:$0xff]  ;;  %v1148_v41 = vld [vmem:[%s7910_s5 + $0xd0] sm:$0xff] }
 0x173   : > { %v929_v42 = vadd.f32 %v928_v38, %v864_v15  ;;  %v1224_v38 = vld [vmem:[%s7910_s5 + $0x330] sm:$0xff] }
 0x174   : > { %1511 = vmatpush.msrb.mxu0 %v1224_v38  ;;  %1642 = vmatpush.msrb.mxu2 %v1219_v9  ;;  %v1147_v38 = vld [vmem:[%s7910_s5 + $0xc8] sm:$0xff]  ;;  %v1142_v9 = vld [vmem:[%s7910_s5 + $0xa0] sm:$0xff] }
 0x175   : > { %v994_v56 = vadd.f32 %v993_v16, %v929_v42  ;;  %1577 = vmatpush.msrb.mxu1 %v1218_v23 }
 0x176   : > { %v801_v19 = vpop.f32.mrf.mxu3  ;;  %v931_v39 = vpop.f32.mrf.mxu1  ;;  %1512 = vmatpush.msrb.mxu0 %v1217_v47  ;;  %1643 = vmatpush.msrb.mxu2 %v1212_v50 }
 0x177   : > { %v1017_v57 = vmax.f32 %v994_v56, 0.0  ;;  %v802_v59 = vadd.f32 %v801_v19, %v737_v46  ;;  %v1204_v46 = vld [vmem:[%s7910_s5 + $0x290] sm:$0xff] }
 0x178   : > { %v869_v45 = vpop.f32.mrf.mxu0  ;;  %1513 = vmatpush.msrb.mxu0 %v1210_v27  ;;  %1644 = vmatpush.msrb.mxu2 %v1205_v52  ;;  %v1135_v27 = vld [vmem:[%s7910_s5 + $0x68] sm:$0xff] }
 0x179   : > { %v867_v60 = vadd.f32 %v866_v36, %v802_v59  ;;  %1093 = vmatmul.f32.gmra.mxu3 %v1017_v57  ;;  %v996_v44 = vpop.f32.mrf.mxu2  ;;  %v1211_v36 = vld [vmem:[%s7910_s5 + $0x2c8] sm:$0xff]  ;;  %v1197_v57 = vld [vmem:[%s7910_s5 + $0x258] sm:$0xff] }
 0x17a   : > { %1578 = vmatpush.msrb.mxu1 %v1211_v36  ;;  %1514 = vmatpush.msrb.mxu0 %v1203_v25  ;;  %v1191_v59 = vld [vmem:[%s7910_s5 + $0x228] sm:$0xff]  ;;  %v1134_v25 = vld [vmem:[%s7910_s5 + $0x60] sm:$0xff] }
 0x17b   : > { %v932_v4 = vadd.f32 %v931_v39, %v867_v60  ;;  %1645 = vmatpush.msrb.mxu2 %v1198_v55  ;;  %v1196_v39 = vld [vmem:[%s7910_s5 + $0x250] sm:$0xff] }
 0x17c   : > { %1579 = vmatpush.msrb.mxu1 %v1204_v46  ;;  %1515 = vmatpush.msrb.mxu0 %v1196_v39  ;;  %v1128_v46 = vld [vmem:[%s7910_s5 + $0x30] sm:$0xff]  ;;  %v1126_v39 = vld [vmem:[%s7910_s5 + $0x20] sm:$0xff] }
 0x17d   : > { %v997_v63 = vadd.f32 %v996_v44, %v932_v4  ;;  %1646 = vmatpush.msrb.mxu2 %v1191_v59  ;;  %v1189_v44 = vld [vmem:[%s7910_s5 + $0x218] sm:$0xff]  ;;  %v1184_v4 = vld [vmem:[%s7910_s5 + $0x1f0] sm:$0xff] }
 0x17e   : > { %v804_v11 = vpop.f32.mrf.mxu3  ;;  %v934_v17 = vpop.f32.mrf.mxu1  ;;  %1580 = vmatpush.msrb.mxu1 %v1197_v57  ;;  %1516 = vmatpush.msrb.mxu0 %v1189_v44  ;;  %v1127_v57 = vld [vmem:[%s7910_s5 + $0x28] sm:$0xff] }
 0x17f   : > { %v1018_v48 = vmax.f32 %v997_v63, 0.0  ;;  %v805_v20 = vadd.f32 %v804_v11, %v740_v10  ;;  %1647 = vmatpush.msrb.mxu2 %v1184_v4  ;;  %v1183_v63 = vld [vmem:[%s7910_s5 + $0x1e8] sm:$0xff] }
 0x180   : > { %v872_v35 = vpop.f32.mrf.mxu0  ;;  %1581 = vmatpush.msrb.mxu1 %v1190_v61  ;;  %1517 = vmatpush.msrb.mxu0 %v1182_v3 }
 0x181   : > { %v870_v62 = vadd.f32 %v869_v45, %v805_v20  ;;  %1096 = vmatmul.f32.gmra.mxu3 %v1018_v48  ;;  %v999_v18 = vpop.f32.mrf.mxu2  ;;  %1648 = vmatpush.msrb.mxu2 %v1177_v43  ;;  %v1175_v20 = vld [vmem:[%s7910_s5 + $0x1a8] sm:$0xff] }
 0x182   : > { %1582 = vmatpush.msrb.mxu1 %v1183_v63  ;;  %1518 = vmatpush.msrb.mxu0 %v1175_v20  ;;  %v1234_v63 = vld [vmem:[%s7911_s6] sm:$0x7f] }
 0x183   : > { %v935_v13 = vadd.f32 %v934_v17, %v870_v62  ;;  %1649 = vmatpush.msrb.mxu2 %v1170_v21  ;;  %v5914_v43 = vperm.slane %v1234_v63, 0 }
 0x184   : > { %1583 = vmatpush.msrb.mxu1 %v1176_v22 }
 0x185   : > { %v1000_v2 = vadd.f32 %v999_v18, %v935_v13  ;;  %v1168_v18 = vld [vmem:[%s7910_s5 + $0x170] sm:$0xff]  ;;  %v1163_v13 = vld [vmem:[%s7910_s5 + $0x148] sm:$0xff] }
 0x186   : > { %v807_v51 = vpop.f32.mrf.mxu3  ;;  %v937_v34 = vpop.f32.mrf.mxu1  ;;  %1519 = vmatpush.msrb.mxu0 %v1168_v18  ;;  %1584 = vmatpush.msrb.mxu1 %v1169_v8  ;;  %v5925_v18 = vperm.slane %v1234_v63, 3 }
 0x187   : > { %v1019_v12 = vmax.f32 %v1000_v2, 0.0  ;;  %v808_v28 = vadd.f32 %v807_v51, %v743_v26  ;;  %1650 = vmatpush.msrb.mxu2 %v1163_v13 }
 0x189   : > { %v873_v14 = vadd.f32 %v872_v35, %v808_v28  ;;  %1099 = vmatmul.f32.gmra.mxu3 %v1019_v12  ;;  %v1002_v32 = vpop.f32.mrf.mxu2  ;;  %v1161_v35 = vld [vmem:[%s7910_s5 + $0x138] sm:$0xff]  ;;  %v1162_v12 = vld [vmem:[%s7910_s5 + $0x140] sm:$0xff]  ;;  %v1156_v28 = vld [vmem:[%s7910_s5 + $0x110] sm:$0xff] }
 0x18a   : > { %1520 = vmatpush.msrb.mxu0 %v1161_v35  ;;  %1585 = vmatpush.msrb.mxu1 %v1162_v12 }
 0x18b   : > { %v938_v1 = vadd.f32 %v937_v34, %v873_v14  ;;  %1651 = vmatpush.msrb.mxu2 %v1156_v28  ;;  %v1154_v14 = vld [vmem:[%s7910_s5 + $0x100] sm:$0xff] }
 0x18c   : > { %1521 = vmatpush.msrb.mxu0 %v1154_v14 }
 0x18d   : > { %v1003_v7 = vadd.f32 %v1002_v32, %v938_v1  ;;  %v1155_v32 = vld [vmem:[%s7910_s5 + $0x108] sm:$0xff]  ;;  %1652 = vmatpush.msrb.mxu2 %v1149_v0 }
 0x18e   : > { %1586 = vmatpush.msrb.mxu1 %v1155_v32  ;;  %1522 = vmatpush.msrb.mxu0 %v1147_v38 }
 0x18f   : > { %v1020_v37 = vmax.f32 %v1003_v7, 0.0  ;;  %1653 = vmatpush.msrb.mxu2 %v1142_v9 }
 0x190   : > { %1587 = vmatpush.msrb.mxu1 %v1148_v41 }
 0x191   : > { %1102 = vmatmul.f32.gmra.mxu3 %v1020_v37  ;;  %1654 = vmatpush.msrb.mxu2 %v1135_v27 }
 0x193   : > { %1655 = vmatpush.msrb.mxu2 %v1128_v46 }
 0x19c   : > { %v1058_v15 = vpop.f32.mrf.mxu3 }
 0x19d   : > { %v1059_v16 = vadd.f32 %v5680_v29, %v1058_v15  ;;  %v1140_v15 = vld [vmem:[%s7910_s5 + $0x90] sm:$0xff] }
 0x19e   : > { %1523 = vmatpush.msrb.mxu0 %v1140_v15 }
 0x19f   : > { %v5686_v30 = vmax.f32 %v1059_v16, 0.0  ;;  %v1141_v16 = vld [vmem:[%s7910_s5 + $0x98] sm:$0xff] }
 0x1a0   : > { %1588 = vmatpush.msrb.mxu1 %v1141_v16 }
 0x1a1   : > { %1266 = vmatmul.f32.vlgmr.msra.gmra.mxu0 %v5686_v30  ;;  %1331 = vmatmul.f32.vlgmr.msra.gmra.mxu1 %v5686_v30 }
 0x1a2   : > { %1396 = vmatmul.f32.vlgmr.msra.gmra.mxu2 %v5686_v30  ;;  %1461 = vmatmul.f32.vlgmr.msrb.gmra.mxu3 %v5686_v30 }
 0x1a3   : > { %1589 = vmatpush.msrb.mxu1 %v1134_v25 }
 0x1a4   : > { %v1061_v31 = vpop.f32.mrf.mxu3 }
 0x1a5   : > { %v1062_v42 = vadd.f32 %v5680_v29, %v1061_v31  ;;  %1590 = vmatpush.msrb.mxu1 %v1127_v57 }
 0x1a7   : > { %v5702_v54 = vmax.f32 %v1062_v42, 0.0  ;;  %v1133_v42 = vld [vmem:[%s7910_s5 + $0x58] sm:$0xff] }
 0x1a8   : > { %1524 = vmatpush.msrb.mxu0 %v1133_v42 }
 0x1a9   : > { %1269 = vmatmul.f32.gmra.mxu0 %v5702_v54  ;;  %1334 = vmatmul.f32.gmra.mxu1 %v5702_v54 }
 0x1aa   : > { %1399 = vmatmul.f32.gmra.mxu2 %v5702_v54  ;;  %1464 = vmatmul.f32.gmra.mxu3 %v5702_v54 }
 0x1ab   : > { %1525 = vmatpush.msrb.mxu0 %v1126_v39 }
 0x1ac   : > { %v1064_v56 = vpop.f32.mrf.mxu3 }
 0x1ad   : > { %v1065_v6 = vadd.f32 %v5680_v29, %v1064_v56 }
 0x1af   : > { %v5718_v19 = vmax.f32 %v1065_v6, 0.0 }
 0x1b1   : > { %1272 = vmatmul.f32.gmra.mxu0 %v5718_v19  ;;  %1337 = vmatmul.f32.gmra.mxu1 %v5718_v19 }
 0x1b2   : > { %1402 = vmatmul.f32.gmra.mxu2 %v5718_v19  ;;  %1467 = vmatmul.f32.gmra.mxu3 %v5718_v19 }
 0x1b4   : > { %v1067_v58 = vpop.f32.mrf.mxu3 }
 0x1b5   : > { %v1068_v40 = vadd.f32 %v5680_v29, %v1067_v58 }
 0x1b7   : > { %v5734_v60 = vmax.f32 %v1068_v40, 0.0 }
 0x1b9   : > { %1275 = vmatmul.f32.gmra.mxu0 %v5734_v60  ;;  %1340 = vmatmul.f32.gmra.mxu1 %v5734_v60 }
 0x1ba   : > { %1405 = vmatmul.f32.gmra.mxu2 %v5734_v60  ;;  %1470 = vmatmul.f32.gmra.mxu3 %v5734_v60 }
 0x1bc   : > { %v1070_v5 = vpop.f32.mrf.mxu3 }
 0x1bd   : > { %v1071_v45 = vadd.f32 %v5680_v29, %v1070_v5 }
 0x1bf   : > { %v5750_v10 = vmax.f32 %v1071_v45, 0.0 }
 0x1c1   : > { %1278 = vmatmul.f32.gmra.mxu0 %v5750_v10  ;;  %1343 = vmatmul.f32.gmra.mxu1 %v5750_v10 }
 0x1c2   : > { %1408 = vmatmul.f32.gmra.mxu2 %v5750_v10  ;;  %1473 = vmatmul.f32.gmra.mxu3 %v5750_v10 }
 0x1c4   : > { %v1073_v11 = vpop.f32.mrf.mxu3 }
 0x1c5   : > { %v1074_v17 = vadd.f32 %v5680_v29, %v1073_v11  ;;  %v5916_v11 = vperm.slane %v1234_v63, 1 }
 0x1c7   : > { %v5766_v48 = vmax.f32 %v1074_v17, 0.0 }
 0x1c9   : > { %1281 = vmatmul.f32.gmra.mxu0 %v5766_v48  ;;  %1346 = vmatmul.f32.gmra.mxu1 %v5766_v48 }
 0x1ca   : > { %1411 = vmatmul.f32.gmra.mxu2 %v5766_v48  ;;  %1476 = vmatmul.f32.gmra.mxu3 %v5766_v48 }
 0x1cc   : > { %v1076_v24 = vpop.f32.mrf.mxu3 }
 0x1cd   : > { %v1077_v33 = vadd.f32 %v5680_v29, %v1076_v24 }
 0x1cf   : > { %v5782_v62 = vmax.f32 %v1077_v33, 0.0  ;;  %v5923_v33 = vperm.slane %v1234_v63, 2 }
 0x1d1   : > { %1284 = vmatmul.f32.gmra.mxu0 %v5782_v62  ;;  %1349 = vmatmul.f32.gmra.mxu1 %v5782_v62 }
 0x1d2   : > { %1414 = vmatmul.f32.gmra.mxu2 %v5782_v62  ;;  %1479 = vmatmul.f32.gmra.mxu3 %v5782_v62 }
 0x1d4   : > { %v1079_v26 = vpop.f32.mrf.mxu3 }
 0x1d5   : > { %v1080_v2 = vadd.f32 %v5680_v29, %v1079_v26 }
 0x1d7   : > { %v5798_v51 = vmax.f32 %v1080_v2, 0.0 }
 0x1d9   : > { %1287 = vmatmul.f32.gmra.mxu0 %v5798_v51  ;;  %1352 = vmatmul.f32.gmra.mxu1 %v5798_v51 }
 0x1da   : > { %1417 = vmatmul.f32.gmra.mxu2 %v5798_v51  ;;  %1482 = vmatmul.f32.gmra.mxu3 %v5798_v51 }
 0x1dc   : > { %v1082_v53 = vpop.f32.mrf.mxu3 }
 0x1dd   : > { %v1083_v49 = vadd.f32 %v5680_v29, %v1082_v53 }
 0x1df   : > { %v5814_v34 = vmax.f32 %v1083_v49, 0.0 }
 0x1e1   : > { %1290 = vmatmul.f32.gmra.mxu0 %v5814_v34  ;;  %1355 = vmatmul.f32.gmra.mxu1 %v5814_v34 }
 0x1e2   : > { %1420 = vmatmul.f32.gmra.mxu2 %v5814_v34  ;;  %1485 = vmatmul.f32.gmra.mxu3 %v5814_v34 }
 0x1e4   : > { %v1085_v1 = vpop.f32.mrf.mxu3 }
 0x1e5   : > { %v1086_v7 = vadd.f32 %v5680_v29, %v1085_v1 }
 0x1e7   : > { %v5830_v37 = vmax.f32 %v1086_v7, 0.0 }
 0x1e9   : > { %1293 = vmatmul.f32.gmra.mxu0 %v5830_v37  ;;  %1358 = vmatmul.f32.gmra.mxu1 %v5830_v37 }
 0x1ea   : > { %1423 = vmatmul.f32.gmra.mxu2 %v5830_v37  ;;  %1488 = vmatmul.f32.gmra.mxu3 %v5830_v37 }
 0x1ec   : > { %v1088_v47 = vpop.f32.mrf.mxu3 }
 0x1ed   : > { %v1089_v23 = vadd.f32 %v5680_v29, %v1088_v47 }
 0x1ef   : > { %v5846_v50 = vmax.f32 %v1089_v23, 0.0 }
 0x1f1   : > { %1296 = vmatmul.f32.gmra.mxu0 %v5846_v50  ;;  %1361 = vmatmul.f32.gmra.mxu1 %v5846_v50 }
 0x1f2   : > { %1426 = vmatmul.f32.gmra.mxu2 %v5846_v50  ;;  %1491 = vmatmul.f32.gmra.mxu3 %v5846_v50 }
 0x1f4   : > { %v1091_v36 = vpop.f32.mrf.mxu3 }
 0x1f5   : > { %v1092_v52 = vadd.f32 %v5680_v29, %v1091_v36 }
 0x1f7   : > { %v5862_v31 = vmax.f32 %v1092_v52, 0.0 }
 0x1f9   : > { %1299 = vmatmul.f32.gmra.mxu0 %v5862_v31  ;;  %1364 = vmatmul.f32.gmra.mxu1 %v5862_v31 }
 0x1fa   : > { %1429 = vmatmul.f32.gmra.mxu2 %v5862_v31  ;;  %1494 = vmatmul.f32.gmra.mxu3 %v5862_v31 }
 0x1fc   : > { %v1094_v55 = vpop.f32.mrf.mxu3 }
 0x1fd   : > { %v1095_v56 = vadd.f32 %v5680_v29, %v1094_v55 }
 0x1ff   : > { %v5878_v6 = vmax.f32 %v1095_v56, 0.0 }
 0x201   : > { %1302 = vmatmul.f32.gmra.mxu0 %v5878_v6  ;;  %1367 = vmatmul.f32.gmra.mxu1 %v5878_v6 }
 0x202   : > { %1432 = vmatmul.f32.gmra.mxu2 %v5878_v6  ;;  %1497 = vmatmul.f32.gmra.mxu3 %v5878_v6 }
 0x204   : > { %v1097_v59 = vpop.f32.mrf.mxu3 }
 0x205   : > { %v1098_v58 = vadd.f32 %v5680_v29, %v1097_v59 }
 0x207   : > { %v5891_v40 = vmax.f32 %v1098_v58, 0.0 }
 0x209   : > { %1305 = vmatmul.f32.gmra.mxu0 %v5891_v40  ;;  %1370 = vmatmul.f32.gmra.mxu1 %v5891_v40 }
 0x20a   : > { %1435 = vmatmul.f32.gmra.mxu2 %v5891_v40  ;;  %1500 = vmatmul.f32.gmra.mxu3 %v5891_v40 }
 0x20c   : > { %v1100_v44 = vpop.f32.mrf.mxu3 }
 0x20d   : > { %v1101_v61 = vadd.f32 %v5680_v29, %v1100_v44 }
 0x20f   : > { %v5898_v4 = vmax.f32 %v1101_v61, 0.0 }
 0x211   : > { %1308 = vmatmul.f32.gmra.mxu0 %v5898_v4  ;;  %1373 = vmatmul.f32.gmra.mxu1 %v5898_v4 }
 0x212   : > { %1438 = vmatmul.f32.gmra.mxu2 %v5898_v4  ;;  %1503 = vmatmul.f32.gmra.mxu3 %v5898_v4 }
 0x214   : > { %v1103_v5 = vpop.f32.mrf.mxu3 }
 0x215   : > { %v1104_v45 = vadd.f32 %v5680_v29, %v1103_v5 }
 0x217   : > { %v5905_v3 = vmax.f32 %v1104_v45, 0.0 }
 0x219   : > { %1311 = vmatmul.f32.gmra.mxu0 %v5905_v3  ;;  %1376 = vmatmul.f32.gmra.mxu1 %v5905_v3 }
 0x21a   : > { %1441 = vmatmul.f32.gmra.mxu2 %v5905_v3  ;;  %1506 = vmatmul.f32.gmra.mxu3 %v5905_v3 }
 0x21e   : > { %v1267_v17 = vpop.f32.mrf.mxu0  ;;  %v1332_v29 = vpop.f32.mrf.mxu1 }
 0x21f   : > { %v1268_v20 = vadd.f32 %v1267_v17, %v5914_v43  ;;  %v1333_v22 = vadd.f32 %v1332_v29, %v5916_v11 }
 0x221   : > { %v4028_v21 = vmul.f32 -1.442695, %v1268_v20  ;;  %v4029_v24 = vmul.f32 -1.442695, %v1333_v22  ;;  %1526 = vmatmul.f32.vlgmr.msrb.gmra.mxu0 %v5686_v30  ;;  %1591 = vmatmul.f32.vlgmr.msrb.gmra.mxu1 %v5686_v30 }
 0x222   : > { %1656 = vmatmul.f32.vlgmr.msrb.gmra.mxu2 %v5686_v30 }
 0x223   : > { %4201 = vpow2.f32 %v4028_v21 }
 0x224   : > { %4203 = vpow2.f32 %v4029_v24 }
 0x225   : > { %v1397_v8 = vpop.f32.mrf.mxu2  ;;  %v1462_v13 = vpop.f32.mrf.mxu3 }
 0x226   : > { %v1398_v26 = vadd.f32 %v1397_v8, %v5923_v33  ;;  %v1463_v2 = vadd.f32 %v1462_v13, %v5925_v18  ;;  %v1270_v35 = vpop.f32.mrf.mxu0  ;;  %v1335_v12 = vpop.f32.mrf.mxu1 }
 0x227   : > { %v1271_v28 = vadd.f32 %v1270_v35, %v5914_v43  ;;  %v1336_v53 = vadd.f32 %v1335_v12, %v5916_v11 }
 0x228   : > { %v4030_v49 = vmul.f32 -1.442695, %v1398_v26  ;;  %v4031_v30 = vmul.f32 -1.442695, %v1463_v2 }
 0x229   : > { %v4202_v14 = vpop.eup %4201  ;;  %1529 = vmatmul.f32.gmra.mxu0 %v5702_v54  ;;  %1594 = vmatmul.f32.gmra.mxu1 %v5702_v54  ;;  %v4035_v1 = vmul.f32 -1.442695, %v1271_v28  ;;  %v4036_v38 = vmul.f32 -1.442695, %v1336_v53 }
 0x22a   : > { %v4204_v32 = vpop.eup %4203  ;;  %v5933_v0 = vadd.f32 1.0, %v4202_v14  ;;  %4205 = vpow2.f32 %v4030_v49  ;;  %1659 = vmatmul.f32.gmra.mxu2 %v5702_v54 }
 0x22b   : > { %v5936_v7 = vadd.f32 1.0, %v4204_v32  ;;  %4207 = vpow2.f32 %v4031_v30 }
 0x22c   : > { %4209 = vrcp.f32 %v5933_v0  ;;  %v2162_v23 = vand.u32 2147483647, %v5933_v0  ;;  %v2164_v15 = vand.u32 2147483648, %v5933_v0  ;;  %vm2158_vm1 = vweird.f32 %v5933_v0 }
 0x22d   : > { %4211 = vrcp.f32 %v5936_v7  ;;  %v1400_v41 = vpop.f32.mrf.mxu2  ;;  %v1465_v9 = vpop.f32.mrf.mxu3  ;;  %v2177_v27 = vand.u32 2147483647, %v5936_v7  ;;  %v2179_v25 = vand.u32 2147483648, %v5936_v7  ;;  %vm2173_vm2 = vweird.f32 %v5936_v7 }
 0x22e   : > { %4213 = vpow2.f32 %v4035_v1  ;;  %v1401_v47 = vadd.f32 %v1400_v41, %v5923_v33  ;;  %v1273_v16 = vpop.f32.mrf.mxu0  ;;  %v1466_v52 = vadd.f32 %v1465_v9, %v5925_v18  ;;  %v1338_v57 = vpop.f32.mrf.mxu1  ;;  %vm5957_vm3 = vcmp.eq.f32.partialorder %v2162_v23, 8.507059e+37 }
 0x22f   : > { %4215 = vpow2.f32 %v4036_v38  ;;  %v1274_v39 = vadd.f32 %v1273_v16, %v5914_v43  ;;  %v2165_v61 = vor.u32 1.1754944e-38, %v2164_v15  ;;  %vm5963_vm4 = vcmp.eq.f32.partialorder %v2177_v27, 8.507059e+37 }
 0x230   : > { %v4206_v54 = vpop.eup %4205  ;;  %v4037_v36 = vmul.f32 -1.442695, %v1401_v47  ;;  %v4038_v17 = vmul.f32 -1.442695, %v1466_v52  ;;  %v2180_v20 = vor.u32 1.1754944e-38, %v2179_v25  ;;  %v1339_v22 = vadd.f32 %v1338_v57, %v5916_v11 }
 0x231   : > { %v4208_v42 = vpop.eup %4207  ;;  %v5946_v46 = vadd.f32 1.0, %v4206_v54  ;;  %1532 = vmatmul.f32.gmra.mxu0 %v5718_v19  ;;  %1597 = vmatmul.f32.gmra.mxu1 %v5718_v19  ;;  %v4042_v8 = vmul.f32 -1.442695, %v1274_v39 }
 0x232   : > { %v4210_v55 = vpop.eup %4209  ;;  %v5952_v56 = vadd.f32 1.0, %v4208_v42  ;;  %1662 = vmatmul.f32.gmra.mxu2 %v5718_v19  ;;  %v5980_v14 = vmul.f32 -1.442695, %v1339_v22 }
 0x233   : > { %v4212_v59 = vpop.eup %4211  ;;  %v2154_v58 = vmul.f32 %v4210_v55, %v5933_v0  ;;  %4217 = vrcp.f32 %v5946_v46  ;;  %vm2159_vm5 = vweird.f32 %v4210_v55  ;;  %v2192_v24 = vand.u32 2147483647, %v5946_v46 }
 0x234   : > { %v4214_v5 = vpop.eup %4213  ;;  %v2169_v45 = vmul.f32 %v4212_v59, %v5936_v7  ;;  %4219 = vpow2.f32 %v4037_v36  ;;  %v2194_v26 = vand.u32 2147483648, %v5946_v46  ;;  %vm2174_vm6 = vweird.f32 %v4212_v59  ;;  %vm2160_vm7 = vmor %vm2158_vm1, %vm2159_vm5 }
 0x235   : > { %v4216_v19 = vpop.eup %4215  ;;  %v2155_v29 = vsub.f32 1.0, %v2154_v58  ;;  %4221 = vrcp.f32 %v5952_v56  ;;  %v5971_v2 = vadd.f32 1.0, %v4214_v5  ;;  %v2207_v28 = vand.u32 2147483647, %v5952_v56  ;;  %v1403_v41 = vpop.f32.mrf.mxu2  ;;  %vm2175_vm10 = vmor %vm2173_vm2, %vm2174_vm6 }
 0x236   : > { %v2170_v21 = vsub.f32 1.0, %v2169_v45  ;;  %v5973_v35 = vadd.f32 1.0, %v4216_v19  ;;  %4223 = vpow2.f32 %v4038_v17  ;;  %v2209_v30 = vand.u32 2147483648, %v5952_v56 }
 0x237   : > { %v2156_v13 = vmul.f32 %v4210_v55, %v2155_v29  ;;  %4225 = vrcp.f32 %v5971_v2  ;;  %vm2188_vm8 = vweird.f32 %v5946_v46  ;;  %vm2203_vm9 = vweird.f32 %v5952_v56  ;;  %v1468_v29 = vpop.f32.mrf.mxu3 }
 0x238   : > { %v2171_v12 = vmul.f32 %v4212_v59, %v2170_v21  ;;  %vm6002_vm11 = vcmp.eq.f32.partialorder %v2192_v24, 8.507059e+37  ;;  %v2195_v23 = vor.u32 1.1754944e-38, %v2194_v26  ;;  %4227 = vrcp.f32 %v5973_v35 }
 0x239   : > { %v5976_v53 = vpop.eup %4217  ;;  %v2157_v49 = vadd.f32 %v4210_v55, %v2156_v13  ;;  %1535 = vmatmul.f32.gmra.mxu0 %v5734_v60  ;;  %1600 = vmatmul.f32.gmra.mxu1 %v5734_v60  ;;  %vm6010_vm12 = vcmp.eq.f32.partialorder %v2207_v28, 8.507059e+37  ;;  %v2210_v36 = vor.u32 1.1754944e-38, %v2209_v30  ;;  %v2267_v52 = vand.u32 2147483647, %v5971_v2 }
 0x23a   : > { %v4220_v32 = vpop.eup %4219  ;;  %v2172_v1 = vadd.f32 %v4212_v59, %v2171_v12  ;;  %v2184_v38 = vmul.f32 %v5976_v53, %v5946_v46  ;;  %1665 = vmatmul.f32.gmra.mxu2 %v5734_v60  ;;  %v1404_v42 = vadd.f32 %v1403_v41, %v5923_v33  ;;  %vm2189_vm13 = vweird.f32 %v5976_v53  ;;  %v1276_v41 = vpop.f32.mrf.mxu0 }
 0x23b   : > { %v4222_v9 = vpop.eup %4221  ;;  %v2161_v47 = vsel %vm2160_vm7, %v4210_v55, %v2157_v49  ;;  %v6022_v57 = vadd.f32 1.0, %v4220_v32  ;;  %vm2263_vm15 = vweird.f32 %v5971_v2  ;;  %v2269_v58 = vand.u32 2147483648, %v5971_v2  ;;  %vm2190_vm1 = vmor %vm2188_vm8, %vm2189_vm13 }
 0x23c   : > { %v2166_v15 = vsel %vm5957_vm3, %v2165_v61, %v2161_v47  ;;  %v2176_v16 = vsel %vm2175_vm10, %v4212_v59, %v2172_v1  ;;  %v2185_v54 = vsub.f32 1.0, %v2184_v38  ;;  %v2199_v60 = vmul.f32 %v4222_v9, %v5952_v56  ;;  %v4224_v25 = vpop.eup %4223 }
 0x23d   : > { %3833 = vst [vmem:[%s5989_s10] sm:$0xff] %v2166_v15  ;;  %v2181_v7 = vsel %vm5963_vm4, %v2180_v20, %v2176_v16  ;;  %v4226_v59 = vpop.eup %4225  ;;  %vm2204_vm14 = vweird.f32 %v4222_v9  ;;  %4229 = vpow2.f32 %v4042_v8  ;;  %v6028_v45 = vadd.f32 1.0, %v4224_v25  ;;  %v1341_v25 = vpop.f32.mrf.mxu1 }
 0x23e   : > { %3834 = vst [vmem:[%s5989_s10 + $0x8] sm:$0xff] %v2181_v7  ;;  %v2186_v55 = vmul.f32 %v5976_v53, %v2185_v54  ;;  %v2200_v39 = vsub.f32 1.0, %v2199_v60  ;;  %v2259_v5 = vmul.f32 %v4226_v59, %v5971_v2  ;;  %v6030_v63 = vpop.eup %4227  ;;  %vm6034_vm2 = vcmp.eq.f32.partialorder %v2267_v52, 8.507059e+37  ;;  %vm2205_vm4 = vmor %vm2203_vm9, %vm2204_vm14 }
 0x23f   : > { %vm2278_vm3 = vweird.f32 %v5973_v35  ;;  %v2282_v19 = vand.u32 2147483647, %v5973_v35  ;;  %4231 = vrcp.f32 %v6022_v57  ;;  %v2274_v21 = vmul.f32 %v6030_v63, %v5973_v35 }
 0x240   : > { %v2187_v44 = vadd.f32 %v5976_v53, %v2186_v55  ;;  %v2201_v61 = vmul.f32 %v4222_v9, %v2200_v39  ;;  %v2260_v22 = vsub.f32 1.0, %v2259_v5  ;;  %vm2264_vm5 = vweird.f32 %v4226_v59  ;;  %v1406_v55 = vpop.f32.mrf.mxu2 }
 0x241   : > { %1538 = vmatmul.f32.gmra.mxu0 %v5750_v10  ;;  %1603 = vmatmul.f32.gmra.mxu1 %v5750_v10  ;;  %v2270_v8 = vor.u32 1.1754944e-38, %v2269_v58  ;;  %v2284_v13 = vand.u32 2147483648, %v5973_v35  ;;  %v2275_v28 = vsub.f32 1.0, %v2274_v21  ;;  %4233 = vrcp.f32 %v6028_v45  ;;  %vm2265_vm8 = vmor %vm2263_vm15, %vm2264_vm5 }
 0x242   : > { %v2191_v20 = vsel %vm2190_vm1, %v5976_v53, %v2187_v44  ;;  %v2202_v46 = vadd.f32 %v4222_v9, %v2201_v61  ;;  %1668 = vmatmul.f32.gmra.mxu2 %v5750_v10  ;;  %v2261_v12 = vmul.f32 %v4226_v59, %v2260_v22  ;;  %vm2279_vm6 = vweird.f32 %v6030_v63  ;;  %v1471_v44 = vpop.f32.mrf.mxu3 }
 0x243   : > { %v2196_v24 = vsel %vm6002_vm11, %v2195_v23, %v2191_v20  ;;  %v4230_v53 = vpop.eup %4229  ;;  %vm6058_vm7 = vcmp.eq.f32.partialorder %v2282_v19, 8.507059e+37  ;;  %v2297_v56 = vand.u32 2147483647, %v6022_v57  ;;  %v2276_v32 = vmul.f32 %v6030_v63, %v2275_v28  ;;  %vm6082_vm10 = vmor %vm2278_vm3, %vm2279_vm6 }
 0x244   : > { %3835 = vst [vmem:[%s5989_s10 + $0x10] sm:$0xff] %v2196_v24  ;;  %v2206_v26 = vsel %vm2205_vm4, %v4222_v9, %v2202_v46  ;;  %v2262_v30 = vadd.f32 %v4226_v59, %v2261_v12  ;;  %v2299_v1 = vand.u32 2147483648, %v6022_v57  ;;  %v6066_v38 = vadd.f32 1.0, %v4230_v53 }
 0x245   : > { %v2211_v10 = vsel %vm6010_vm12, %v2210_v36, %v2206_v26  ;;  %v4232_v9 = vpop.eup %4231  ;;  %v2285_v47 = vor.u32 1.1754944e-38, %v2284_v13  ;;  %vm2293_vm9 = vweird.f32 %v6022_v57  ;;  %4235 = vpow2.f32 %v5980_v14 }
 0x246   : > { %3836 = vst [vmem:[%s5989_s10 + $0x18] sm:$0xff] %v2211_v10  ;;  %v4044_v0 = vmul.f32 -1.442695, %v1404_v42  ;;  %v2266_v23 = vsel %vm2265_vm8, %v4226_v59, %v2262_v30  ;;  %v2277_v15 = vadd.f32 %v6030_v63, %v2276_v32  ;;  %v2289_v16 = vmul.f32 %v4232_v9, %v6022_v57  ;;  %v1344_v57 = vpop.f32.mrf.mxu1 }
 0x247   : > { %v1469_v54 = vadd.f32 %v1468_v29, %v5925_v18  ;;  %v2271_v60 = vsel %vm6034_vm2, %v2270_v8, %v2266_v23  ;;  %vm6086_vm11 = vcmp.eq.f32.partialorder %v2297_v56, 8.507059e+37  ;;  %4237 = vrcp.f32 %v6066_v38  ;;  %v4234_v7 = vpop.eup %4233 }
 0x248   : > { %v1277_v27 = vadd.f32 %v1276_v41, %v5914_v43  ;;  %3840 = vst [vmem:[%s5989_s10 + $0x38] sm:$0xff] %v2271_v60  ;;  %v2281_v35 = vsel %vm6082_vm10, %v6030_v63, %v2277_v15  ;;  %v2290_v36 = vsub.f32 1.0, %v2289_v16  ;;  %v2300_v52 = vor.u32 1.1754944e-38, %v2299_v1 }
 0x249   : > { %1541 = vmatmul.f32.gmra.mxu0 %v5766_v48  ;;  %1606 = vmatmul.f32.gmra.mxu1 %v5766_v48  ;;  %v2312_v42 = vand.u32 2147483647, %v6028_v45  ;;  %v2286_v39 = vsel %vm6058_vm7, %v2285_v47, %v2281_v35  ;;  %v2304_v59 = vmul.f32 %v4234_v7, %v6028_v45  ;;  %v2314_v58 = vand.u32 2147483648, %v6028_v45 }
 0x24a   : > { %1671 = vmatmul.f32.gmra.mxu2 %v5766_v48  ;;  %4239 = vpow2.f32 %v4044_v0  ;;  %3841 = vst [vmem:[%s5989_s10 + $0x40] sm:$0xff] %v2286_v39  ;;  %v2291_v61 = vmul.f32 %v4232_v9, %v2290_v36  ;;  %vm2294_vm12 = vweird.f32 %v4232_v9  ;;  %vm2309_vm13 = vweird.f32 %v4234_v7 }
 0x24b   : > { %v4045_v5 = vmul.f32 -1.442695, %v1469_v54  ;;  %v4236_v63 = vpop.eup %4235  ;;  %v2305_v17 = vsub.f32 1.0, %v2304_v59  ;;  %v4049_v19 = vmul.f32 -1.442695, %v1277_v27  ;;  %v1342_v29 = vadd.f32 %v1341_v25, %v5916_v11  ;;  %vm2295_vm14 = vmor %vm2293_vm9, %vm2294_vm12 }
 0x24c   : > { %v1407_v48 = vadd.f32 %v1406_v55, %v5923_v33  ;;  %v2292_v20 = vadd.f32 %v4232_v9, %v2291_v61  ;;  %v6107_v46 = vadd.f32 1.0, %v4236_v63  ;;  %v1472_v22 = vadd.f32 %v1471_v44, %v5925_v18 }
 0x24d   : > { %4241 = vpow2.f32 %v4045_v5  ;;  %v4238_v21 = vpop.eup %4237  ;;  %v2306_v24 = vmul.f32 %v4234_v7, %v2305_v17  ;;  %v4050_v8 = vmul.f32 -1.442695, %v1342_v29  ;;  %vm2308_vm15 = vweird.f32 %v6028_v45 }
 0x24e   : > { %4243 = vpow2.f32 %v4049_v19  ;;  %v4051_v13 = vmul.f32 -1.442695, %v1407_v48  ;;  %v2296_v26 = vsel %vm2295_vm14, %v4232_v9, %v2292_v20  ;;  %v2364_v12 = vmul.f32 %v4238_v21, %v6066_v38  ;;  %vm2310_vm2 = vmor %vm2308_vm15, %vm2309_vm13 }
 0x24f   : > { %4245 = vrcp.f32 %v6107_v46  ;;  %v2301_v53 = vsel %vm6086_vm11, %v2300_v52, %v2296_v26  ;;  %v2307_v10 = vadd.f32 %v4234_v7, %v2306_v24  ;;  %vm6117_vm1 = vcmp.eq.f32.partialorder %v2312_v42, 8.507059e+37 }
 0x250   : > { %v4240_v28 = vpop.eup %4239  ;;  %v2315_v49 = vor.u32 1.1754944e-38, %v2314_v58  ;;  %3842 = vst [vmem:[%s5989_s10 + $0x48] sm:$0xff] %v2301_v53  ;;  %v2365_v45 = vsub.f32 1.0, %v2364_v12  ;;  %v2372_v56 = vand.u32 2147483647, %v6066_v38  ;;  %4247 = vpow2.f32 %v4050_v8 }
 0x251   : > { %1544 = vmatmul.f32.gmra.mxu0 %v5782_v62  ;;  %1609 = vmatmul.f32.gmra.mxu1 %v5782_v62  ;;  %v6126_v30 = vadd.f32 1.0, %v4240_v28  ;;  %v2311_v32 = vsel %vm2310_vm2, %v4234_v7, %v2307_v10  ;;  %v2374_v1 = vand.u32 2147483648, %v6066_v38  ;;  %4249 = vpow2.f32 %v4051_v13  ;;  %v1279_v7 = vpop.f32.mrf.mxu0 }
 0x252   : > { %1674 = vmatmul.f32.gmra.mxu2 %v5782_v62  ;;  %v4052_v41 = vmul.f32 -1.442695, %v1472_v22  ;;  %v2316_v47 = vsel %vm6117_vm1, %v2315_v49, %v2311_v32  ;;  %v2366_v0 = vmul.f32 %v4238_v21, %v2365_v45  ;;  %vm2369_vm3 = vweird.f32 %v4238_v21 }
 0x253   : > { %v4242_v9 = vpop.eup %4241  ;;  %4251 = vrcp.f32 %v6126_v30  ;;  %3843 = vst [vmem:[%s5989_s10 + $0x50] sm:$0xff] %v2316_v47  ;;  %vm2368_vm4 = vweird.f32 %v6066_v38  ;;  %v2387_v15 = vand.u32 2147483647, %v6107_v46  ;;  %v2389_v60 = vand.u32 2147483648, %v6107_v46 }
 0x254   : > { %v4244_v23 = vpop.eup %4243  ;;  %v6136_v62 = vadd.f32 1.0, %v4242_v9  ;;  %v2367_v54 = vadd.f32 %v4238_v21, %v2366_v0  ;;  %4253 = vpow2.f32 %v4052_v41  ;;  %vm2370_vm5 = vmor %vm2368_vm4, %vm2369_vm3  ;;  %vm2373_vm6 = vcmp.eq.f32.partialorder %v2372_v56, 8.507059e+37 }
 0x255   : > { %v4246_v16 = vpop.eup %4245  ;;  %v6139_v2 = vadd.f32 1.0, %v4244_v23  ;;  %v2375_v14 = vor.u32 1.1754944e-38, %v2374_v1  ;;  %v2402_v36 = vand.u32 2147483647, %v6126_v30  ;;  %v2404_v52 = vand.u32 2147483648, %v6126_v30 }
 0x256   : > { %v2379_v27 = vmul.f32 %v4246_v16, %v6107_v46  ;;  %v4248_v35 = vpop.eup %4247  ;;  %v2371_v38 = vsel %vm2370_vm5, %v4238_v21, %v2367_v54  ;;  %4255 = vrcp.f32 %v6136_v62  ;;  %vm2383_vm7 = vweird.f32 %v6107_v46 }
 0x257   : > { %v4250_v42 = vpop.eup %4249  ;;  %v2376_v25 = vsel %vm2373_vm6, %v2375_v14, %v2371_v38  ;;  %4257 = vrcp.f32 %v6139_v2  ;;  %vm6150_vm8 = vcmp.eq.f32.partialorder %v2387_v15, 8.507059e+37  ;;  %v2390_v58 = vor.u32 1.1754944e-38, %v2389_v60  ;;  %v1409_v60 = vpop.f32.mrf.mxu2 }
 0x258   : > { %v2380_v55 = vsub.f32 1.0, %v2379_v27  ;;  %3847 = vst [vmem:[%s5989_s10 + $0x70] sm:$0xff] %v2376_v25  ;;  %vm2398_vm9 = vweird.f32 %v6126_v30  ;;  %v1280_v44 = vadd.f32 %v1279_v7, %v5914_v43  ;;  %vm2384_vm10 = vweird.f32 %v4246_v16 }
 0x259   : > { %1547 = vmatmul.f32.gmra.mxu0 %v5798_v51  ;;  %1612 = vmatmul.f32.gmra.mxu1 %v5798_v51  ;;  %v4252_v39 = vpop.eup %4251  ;;  %v2417_v63 = vand.u32 2147483647, %v6136_v62  ;;  %vm6159_vm11 = vcmp.eq.f32.partialorder %v2402_v36, 8.507059e+37  ;;  %v2405_v29 = vor.u32 1.1754944e-38, %v2404_v52  ;;  %v2419_v48 = vand.u32 2147483648, %v6136_v62  ;;  %vm2385_vm13 = vmor %vm2383_vm7, %vm2384_vm10 }
 0x25a   : > { %1677 = vmatmul.f32.gmra.mxu2 %v5798_v51  ;;  %v2381_v61 = vmul.f32 %v4246_v16, %v2380_v55  ;;  %v2394_v5 = vmul.f32 %v4252_v39, %v6126_v30  ;;  %v4254_v17 = vpop.eup %4253  ;;  %v6164_v20 = vadd.f32 1.0, %v4248_v35  ;;  %vm2413_vm12 = vweird.f32 %v6136_v62 }
 0x25b   : > { %v6167_v51 = vadd.f32 1.0, %v4250_v42  ;;  %vm2399_vm14 = vweird.f32 %v4252_v39  ;;  %vm2473_vm15 = vweird.f32 %v6139_v2  ;;  %v2477_v8 = vand.u32 2147483647, %v6139_v2 }
 0x25c   : > { %v2382_v22 = vadd.f32 %v4246_v16, %v2381_v61  ;;  %v2395_v21 = vsub.f32 1.0, %v2394_v5  ;;  %v4256_v24 = vpop.eup %4255  ;;  %v2479_v13 = vand.u32 2147483648, %v6139_v2  ;;  %4259 = vrcp.f32 %v6164_v20  ;;  %vm2400_vm2 = vmor %vm2398_vm9, %vm2399_vm14 }
 0x25d   : > { %v6175_v26 = vpop.eup %4257  ;;  %v2409_v53 = vmul.f32 %v4256_v24, %v6136_v62  ;;  %vm6178_vm1 = vcmp.eq.f32.partialorder %v2417_v63, 8.507059e+37  ;;  %v6182_v46 = vadd.f32 1.0, %v4254_v17  ;;  %v2420_v45 = vor.u32 1.1754944e-38, %v2419_v48  ;;  %v1474_v63 = vpop.f32.mrf.mxu3 }
 0x25e   : > { %v2386_v12 = vsel %vm2385_vm13, %v4246_v16, %v2382_v22  ;;  %v2396_v28 = vmul.f32 %v4252_v39, %v2395_v21  ;;  %v2469_v56 = vmul.f32 %v6175_v26, %v6139_v2  ;;  %v2492_v32 = vand.u32 2147483647, %v6164_v20  ;;  %v1282_v17 = vpop.f32.mrf.mxu0  ;;  %v1347_v21 = vpop.f32.mrf.mxu1 }
 0x25f   : > { %v2391_v49 = vsel %vm6150_vm8, %v2390_v58, %v2386_v12  ;;  %v2410_v41 = vsub.f32 1.0, %v2409_v53  ;;  %v2494_v9 = vand.u32 2147483648, %v6164_v20  ;;  %4261 = vrcp.f32 %v6167_v51 }
 0x260   : > { %3848 = vst [vmem:[%s5989_s10 + $0x78] sm:$0xff] %v2391_v49  ;;  %v2397_v1 = vadd.f32 %v4252_v39, %v2396_v28  ;;  %v2470_v47 = vsub.f32 1.0, %v2469_v56  ;;  %vm6197_vm3 = vcmp.eq.f32.partialorder %v2477_v8, 8.507059e+37  ;;  %v2480_v23 = vor.u32 1.1754944e-38, %v2479_v13 }
 0x261   : > { %1550 = vmatmul.f32.gmra.mxu0 %v5814_v34  ;;  %1615 = vmatmul.f32.gmra.mxu1 %v5814_v34  ;;  %v4056_v15 = vmul.f32 -1.442695, %v1280_v44  ;;  %v2411_v54 = vmul.f32 %v4256_v24, %v2410_v41  ;;  %vm2414_vm4 = vweird.f32 %v4256_v24  ;;  %4263 = vrcp.f32 %v6182_v46 }
 0x262   : > { %1680 = vmatmul.f32.gmra.mxu2 %v5814_v34  ;;  %v2401_v16 = vsel %vm2400_vm2, %v4252_v39, %v2397_v1  ;;  %v4260_v14 = vpop.eup %4259  ;;  %v2471_v27 = vmul.f32 %v6175_v26, %v2470_v47  ;;  %vm2474_vm5 = vweird.f32 %v6175_v26  ;;  %vm2488_vm6 = vweird.f32 %v6164_v20  ;;  %vm2415_vm8 = vmor %vm2413_vm12, %vm2414_vm4  ;;  %v1412_v1 = vpop.f32.mrf.mxu2 }
 0x263   : > { %v2406_v30 = vsel %vm6159_vm11, %v2405_v29, %v2401_v16  ;;  %v2412_v7 = vadd.f32 %v4256_v24, %v2411_v54  ;;  %v2484_v34 = vmul.f32 %v4260_v14, %v6164_v20  ;;  %vm6210_vm7 = vcmp.eq.f32.partialorder %v2492_v32, 8.507059e+37  ;;  %vm2475_vm10 = vmor %vm2473_vm15, %vm2474_vm5 }
 0x264   : > { %3849 = vst [vmem:[%s5989_s10 + $0x80] sm:$0xff] %v2406_v30  ;;  %v2495_v38 = vor.u32 1.1754944e-38, %v2494_v9  ;;  %v2507_v36 = vand.u32 2147483647, %v6167_v51  ;;  %v2472_v52 = vadd.f32 %v6175_v26, %v2471_v27  ;;  %vm2503_vm9 = vweird.f32 %v6167_v51 }
 0x265   : > { %v2509_v42 = vand.u32 2147483648, %v6167_v51  ;;  %4265 = vpow2.f32 %v4056_v15  ;;  %v1345_v25 = vadd.f32 %v1344_v57, %v5916_v11  ;;  %v4262_v55 = vpop.eup %4261  ;;  %v2416_v39 = vsel %vm2415_vm8, %v4256_v24, %v2412_v7  ;;  %v1477_v7 = vpop.f32.mrf.mxu3 }
 0x266   : > { %v2485_v59 = vsub.f32 1.0, %v2484_v34  ;;  %vm2489_vm11 = vweird.f32 %v4260_v14  ;;  %v1410_v62 = vadd.f32 %v1409_v60, %v5923_v33  ;;  %v2421_v58 = vsel %vm6178_vm1, %v2420_v45, %v2416_v39 }
 0x267   : > { %v2476_v44 = vsel %vm2475_vm10, %v6175_v26, %v2472_v52  ;;  %v2499_v61 = vmul.f32 %v4262_v55, %v6167_v51  ;;  %vm2518_vm12 = vweird.f32 %v6182_v46  ;;  %v2522_v5 = vand.u32 2147483647, %v6182_v46  ;;  %v4264_v2 = vpop.eup %4263  ;;  %3850 = vst [vmem:[%s5989_s10 + $0x88] sm:$0xff] %v2421_v58  ;;  %vm2490_vm14 = vmor %vm2488_vm6, %vm2489_vm11 }
 0x268   : > { %v2481_v19 = vsel %vm6197_vm3, %v2480_v23, %v2476_v44  ;;  %v2486_v29 = vmul.f32 %v4260_v14, %v2485_v59  ;;  %v2524_v48 = vand.u32 2147483648, %v6182_v46  ;;  %v4057_v22 = vmul.f32 -1.442695, %v1345_v25 }
 0x269   : > { %1553 = vmatmul.f32.gmra.mxu0 %v5830_v37  ;;  %1618 = vmatmul.f32.gmra.mxu1 %v5830_v37  ;;  %3854 = vst [vmem:[%s5989_s10 + $0xa8] sm:$0xff] %v2481_v19  ;;  %v2500_v24 = vsub.f32 1.0, %v2499_v61  ;;  %vm2504_vm13 = vweird.f32 %v4262_v55  ;;  %v2514_v8 = vmul.f32 %v4264_v2, %v6182_v46  ;;  %v4058_v13 = vmul.f32 -1.442695, %v1410_v62 }
 0x26a   : > { %1683 = vmatmul.f32.gmra.mxu2 %v5830_v37  ;;  %v2487_v26 = vadd.f32 %v4260_v14, %v2486_v29  ;;  %4267 = vpow2.f32 %v4057_v22  ;;  %v1475_v12 = vadd.f32 %v1474_v63, %v5925_v18  ;;  %v1283_v28 = vadd.f32 %v1282_v17, %v5914_v43  ;;  %vm2505_vm1 = vmor %vm2503_vm9, %vm2504_vm13 }
 0x26b   : > { %v4266_v53 = vpop.eup %4265  ;;  %v2501_v10 = vmul.f32 %v4262_v55, %v2500_v24  ;;  %v2515_v57 = vsub.f32 1.0, %v2514_v8  ;;  %4269 = vpow2.f32 %v4058_v13  ;;  %v1348_v49 = vadd.f32 %v1347_v21, %v5916_v11 }
 0x26c   : > { %v2491_v45 = vsel %vm2490_vm14, %v4260_v14, %v2487_v26  ;;  %v6247_v56 = vadd.f32 1.0, %v4266_v53  ;;  %v4059_v37 = vmul.f32 -1.442695, %v1475_v12  ;;  %v4063_v32 = vmul.f32 -1.442695, %v1283_v28 }
 0x26d   : > { %v2496_v41 = vsel %vm6210_vm7, %v2495_v38, %v2491_v45  ;;  %v2502_v9 = vadd.f32 %v4262_v55, %v2501_v10  ;;  %v2516_v47 = vmul.f32 %v4264_v2, %v2515_v57  ;;  %vm2519_vm15 = vweird.f32 %v4264_v2  ;;  %v1285_v38 = vpop.f32.mrf.mxu0 }
 0x26e   : > { %3855 = vst [vmem:[%s5989_s10 + $0xb0] sm:$0xff] %v2496_v41  ;;  %vm2508_vm2 = vcmp.eq.f32.partialorder %v2507_v36, 8.507059e+37  ;;  %v2510_v20 = vor.u32 1.1754944e-38, %v2509_v42  ;;  %4271 = vrcp.f32 %v6247_v56  ;;  %v4064_v0 = vmul.f32 -1.442695, %v1348_v49  ;;  %vm2520_vm3 = vmor %vm2518_vm12, %vm2519_vm15 }
 0x26f   : > { %v2506_v23 = vsel %vm2505_vm1, %v4262_v55, %v2502_v9  ;;  %v2517_v15 = vadd.f32 %v4264_v2, %v2516_v47  ;;  %4273 = vpow2.f32 %v4059_v37  ;;  %v1413_v16 = vadd.f32 %v1412_v1, %v5923_v33 }
 0x270   : > { %v4268_v54 = vpop.eup %4267  ;;  %v2511_v60 = vsel %vm2508_vm2, %v2510_v20, %v2506_v23  ;;  %v2525_v14 = vor.u32 1.1754944e-38, %v2524_v48  ;;  %4275 = vpow2.f32 %v4063_v32  ;;  %vm2523_vm4 = vcmp.eq.f32.partialorder %v2522_v5, 8.507059e+37  ;;  %v6315_v20 = vpop.f32.mrf.mxu1 }
 0x271   : > { %1556 = vmatmul.f32.gmra.mxu0 %v5846_v50  ;;  %1621 = vmatmul.f32.gmra.mxu1 %v5846_v50  ;;  %v4270_v51 = vpop.eup %4269  ;;  %3856 = vst [vmem:[%s5989_s10 + $0xb8] sm:$0xff] %v2511_v60  ;;  %v2521_v30 = vsel %vm2520_vm3, %v4264_v2, %v2517_v15  ;;  %v6262_v27 = vadd.f32 1.0, %v4268_v54  ;;  %4277 = vpow2.f32 %v4064_v0  ;;  %v4065_v46 = vmul.f32 -1.442695, %v1413_v16 }
 0x272   : > { %1686 = vmatmul.f32.gmra.mxu2 %v5846_v50  ;;  %v2526_v34 = vsel %vm2523_vm4, %v2525_v14, %v2521_v30  ;;  %v6265_v35 = vadd.f32 1.0, %v4270_v51  ;;  %v2582_v36 = vand.u32 2147483647, %v6247_v56  ;;  %v2584_v42 = vand.u32 2147483648, %v6247_v56 }
 0x273   : > { %3857 = vst [vmem:[%s5989_s10 + $0xc0] sm:$0xff] %v2526_v34  ;;  %4279 = vrcp.f32 %v6262_v27  ;;  %v1478_v25 = vadd.f32 %v1477_v7, %v5925_v18  ;;  %vm2578_vm5 = vweird.f32 %v6247_v56  ;;  %v2597_v39 = vand.u32 2147483647, %v6262_v27 }
 0x274   : > { %v4272_v52 = vpop.eup %4271  ;;  %4281 = vrcp.f32 %v6265_v35  ;;  %v1286_v59 = vadd.f32 %v1285_v38, %v5914_v43  ;;  %v2599_v58 = vand.u32 2147483648, %v6262_v27  ;;  %v2614_v44 = vand.u32 2147483648, %v6265_v35  ;;  %v6339_v38 = vpop.f32.mrf.mxu2 }
 0x275   : > { %v4274_v55 = vpop.eup %4273  ;;  %v2574_v50 = vmul.f32 %v4272_v52, %v6247_v56  ;;  %4283 = vpow2.f32 %v4065_v46  ;;  %vm6281_vm6 = vcmp.eq.f32.partialorder %v2582_v36, 8.507059e+37  ;;  %v2612_v17 = vand.u32 2147483647, %v6265_v35 }
 0x276   : > { %v4276_v62 = vpop.eup %4275  ;;  %v6279_v61 = vadd.f32 1.0, %v4274_v55  ;;  %v2585_v29 = vor.u32 1.1754944e-38, %v2584_v42  ;;  %vm2593_vm7 = vweird.f32 %v6262_v27  ;;  %v4066_v48 = vmul.f32 -1.442695, %v1478_v25 }
 0x277   : > { %v2575_v5 = vsub.f32 1.0, %v2574_v50  ;;  %v6286_v2 = vadd.f32 1.0, %v4276_v62  ;;  %v4278_v19 = vpop.eup %4277  ;;  %vm2579_vm8 = vweird.f32 %v4272_v52  ;;  %vm2608_vm9 = vweird.f32 %v6265_v35 }
 0x278   : > { %4285 = vrcp.f32 %v6279_v61  ;;  %v4070_v24 = vmul.f32 -1.442695, %v1286_v59  ;;  %vm6296_vm10 = vcmp.eq.f32.partialorder %v2597_v39, 8.507059e+37  ;;  %v2600_v12 = vor.u32 1.1754944e-38, %v2599_v58  ;;  %vm2580_vm12 = vmor %vm2578_vm5, %vm2579_vm8  ;;  %v1353_v26 = vpop.f32.mrf.mxu1 }
 0x279   : > { %1559 = vmatmul.f32.gmra.mxu0 %v5862_v31  ;;  %1624 = vmatmul.f32.gmra.mxu1 %v5862_v31  ;;  %v4280_v22 = vpop.eup %4279  ;;  %v2576_v21 = vmul.f32 %v4272_v52, %v2575_v5  ;;  %4287 = vrcp.f32 %v6286_v2  ;;  %v2615_v28 = vor.u32 1.1754944e-38, %v2614_v44  ;;  %v2627_v53 = vand.u32 2147483647, %v6279_v61  ;;  %v1480_v44 = vpop.f32.mrf.mxu3 }
 0x27a   : > { %1689 = vmatmul.f32.gmra.mxu2 %v5862_v31  ;;  %v4282_v8 = vpop.eup %4281  ;;  %v2589_v13 = vmul.f32 %v4280_v22, %v6262_v27  ;;  %vm6302_vm11 = vcmp.eq.f32.partialorder %v2612_v17, 8.507059e+37  ;;  %v2629_v31 = vand.u32 2147483648, %v6279_v61  ;;  %v2687_v45 = vand.u32 2147483647, %v6286_v2 }
 0x27b   : > { %v2577_v10 = vadd.f32 %v4272_v52, %v2576_v21  ;;  %v2604_v57 = vmul.f32 %v4282_v8, %v6265_v35  ;;  %v4284_v37 = vpop.eup %4283  ;;  %vm2594_vm13 = vweird.f32 %v4280_v22  ;;  %v6311_v1 = vadd.f32 1.0, %v4278_v19  ;;  %v1288_v21 = vpop.f32.mrf.mxu0 }
 0x27c   : > { %v2590_v32 = vsub.f32 1.0, %v2589_v13  ;;  %4289 = vpow2.f32 %v4066_v48  ;;  %v6313_v47 = vadd.f32 1.0, %v4284_v37  ;;  %v2689_v56 = vand.u32 2147483648, %v6286_v2  ;;  %vm2595_vm3 = vmor %vm2593_vm7, %vm2594_vm13 }
 0x27d   : > { %v2581_v41 = vsel %vm2580_vm12, %v4272_v52, %v2577_v10  ;;  %v2605_v9 = vsub.f32 1.0, %v2604_v57  ;;  %4291 = vpow2.f32 %v4070_v24  ;;  %vm2609_vm14 = vweird.f32 %v4282_v8 }
 0x27e   : > { %v4286_v0 = vpop.eup %4285  ;;  %v2586_v23 = vsel %vm6281_vm6, %v2585_v29, %v2581_v41  ;;  %v2591_v15 = vmul.f32 %v4280_v22, %v2590_v32  ;;  %4293 = vrcp.f32 %v6311_v1  ;;  %vm2623_vm15 = vweird.f32 %v6279_v61  ;;  %vm2610_vm4 = vmor %vm2608_vm9, %vm2609_vm14 }
 0x27f   : > { %v6321_v16 = vpop.eup %4287  ;;  %3861 = vst [vmem:[%s5989_s10 + $0xe0] sm:$0xff] %v2586_v23  ;;  %v2606_v54 = vmul.f32 %v4282_v8, %v2605_v9  ;;  %v2619_v60 = vmul.f32 %v4286_v0, %v6279_v61  ;;  %vm6326_vm1 = vcmp.eq.f32.partialorder %v2627_v53, 8.507059e+37  ;;  %vm2683_vm2 = vweird.f32 %v6286_v2  ;;  %v1418_v9 = vpop.f32.mrf.mxu2 }
 0x280   : > { %v2592_v14 = vadd.f32 %v4280_v22, %v2591_v15  ;;  %v2679_v30 = vmul.f32 %v6321_v16, %v6286_v2  ;;  %v2630_v46 = vor.u32 1.1754944e-38, %v2629_v31  ;;  %4295 = vrcp.f32 %v6313_v47 }
 0x281   : > { %1562 = vmatmul.f32.gmra.mxu0 %v5878_v6  ;;  %1627 = vmatmul.f32.gmra.mxu1 %v5878_v6  ;;  %v2607_v7 = vadd.f32 %v4282_v8, %v2606_v54  ;;  %v2620_v34 = vsub.f32 1.0, %v2619_v60  ;;  %vm6345_vm5 = vcmp.eq.f32.partialorder %v2687_v45, 8.507059e+37  ;;  %v2690_v25 = vor.u32 1.1754944e-38, %v2689_v56 }
 0x282   : > { %1692 = vmatmul.f32.gmra.mxu2 %v5878_v6  ;;  %v4290_v36 = vpop.eup %4289  ;;  %v2596_v52 = vsel %vm2595_vm3, %v4280_v22, %v2592_v14  ;;  %v2680_v42 = vsub.f32 1.0, %v2679_v30  ;;  %vm2624_vm6 = vweird.f32 %v4286_v0  ;;  %vm2684_vm7 = vweird.f32 %v6321_v16 }
 0x283   : > { %v4292_v55 = vpop.eup %4291  ;;  %v2601_v50 = vsel %vm6296_vm10, %v2600_v12, %v2596_v52  ;;  %v2611_v39 = vsel %vm2610_vm4, %v4282_v8, %v2607_v7  ;;  %v2621_v59 = vmul.f32 %v4286_v0, %v2620_v34  ;;  %v2702_v58 = vand.u32 2147483647, %v6311_v1  ;;  %vm2625_vm9 = vmor %vm2623_vm15, %vm2624_vm6  ;;  %v1483_v34 = vpop.f32.mrf.mxu3 }
 0x284   : > { %v4294_v6 = vpop.eup %4293  ;;  %3862 = vst [vmem:[%s5989_s10 + $0xe8] sm:$0xff] %v2601_v50  ;;  %v2616_v35 = vsel %vm6302_vm11, %v2615_v28, %v2611_v39  ;;  %v2681_v62 = vmul.f32 %v6321_v16, %v2680_v42  ;;  %vm2698_vm8 = vweird.f32 %v6311_v1  ;;  %v6360_v17 = vadd.f32 1.0, %v4290_v36  ;;  %vm2685_vm10 = vmor %vm2683_vm2, %vm2684_vm7  ;;  %v1291_v50 = vpop.f32.mrf.mxu0 }
 0x285   : > { %3863 = vst [vmem:[%s5989_s10 + $0xf0] sm:$0xff] %v2616_v35  ;;  %v2622_v5 = vadd.f32 %v4286_v0, %v2621_v59  ;;  %v2694_v63 = vmul.f32 %v4294_v6, %v6311_v1  ;;  %v2704_v29 = vand.u32 2147483648, %v6311_v1  ;;  %v2717_v48 = vand.u32 2147483647, %v6313_v47  ;;  %v1356_v59 = vpop.f32.mrf.mxu1 }
 0x286   : > { %v2682_v19 = vadd.f32 %v6321_v16, %v2681_v62  ;;  %v6367_v22 = vadd.f32 1.0, %v4292_v55  ;;  %v4296_v24 = vpop.eup %4295  ;;  %v2719_v61 = vand.u32 2147483648, %v6313_v47  ;;  %4297 = vrcp.f32 %v6360_v17 }
 0x287   : > { %v2626_v8 = vsel %vm2625_vm9, %v4286_v0, %v2622_v5  ;;  %v2695_v13 = vsub.f32 1.0, %v2694_v63  ;;  %vm6378_vm11 = vcmp.eq.f32.partialorder %v2702_v58, 8.507059e+37  ;;  %v2709_v10 = vmul.f32 %v4296_v24, %v6313_v47 }
 0x288   : > { %v2631_v12 = vsel %vm6326_vm1, %v2630_v46, %v2626_v8  ;;  %v2686_v28 = vsel %vm2685_vm10, %v6321_v16, %v2682_v19  ;;  %vm2699_vm12 = vweird.f32 %v4294_v6  ;;  %vm2713_vm13 = vweird.f32 %v6313_v47 }
 0x289   : > { %1565 = vmatmul.f32.gmra.mxu0 %v5891_v40  ;;  %1630 = vmatmul.f32.gmra.mxu1 %v5891_v40  ;;  %3864 = vst [vmem:[%s5989_s10 + $0xf8] sm:$0xff] %v2631_v12  ;;  %v2691_v2 = vsel %vm6345_vm5, %v2690_v25, %v2686_v28  ;;  %v2696_v57 = vmul.f32 %v4294_v6, %v2695_v13  ;;  %v2705_v49 = vor.u32 1.1754944e-38, %v2704_v29  ;;  %v2710_v31 = vsub.f32 1.0, %v2709_v10  ;;  %vm2700_vm1 = vmor %vm2698_vm8, %vm2699_vm12 }
 0x28a   : > { %1695 = vmatmul.f32.gmra.mxu2 %v5891_v40  ;;  %3868 = vst [vmem:[%s5989_s10 + $0x118] sm:$0xff] %v2691_v2  ;;  %v2734_v45 = vand.u32 2147483648, %v6360_v17  ;;  %4299 = vrcp.f32 %v6367_v22  ;;  %vm2714_vm14 = vweird.f32 %v4296_v24  ;;  %vm6393_vm15 = vcmp.eq.f32.partialorder %v2717_v48, 8.507059e+37 }
 0x28b   : > { %v2697_v37 = vadd.f32 %v4294_v6, %v2696_v57  ;;  %v2720_v41 = vor.u32 1.1754944e-38, %v2719_v61  ;;  %v2711_v40 = vmul.f32 %v4296_v24, %v2710_v31  ;;  %vm2728_vm2 = vweird.f32 %v6360_v17  ;;  %vm2715_vm3 = vmor %vm2713_vm13, %vm2714_vm14  ;;  %v1486_v57 = vpop.f32.mrf.mxu3 }
 0x28c   : > { %v2732_v0 = vand.u32 2147483647, %v6360_v17  ;;  %v1351_v23 = vadd.f32 %v6315_v20, %v5916_v11  ;;  %v1416_v15 = vadd.f32 %v6339_v38, %v5923_v33  ;;  %v4298_v56 = vpop.eup %4297  ;;  %v2792_v54 = vand.u32 2147483647, %v6367_v22 }
 0x28d   : > { %v2701_v16 = vsel %vm2700_vm1, %v4294_v6, %v2697_v37  ;;  %v1481_v60 = vadd.f32 %v1480_v44, %v5925_v18  ;;  %v1289_v1 = vadd.f32 %v1288_v21, %v5914_v43  ;;  %v2712_v51 = vadd.f32 %v4296_v24, %v2711_v40  ;;  %v1421_v21 = vpop.f32.mrf.mxu2 }
 0x28e   : > { %v2706_v14 = vsel %vm6378_vm11, %v2705_v49, %v2701_v16  ;;  %v2724_v30 = vmul.f32 %v4298_v56, %v6360_v17  ;;  %v2735_v7 = vor.u32 1.1754944e-38, %v2734_v45  ;;  %v4071_v20 = vmul.f32 -1.442695, %v1351_v23 }
 0x28f   : > { %3869 = vst [vmem:[%s5989_s10 + $0x120] sm:$0xff] %v2706_v14  ;;  %v4072_v46 = vmul.f32 -1.442695, %v1416_v15  ;;  %v1354_v38 = vadd.f32 %v1353_v26, %v5916_v11  ;;  %v1419_v36 = vadd.f32 %v1418_v9, %v5923_v33  ;;  %v2716_v42 = vsel %vm2715_vm3, %v4296_v24, %v2712_v51 }
 0x290   : > { %v4300_v52 = vpop.eup %4299  ;;  %v2725_v27 = vsub.f32 1.0, %v2724_v30  ;;  %v4073_v25 = vmul.f32 -1.442695, %v1481_v60  ;;  %v4077_v55 = vmul.f32 -1.442695, %v1289_v1  ;;  %v2721_v47 = vsel %vm6393_vm15, %v2720_v41, %v2716_v42  ;;  %v1294_v41 = vpop.f32.mrf.mxu0 }
 0x291   : > { %1568 = vmatmul.f32.gmra.mxu0 %v5898_v4  ;;  %1633 = vmatmul.f32.gmra.mxu1 %v5898_v4  ;;  %vm2729_vm4 = vweird.f32 %v4298_v56  ;;  %v2784_v39 = vmul.f32 %v4300_v52, %v6367_v22  ;;  %4301 = vpow2.f32 %v4071_v20  ;;  %3870 = vst [vmem:[%s5989_s10 + $0x128] sm:$0xff] %v2721_v47  ;;  %v4078_v35 = vmul.f32 -1.442695, %v1354_v38 }
 0x292   : > { %1698 = vmatmul.f32.gmra.mxu2 %v5898_v4  ;;  %v2726_v6 = vmul.f32 %v4298_v56, %v2725_v27  ;;  %4303 = vpow2.f32 %v4072_v46  ;;  %v4079_v62 = vmul.f32 -1.442695, %v1419_v36  ;;  %v2794_v44 = vand.u32 2147483648, %v6367_v22  ;;  %vm2730_vm6 = vmor %vm2728_vm2, %vm2729_vm4 }
 0x293   : > { %v2785_v58 = vsub.f32 1.0, %v2784_v39  ;;  %4305 = vpow2.f32 %v4073_v25  ;;  %v1484_v5 = vadd.f32 %v1483_v34, %v5925_v18  ;;  %vm2789_vm5 = vweird.f32 %v4300_v52 }
 0x294   : > { %v2727_v63 = vadd.f32 %v4298_v56, %v2726_v6  ;;  %4307 = vpow2.f32 %v4077_v55  ;;  %v1292_v19 = vadd.f32 %v1291_v50, %v5914_v43  ;;  %v1357_v48 = vadd.f32 %v1356_v59, %v5916_v11 }
 0x295   : > { %v2786_v4 = vmul.f32 %v4300_v52, %v2785_v58  ;;  %4309 = vpow2.f32 %v4078_v35  ;;  %v4080_v29 = vmul.f32 -1.442695, %v1484_v5  ;;  %vm2733_vm7 = vcmp.eq.f32.partialorder %v2732_v0, 8.507059e+37  ;;  %v1359_v0 = vpop.f32.mrf.mxu1 }
 0x296   : > { %v2731_v24 = vsel %vm2730_vm6, %v4298_v56, %v2727_v63  ;;  %4311 = vpow2.f32 %v4079_v62  ;;  %vm2788_vm8 = vweird.f32 %v6367_v22  ;;  %vm6432_vm9 = vcmp.eq.f32.partialorder %v2792_v54, 8.507059e+37 }
 0x297   : > { %v4302_v8 = vpop.eup %4301  ;;  %v2736_v13 = vsel %vm2733_vm7, %v2735_v7, %v2731_v24  ;;  %v2787_v61 = vadd.f32 %v4300_v52, %v2786_v4  ;;  %vm6438_vm10 = vmor %vm2788_vm8, %vm2789_vm5  ;;  %v2795_v28 = vor.u32 1.1754944e-38, %v2794_v44  ;;  %v4084_v10 = vmul.f32 -1.442695, %v1292_v19 }
 0x298   : > { %v4304_v17 = vpop.eup %4303  ;;  %3871 = vst [vmem:[%s5989_s10 + $0x130] sm:$0xff] %v2736_v13  ;;  %v6442_v53 = vadd.f32 1.0, %v4302_v8  ;;  %v1422_v2 = vadd.f32 %v1421_v21, %v5923_v33  ;;  %4313 = vpow2.f32 %v4080_v29  ;;  %v4085_v45 = vmul.f32 -1.442695, %v1357_v48 }
 0x299   : > { %1571 = vmatmul.f32.gmra.mxu0 %v5905_v3  ;;  %1636 = vmatmul.f32.gmra.mxu1 %v5905_v3  ;;  %v4306_v22 = vpop.eup %4305  ;;  %v2791_v49 = vsel %vm6438_vm10, %v4300_v52, %v2787_v61  ;;  %v6449_v31 = vadd.f32 1.0, %v4304_v17  ;;  %v1487_v40 = vadd.f32 %v1486_v57, %v5925_v18  ;;  %v6468_v60 = vadd.f32 %v1294_v41, %v5914_v43 }
 0x29a   : > { %1701 = vmatmul.f32.gmra.mxu2 %v5905_v3  ;;  %v4308_v37 = vpop.eup %4307  ;;  %v2796_v32 = vsel %vm6432_vm9, %v2795_v28, %v2791_v49  ;;  %4315 = vrcp.f32 %v6442_v53  ;;  %v6458_v15 = vadd.f32 1.0, %v4306_v22  ;;  %v6462_v3 = vmul.f32 -1.442695, %v1422_v2 }
 0x29b   : > { %v4310_v9 = vpop.eup %4309  ;;  %3875 = vst [vmem:[%s5989_s10 + $0x150] sm:$0xff] %v2796_v32  ;;  %4317 = vrcp.f32 %v6449_v31  ;;  %v6460_v56 = vadd.f32 1.0, %v4308_v37  ;;  %v2807_v16 = vand.u32 2147483647, %v6442_v53  ;;  %v2809_v1 = vand.u32 2147483648, %v6442_v53 }
 0x29c   : > { %v4312_v23 = vpop.eup %4311  ;;  %4319 = vpow2.f32 %v4084_v10  ;;  %v6465_v54 = vadd.f32 1.0, %v4310_v9  ;;  %v2822_v14 = vand.u32 2147483647, %v6449_v31  ;;  %v6474_v51 = vadd.f32 %v1359_v0, %v5916_v11 }
 0x29d   : > { %4321 = vpow2.f32 %v4085_v45  ;;  %v2824_v7 = vand.u32 2147483648, %v6449_v31  ;;  %v6478_v34 = vadd.f32 1.0, %v4312_v23  ;;  %v6480_v20 = vmul.f32 -1.442695, %v1487_v40 }
 0x29e   : > { %4323 = vrcp.f32 %v6458_v15  ;;  %v4314_v30 = vpop.eup %4313  ;;  %vm2803_vm11 = vweird.f32 %v6442_v53  ;;  %vm2818_vm12 = vweird.f32 %v6449_v31  ;;  %v2839_v38 = vand.u32 2147483648, %v6458_v15 }
 0x29f   : > { %4325 = vrcp.f32 %v6460_v56  ;;  %vm6487_vm13 = vcmp.eq.f32.partialorder %v2807_v16, 8.507059e+37  ;;  %v2837_v27 = vand.u32 2147483647, %v6458_v15  ;;  %v2899_v25 = vand.u32 2147483648, %v6460_v56 }
 0x2a0   : > { %v4316_v46 = vpop.eup %4315  ;;  %4327 = vrcp.f32 %v6465_v54  ;;  %v2810_v50 = vor.u32 1.1754944e-38, %v2809_v1  ;;  %vm6494_vm14 = vcmp.eq.f32.partialorder %v2822_v14, 8.507059e+37  ;;  %v2897_v59 = vand.u32 2147483647, %v6460_v56 }
 0x2a1   : > { %v4318_v36 = vpop.eup %4317  ;;  %v2799_v52 = vmul.f32 %v4316_v46, %v6442_v53  ;;  %v2825_v62 = vor.u32 1.1754944e-38, %v2824_v7  ;;  %vm2833_vm15 = vweird.f32 %v6458_v15  ;;  %4329 = vrcp.f32 %v6478_v34 }
 0x2a2   : > { %v4320_v55 = vpop.eup %4319  ;;  %v2814_v47 = vmul.f32 %v4318_v36, %v6449_v31  ;;  %vm2804_vm1 = vweird.f32 %v4316_v46  ;;  %vm2819_vm2 = vweird.f32 %v4318_v36  ;;  %v2840_v5 = vor.u32 1.1754944e-38, %v2839_v38 }
 0x2a3   : > { %v6499_v6 = vpop.eup %4321  ;;  %v2800_v35 = vsub.f32 1.0, %v2799_v52  ;;  %vm2893_vm3 = vweird.f32 %v6460_v56  ;;  %vm6505_vm4 = vcmp.eq.f32.partialorder %v2837_v27, 8.507059e+37  ;;  %v2900_v48 = vor.u32 1.1754944e-38, %v2899_v25  ;;  %vm2805_vm8 = vmor %vm2803_vm11, %vm2804_vm1 }
 0x2a4   : > { %v4324_v58 = vpop.eup %4323  ;;  %v2815_v44 = vsub.f32 1.0, %v2814_v47  ;;  %vm2908_vm5 = vweird.f32 %v6465_v54  ;;  %v2912_v21 = vand.u32 2147483647, %v6465_v54  ;;  %vm6512_vm6 = vcmp.eq.f32.partialorder %v2897_v59, 8.507059e+37  ;;  %vm2820_vm10 = vmor %vm2818_vm12, %vm2819_vm2 }
 0x2a5   : > { %v4326_v63 = vpop.eup %4325  ;;  %v2801_v19 = vmul.f32 %v4316_v46, %v2800_v35  ;;  %v2829_v4 = vmul.f32 %v4324_v58, %v6458_v15  ;;  %v2914_v26 = vand.u32 2147483648, %v6465_v54  ;;  %v2927_v17 = vand.u32 2147483647, %v6478_v34 }
 0x2a6   : > { %v4328_v24 = vpop.eup %4327  ;;  %v2816_v8 = vmul.f32 %v4318_v36, %v2815_v44  ;;  %v2889_v13 = vmul.f32 %v4326_v63, %v6460_v56  ;;  %vm2834_vm7 = vweird.f32 %v4324_v58  ;;  %vm2894_vm9 = vweird.f32 %v4326_v63 }
 0x2a7   : > { %v2802_v12 = vadd.f32 %v4316_v46, %v2801_v19  ;;  %v2830_v28 = vsub.f32 1.0, %v2829_v4  ;;  %v2904_v10 = vmul.f32 %v4328_v24, %v6465_v54  ;;  %v6522_v22 = vadd.f32 1.0, %v4314_v30  ;;  %v4330_v49 = vpop.eup %4329  ;;  %vm2835_vm12 = vmor %vm2833_vm15, %vm2834_vm7 }
 0x2a8   : > { %v2817_v2 = vadd.f32 %v4318_v36, %v2816_v8  ;;  %v2890_v57 = vsub.f32 1.0, %v2889_v13  ;;  %v6527_v41 = vadd.f32 1.0, %v4320_v55  ;;  %v2919_v0 = vmul.f32 %v4330_v49, %v6478_v34 }
 0x2a9   : > { %v2806_v45 = vsel %vm2805_vm8, %v4316_v46, %v2802_v12  ;;  %v2831_v37 = vmul.f32 %v4324_v58, %v2830_v28  ;;  %v2905_v32 = vsub.f32 1.0, %v2904_v10  ;;  %vm2909_vm11 = vweird.f32 %v4328_v24  ;;  %v1489_v12 = vpop.f32.mrf.mxu3 }
 0x2aa   : > { %v2811_v53 = vsel %vm6487_vm13, %v2810_v50, %v2806_v45  ;;  %v2821_v9 = vsel %vm2820_vm10, %v4318_v36, %v2817_v2  ;;  %v2891_v40 = vmul.f32 %v4326_v63, %v2890_v57  ;;  %v2920_v14 = vsub.f32 1.0, %v2919_v0  ;;  %vm2895_vm13 = vmor %vm2893_vm3, %vm2894_vm9  ;;  %v1297_v57 = vpop.f32.mrf.mxu0 }
 0x2ab   : > { %3876 = vst [vmem:[%s5989_s10 + $0x158] sm:$0xff] %v2811_v53  ;;  %v2826_v23 = vsel %vm6494_vm14, %v2825_v62, %v2821_v9  ;;  %v2832_v16 = vadd.f32 %v4324_v58, %v2831_v37  ;;  %v2906_v1 = vmul.f32 %v4328_v24, %v2905_v32  ;;  %v2929_v30 = vand.u32 2147483648, %v6478_v34  ;;  %vm2910_vm15 = vmor %vm2908_vm5, %vm2909_vm11 }
 0x2ac   : > { %3877 = vst [vmem:[%s5989_s10 + $0x160] sm:$0xff] %v2826_v23  ;;  %v2892_v31 = vadd.f32 %v4326_v63, %v2891_v40  ;;  %4331 = vrcp.f32 %v6522_v22  ;;  %v2915_v38 = vor.u32 1.1754944e-38, %v2914_v26  ;;  %vm2924_vm14 = vweird.f32 %v4330_v49 }
 0x2ad   : > { %v2836_v7 = vsel %vm2835_vm12, %v4324_v58, %v2832_v16  ;;  %v2907_v46 = vadd.f32 %v4328_v24, %v2906_v1  ;;  %v2921_v52 = vmul.f32 %v4330_v49, %v2920_v14  ;;  %4333 = vrcp.f32 %v6527_v41  ;;  %v1424_v58 = vpop.f32.mrf.mxu2  ;;  %v1362_v16 = vpop.f32.mrf.mxu1 }
 0x2ae   : > { %v2841_v15 = vsel %vm6505_vm4, %v2840_v5, %v2836_v7  ;;  %v2896_v36 = vsel %vm2895_vm13, %v4326_v63, %v2892_v31  ;;  %vm2913_vm1 = vcmp.eq.f32.partialorder %v2912_v21, 8.507059e+37  ;;  %vm2923_vm2 = vweird.f32 %v6478_v34 }
 0x2af   : > { %3878 = vst [vmem:[%s5989_s10 + $0x168] sm:$0xff] %v2841_v15  ;;  %v2901_v42 = vsel %vm6512_vm6, %v2900_v48, %v2896_v36  ;;  %v2911_v56 = vsel %vm2910_vm15, %v4328_v24, %v2907_v46  ;;  %v2922_v25 = vadd.f32 %v4330_v49, %v2921_v52  ;;  %v2930_v55 = vor.u32 1.1754944e-38, %v2929_v30  ;;  %vm2925_vm3 = vmor %vm2923_vm2, %vm2924_vm14 }
 0x2b0   : > { %3882 = vst [vmem:[%s5989_s10 + $0x188] sm:$0xff] %v2901_v42  ;;  %v2916_v27 = vsel %vm2913_vm1, %v2915_v38, %v2911_v56  ;;  %v2942_v54 = vand.u32 2147483647, %v6522_v22  ;;  %v6558_v50 = vadd.f32 1.0, %v6499_v6  ;;  %4335 = vpow2.f32 %v6462_v3 }
 0x2b1   : > { %3883 = vst [vmem:[%s5989_s10 + $0x190] sm:$0xff] %v2916_v27  ;;  %v4091_v47 = vmul.f32 -1.442695, %v6468_v60  ;;  %v2926_v59 = vsel %vm2925_vm3, %v4330_v49, %v2922_v25  ;;  %vm2928_vm4 = vcmp.eq.f32.partialorder %v2927_v17, 8.507059e+37  ;;  %4337 = vpow2.f32 %v6480_v20 }
 0x2b2   : > { %v4332_v39 = vpop.eup %4331  ;;  %v4092_v34 = vmul.f32 -1.442695, %v6474_v51  ;;  %v2931_v35 = vsel %vm2928_vm4, %v2930_v55, %v2926_v59  ;;  %vm2938_vm5 = vweird.f32 %v6522_v22  ;;  %v2944_v6 = vand.u32 2147483648, %v6522_v22 }
 0x2b3   : > { %v2934_v62 = vmul.f32 %v4332_v39, %v6522_v22  ;;  %v4334_v44 = vpop.eup %4333  ;;  %3884 = vst [vmem:[%s5989_s10 + $0x198] sm:$0xff] %v2931_v35  ;;  %4339 = vrcp.f32 %v6558_v50  ;;  %vm6569_vm6 = vcmp.eq.f32.partialorder %v2942_v54, 8.507059e+37  ;;  %vm2939_vm7 = vweird.f32 %v4332_v39 }
 0x2b4   : > { %v2994_v20 = vmul.f32 %v4334_v44, %v6527_v41  ;;  %4341 = vpow2.f32 %v4091_v47  ;;  %v3002_v51 = vand.u32 2147483647, %v6527_v41  ;;  %v3004_v5 = vand.u32 2147483648, %v6527_v41  ;;  %vm2940_vm10 = vmor %vm2938_vm5, %vm2939_vm7 }
 0x2b5   : > { %v2935_v3 = vsub.f32 1.0, %v2934_v62  ;;  %4343 = vpow2.f32 %v4092_v34  ;;  %v3017_v29 = vand.u32 2147483647, %v6558_v50  ;;  %v1425_v48 = vadd.f32 %v1424_v58, %v5923_v33  ;;  %v1427_v7 = vpop.f32.mrf.mxu2 }
 0x2b6   : > { %v4336_v63 = vpop.eup %4335  ;;  %v2995_v4 = vsub.f32 1.0, %v2994_v20  ;;  %v2945_v24 = vor.u32 1.1754944e-38, %v2944_v6  ;;  %vm2998_vm8 = vweird.f32 %v6527_v41  ;;  %v3019_v8 = vand.u32 2147483648, %v6558_v50 }
 0x2b7   : > { %v2936_v19 = vmul.f32 %v4332_v39, %v2935_v3  ;;  %v4338_v21 = vpop.eup %4337  ;;  %v6580_v13 = vadd.f32 1.0, %v4336_v63  ;;  %vm2999_vm9 = vweird.f32 %v4334_v44  ;;  %vm6587_vm11 = vcmp.eq.f32.partialorder %v3002_v51, 8.507059e+37 }
 0x2b8   : > { %v2996_v26 = vmul.f32 %v4334_v44, %v2995_v4  ;;  %v6582_v17 = vadd.f32 1.0, %v4338_v21  ;;  %v3005_v2 = vor.u32 1.1754944e-38, %v3004_v5  ;;  %vm3013_vm12 = vweird.f32 %v6558_v50  ;;  %vm3000_vm14 = vmor %vm2998_vm8, %vm2999_vm9 }
 0x2b9   : > { %v2937_v61 = vadd.f32 %v4332_v39, %v2936_v19  ;;  %v4340_v28 = vpop.eup %4339  ;;  %4345 = vrcp.f32 %v6580_v13  ;;  %vm6594_vm13 = vcmp.eq.f32.partialorder %v3017_v29, 8.507059e+37  ;;  %v4093_v22 = vmul.f32 -1.442695, %v1425_v48 }
 0x2ba   : > { %v4342_v49 = vpop.eup %4341  ;;  %v2997_v37 = vadd.f32 %v4334_v44, %v2996_v26  ;;  %v3009_v32 = vmul.f32 %v4340_v28, %v6558_v50  ;;  %v3020_v0 = vor.u32 1.1754944e-38, %v3019_v8  ;;  %4347 = vrcp.f32 %v6582_v17 }
 0x2bb   : > { %v2941_v45 = vsel %vm2940_vm10, %v4332_v39, %v2937_v61  ;;  %v4344_v9 = vpop.eup %4343  ;;  %v1490_v23 = vadd.f32 %v1489_v12, %v5925_v18  ;;  %v3032_v14 = vand.u32 2147483647, %v6580_v13  ;;  %v1298_v30 = vadd.f32 %v1297_v57, %v5914_v43 }
 0x2bc   : > { %v2946_v40 = vsel %vm6569_vm6, %v2945_v24, %v2941_v45  ;;  %v3001_v1 = vsel %vm3000_vm14, %v4334_v44, %v2997_v37  ;;  %v3010_v31 = vsub.f32 1.0, %v3009_v32  ;;  %v3034_v41 = vand.u32 2147483648, %v6580_v13 }
 0x2bd   : > { %3885 = vst [vmem:[%s5989_s10 + $0x1a0] sm:$0xff] %v2946_v40  ;;  %v3006_v46 = vsel %vm6587_vm11, %v3005_v2, %v3001_v1  ;;  %v6611_v38 = vadd.f32 1.0, %v4342_v49  ;;  %v6613_v15 = vadd.f32 1.0, %v4344_v9  ;;  %vm3014_vm15 = vweird.f32 %v4340_v28  ;;  %v1492_v1 = vpop.f32.mrf.mxu3 }
 0x2be   : > { %3889 = vst [vmem:[%s5989_s10 + $0x1c0] sm:$0xff] %v3006_v46  ;;  %v3011_v36 = vmul.f32 %v4340_v28, %v3010_v31  ;;  %4349 = vpow2.f32 %v4093_v22  ;;  %v1363_v52 = vadd.f32 %v1362_v16, %v5916_v11  ;;  %v3047_v56 = vand.u32 2147483647, %v6582_v17  ;;  %vm3015_vm2 = vmor %vm3013_vm12, %vm3014_vm15 }
 0x2bf   : > { %v4346_v42 = vpop.eup %4345  ;;  %v3049_v27 = vand.u32 2147483648, %v6582_v17  ;;  %4351 = vrcp.f32 %v6611_v38  ;;  %v1428_v25 = vadd.f32 %v1427_v7, %v5923_v33  ;;  %vm3028_vm1 = vweird.f32 %v6580_v13 }
 0x2c0   : > { %v3012_v55 = vadd.f32 %v4340_v28, %v3011_v36  ;;  %v3024_v54 = vmul.f32 %v4346_v42, %v6580_v13  ;;  %v4094_v47 = vmul.f32 -1.442695, %v1490_v23  ;;  %v4348_v39 = vpop.eup %4347  ;;  %vm6625_vm3 = vcmp.eq.f32.partialorder %v3032_v14, 8.507059e+37 }
 0x2c1   : > { %v3035_v34 = vor.u32 1.1754944e-38, %v3034_v41  ;;  %4353 = vrcp.f32 %v6613_v15  ;;  %v4098_v35 = vmul.f32 -1.442695, %v1298_v30  ;;  %v3039_v44 = vmul.f32 %v4348_v39, %v6582_v17 }
 0x2c2   : > { %v3016_v62 = vsel %vm3015_vm2, %v4340_v28, %v3012_v55  ;;  %v3025_v58 = vsub.f32 1.0, %v3024_v54  ;;  %vm3043_vm4 = vweird.f32 %v6582_v17  ;;  %vm6634_vm5 = vcmp.eq.f32.partialorder %v3047_v56, 8.507059e+37 }
 0x2c3   : > { %v3021_v6 = vsel %vm6594_vm13, %v3020_v0, %v3016_v62  ;;  %v3050_v3 = vor.u32 1.1754944e-38, %v3049_v27  ;;  %v3107_v60 = vand.u32 2147483647, %v6611_v38  ;;  %vm3029_vm6 = vweird.f32 %v4346_v42 }
 0x2c4   : > { %v4350_v20 = vpop.eup %4349  ;;  %3890 = vst [vmem:[%s5989_s10 + $0x1c8] sm:$0xff] %v3021_v6  ;;  %v3026_v51 = vmul.f32 %v4346_v42, %v3025_v58  ;;  %v3040_v5 = vsub.f32 1.0, %v3039_v44  ;;  %vm3103_vm7 = vweird.f32 %v6611_v38  ;;  %4355 = vpow2.f32 %v4094_v47  ;;  %vm3030_vm9 = vmor %vm3028_vm1, %vm3029_vm6 }
 0x2c5   : > { %v4352_v63 = vpop.eup %4351  ;;  %vm3044_vm8 = vweird.f32 %v4348_v39  ;;  %v3109_v19 = vand.u32 2147483648, %v6611_v38  ;;  %v6642_v4 = vadd.f32 1.0, %v4350_v20  ;;  %4357 = vpow2.f32 %v4098_v35 }
 0x2c6   : > { %v3027_v29 = vadd.f32 %v4346_v42, %v3026_v51  ;;  %v3041_v48 = vmul.f32 %v4348_v39, %v3040_v5  ;;  %v3099_v21 = vmul.f32 %v4352_v63, %v6611_v38  ;;  %v4099_v24 = vmul.f32 -1.442695, %v1363_v52  ;;  %vm3045_vm12 = vmor %vm3043_vm4, %vm3044_vm8  ;;  %v1300_v52 = vpop.f32.mrf.mxu0 }
 0x2c7   : > { %v4354_v8 = vpop.eup %4353  ;;  %vm6647_vm10 = vcmp.eq.f32.partialorder %v3107_v60, 8.507059e+37  ;;  %vm3118_vm11 = vweird.f32 %v6613_v15  ;;  %4359 = vrcp.f32 %v6642_v4  ;;  %v4100_v26 = vmul.f32 -1.442695, %v1428_v25 }
 0x2c8   : > { %v3031_v12 = vsel %vm3030_vm9, %v4346_v42, %v3027_v29  ;;  %v3042_v28 = vadd.f32 %v4348_v39, %v3041_v48  ;;  %v3100_v10 = vsub.f32 1.0, %v3099_v21  ;;  %v3114_v2 = vmul.f32 %v4354_v8, %v6613_v15  ;;  %v1365_v21 = vpop.f32.mrf.mxu1 }
 0x2c9   : > { %v3036_v57 = vsel %vm6625_vm3, %v3035_v34, %v3031_v12  ;;  %vm3104_vm13 = vweird.f32 %v4352_v63  ;;  %v3122_v13 = vand.u32 2147483647, %v6613_v15  ;;  %v3124_v49 = vand.u32 2147483648, %v6613_v15 }
 0x2ca   : > { %v4356_v45 = vpop.eup %4355  ;;  %3891 = vst [vmem:[%s5989_s10 + $0x1d0] sm:$0xff] %v3036_v57  ;;  %v3046_v37 = vsel %vm3045_vm12, %v4348_v39, %v3042_v28  ;;  %v3101_v32 = vmul.f32 %v4352_v63, %v3100_v10  ;;  %v3115_v53 = vsub.f32 1.0, %v3114_v2  ;;  %4361 = vpow2.f32 %v4099_v24  ;;  %vm3105_vm15 = vmor %vm3103_vm7, %vm3104_vm13  ;;  %v1495_v28 = vpop.f32.mrf.mxu3 }
 0x2cb   : > { %v4358_v22 = vpop.eup %4357  ;;  %v3051_v9 = vsel %vm6634_vm5, %v3050_v3, %v3046_v37  ;;  %v3110_v40 = vor.u32 1.1754944e-38, %v3109_v19  ;;  %v6664_v0 = vadd.f32 1.0, %v4356_v45  ;;  %4363 = vpow2.f32 %v4100_v26 }
 0x2cc   : > { %3892 = vst [vmem:[%s5989_s10 + $0x1d8] sm:$0xff] %v3051_v9  ;;  %v3102_v17 = vadd.f32 %v4352_v63, %v3101_v32  ;;  %v3116_v23 = vmul.f32 %v4354_v8, %v3115_v53  ;;  %vm3119_vm14 = vweird.f32 %v4354_v8  ;;  %v6667_v16 = vadd.f32 1.0, %v4358_v22 }
 0x2cd   : > { %v4360_v31 = vpop.eup %4359  ;;  %vm6672_vm1 = vcmp.eq.f32.partialorder %v3122_v13, 8.507059e+37  ;;  %v3125_v30 = vor.u32 1.1754944e-38, %v3124_v49  ;;  %vm3133_vm2 = vweird.f32 %v6642_v4  ;;  %4365 = vrcp.f32 %v6664_v0  ;;  %vm3120_vm3 = vmor %vm3118_vm11, %vm3119_vm14 }
 0x2ce   : > { %v3106_v7 = vsel %vm3105_vm15, %v4352_v63, %v3102_v17  ;;  %v3117_v46 = vadd.f32 %v4354_v8, %v3116_v23  ;;  %v3129_v41 = vmul.f32 %v4360_v31, %v6642_v4  ;;  %v3137_v36 = vand.u32 2147483647, %v6642_v4  ;;  %v1303_v37 = vpop.f32.mrf.mxu0 }
 0x2cf   : > { %v3111_v38 = vsel %vm6647_vm10, %v3110_v40, %v3106_v7  ;;  %v3139_v42 = vand.u32 2147483648, %v6642_v4  ;;  %4367 = vrcp.f32 %v6667_v16  ;;  %v1493_v56 = vadd.f32 %v1492_v1, %v5925_v18  ;;  %v1430_v4 = vpop.f32.mrf.mxu2 }
 0x2d0   : > { %v4362_v27 = vpop.eup %4361  ;;  %3896 = vst [vmem:[%s5989_s10 + $0x1f8] sm:$0xff] %v3111_v38  ;;  %v3121_v25 = vsel %vm3120_vm3, %v4354_v8, %v3117_v46  ;;  %v3130_v55 = vsub.f32 1.0, %v3129_v41  ;;  %v3152_v54 = vand.u32 2147483647, %v6664_v0  ;;  %v3154_v47 = vand.u32 2147483648, %v6664_v0 }
 0x2d1   : > { %v4364_v39 = vpop.eup %4363  ;;  %v3126_v15 = vsel %vm6672_vm1, %v3125_v30, %v3121_v25  ;;  %v3214_v59 = vand.u32 2147483648, %v6667_v16  ;;  %v6694_v34 = vadd.f32 1.0, %v4362_v27  ;;  %v1301_v35 = vadd.f32 %v1300_v52, %v5914_v43 }
 0x2d2   : > { %3897 = vst [vmem:[%s5989_s10 + $0x200] sm:$0xff] %v3126_v15  ;;  %v3131_v62 = vmul.f32 %v4360_v31, %v3130_v55  ;;  %vm3134_vm4 = vweird.f32 %v4360_v31  ;;  %v3212_v58 = vand.u32 2147483647, %v6667_v16  ;;  %v6699_v44 = vadd.f32 1.0, %v4364_v39 }
 0x2d3   : > { %v4366_v6 = vpop.eup %4365  ;;  %vm6701_vm5 = vcmp.eq.f32.partialorder %v3137_v36, 8.507059e+37  ;;  %v3140_v3 = vor.u32 1.1754944e-38, %v3139_v42  ;;  %vm3148_vm6 = vweird.f32 %v6664_v0  ;;  %4369 = vrcp.f32 %v6694_v34  ;;  %vm3135_vm8 = vmor %vm3133_vm2, %vm3134_vm4 }
 0x2d4   : > { %v3132_v60 = vadd.f32 %v4360_v31, %v3131_v62  ;;  %v3144_v20 = vmul.f32 %v4366_v6, %v6664_v0  ;;  %vm6708_vm7 = vcmp.eq.f32.partialorder %v3152_v54, 8.507059e+37  ;;  %v3155_v5 = vor.u32 1.1754944e-38, %v3154_v47 }
 0x2d5   : > { %v4101_v63 = vmul.f32 -1.442695, %v1493_v56  ;;  %v4368_v19 = vpop.eup %4367  ;;  %vm3208_vm9 = vweird.f32 %v6667_v16  ;;  %v3215_v29 = vor.u32 1.1754944e-38, %v3214_v59  ;;  %4371 = vrcp.f32 %v6699_v44  ;;  %v1368_v59 = vpop.f32.mrf.mxu1 }
 0x2d6   : > { %v4105_v48 = vmul.f32 -1.442695, %v1301_v35  ;;  %v3136_v24 = vsel %vm3135_vm8, %v4360_v31, %v3132_v60  ;;  %v3145_v8 = vsub.f32 1.0, %v3144_v20  ;;  %v3204_v61 = vmul.f32 %v4368_v19, %v6667_v16 }
 0x2d7   : > { %vm6717_vm10 = vcmp.eq.f32.partialorder %v3212_v58, 8.507059e+37  ;;  %v3227_v12 = vand.u32 2147483647, %v6694_v34  ;;  %v3141_v10 = vsel %vm6701_vm5, %v3140_v3, %v3136_v24  ;;  %vm3149_vm11 = vweird.f32 %v4366_v6 }
 0x2d8   : > { %v3229_v2 = vand.u32 2147483648, %v6694_v34  ;;  %v3242_v57 = vand.u32 2147483647, %v6699_v44  ;;  %3898 = vst [vmem:[%s5989_s10 + $0x208] sm:$0xff] %v3141_v10  ;;  %v3146_v13 = vmul.f32 %v4366_v6, %v3145_v8  ;;  %v3205_v49 = vsub.f32 1.0, %v3204_v61  ;;  %vm3150_vm14 = vmor %vm3148_vm6, %vm3149_vm11 }
 0x2d9   : > { %vm3223_vm12 = vweird.f32 %v6694_v34  ;;  %4373 = vpow2.f32 %v4101_v63  ;;  %v1366_v45 = vadd.f32 %v1365_v21, %v5916_v11  ;;  %v4370_v32 = vpop.eup %4369  ;;  %vm3209_vm13 = vweird.f32 %v4368_v19  ;;  %v1433_v21 = vpop.f32.mrf.mxu2 }
 0x2da   : > { %4375 = vpow2.f32 %v4105_v48  ;;  %v1431_v53 = vadd.f32 %v1430_v4, %v5923_v33  ;;  %v1496_v22 = vadd.f32 %v1495_v28, %v5925_v18  ;;  %v3147_v9 = vadd.f32 %v4366_v6, %v3146_v13  ;;  %vm3210_vm15 = vmor %vm3208_vm9, %vm3209_vm13 }
 0x2db   : > { %v3206_v40 = vmul.f32 %v4368_v19, %v3205_v49  ;;  %v3219_v17 = vmul.f32 %v4370_v32, %v6694_v34  ;;  %v3244_v23 = vand.u32 2147483648, %v6699_v44  ;;  %v4372_v1 = vpop.eup %4371  ;;  %v4106_v31 = vmul.f32 -1.442695, %v1366_v45 }
 0x2dc   : > { %v4107_v14 = vmul.f32 -1.442695, %v1431_v53  ;;  %v4108_v30 = vmul.f32 -1.442695, %v1496_v22  ;;  %v1304_v7 = vadd.f32 %v1303_v37, %v5914_v43  ;;  %v3151_v46 = vsel %vm3150_vm14, %v4366_v6, %v3147_v9 }
 0x2dd   : > { %v3207_v41 = vadd.f32 %v4368_v19, %v3206_v40  ;;  %v3220_v36 = vsub.f32 1.0, %v3219_v17  ;;  %v3234_v52 = vmul.f32 %v4372_v1, %v6699_v44  ;;  %v3156_v38 = vsel %vm6708_vm7, %v3155_v5, %v3151_v46 }
 0x2de   : > { %vm3224_vm1 = vweird.f32 %v4370_v32  ;;  %4377 = vpow2.f32 %v4106_v31  ;;  %v4112_v0 = vmul.f32 -1.442695, %v1304_v7  ;;  %3899 = vst [vmem:[%s5989_s10 + $0x210] sm:$0xff] %v3156_v38  ;;  %vm3239_vm2 = vweird.f32 %v4372_v1 }
 0x2df   : > { %v4374_v42 = vpop.eup %4373  ;;  %v3211_v56 = vsel %vm3210_vm15, %v4368_v19, %v3207_v41  ;;  %v3221_v27 = vmul.f32 %v4370_v32, %v3220_v36  ;;  %v3235_v25 = vsub.f32 1.0, %v3234_v52  ;;  %4379 = vpow2.f32 %v4107_v14  ;;  %vm3225_vm3 = vmor %vm3223_vm12, %vm3224_vm1  ;;  %v6795_v14 = vpop.f32.mrf.mxu0 }
 0x2e0   : > { %v4376_v55 = vpop.eup %4375  ;;  %v3216_v54 = vsel %vm6717_vm10, %v3215_v29, %v3211_v56  ;;  %v6746_v47 = vadd.f32 1.0, %v4374_v42  ;;  %4381 = vpow2.f32 %v4108_v30  ;;  %vm3228_vm4 = vcmp.eq.f32.partialorder %v3227_v12, 8.507059e+37 }
 0x2e1   : > { %3903 = vst [vmem:[%s5989_s10 + $0x230] sm:$0xff] %v3216_v54  ;;  %v3222_v16 = vadd.f32 %v4370_v32, %v3221_v27  ;;  %v3236_v39 = vmul.f32 %v4372_v1, %v3235_v25  ;;  %v6749_v15 = vadd.f32 1.0, %v4376_v55  ;;  %4383 = vpow2.f32 %v4112_v0 }
 0x2e2   : > { %v3230_v35 = vor.u32 1.1754944e-38, %v3229_v2  ;;  %4385 = vrcp.f32 %v6746_v47  ;;  %vm3238_vm5 = vweird.f32 %v6699_v44  ;;  %vm3243_vm7 = vcmp.eq.f32.partialorder %v3242_v57, 8.507059e+37 }
 0x2e3   : > { %v3226_v62 = vsel %vm3225_vm3, %v4370_v32, %v3222_v16  ;;  %v3237_v58 = vadd.f32 %v4372_v1, %v3236_v39  ;;  %4387 = vrcp.f32 %v6749_v15  ;;  %vm3240_vm6 = vmor %vm3238_vm5, %vm3239_vm2  ;;  %v3245_v3 = vor.u32 1.1754944e-38, %v3244_v23  ;;  %v1498_v23 = vpop.f32.mrf.mxu3 }
 0x2e4   : > { %v4378_v6 = vpop.eup %4377  ;;  %v3231_v50 = vsel %vm3228_vm4, %v3230_v35, %v3226_v62  ;;  %v1369_v34 = vadd.f32 %v1368_v59, %v5916_v11  ;;  %v3257_v51 = vand.u32 2147483647, %v6746_v47  ;;  %v3259_v5 = vand.u32 2147483648, %v6746_v47 }
 0x2e5   : > { %v4380_v60 = vpop.eup %4379  ;;  %3904 = vst [vmem:[%s5989_s10 + $0x238] sm:$0xff] %v3231_v50  ;;  %v3241_v20 = vsel %vm3240_vm6, %v4372_v1, %v3237_v58  ;;  %v6762_v63 = vadd.f32 1.0, %v4378_v6  ;;  %v3317_v29 = vand.u32 2147483647, %v6749_v15  ;;  %v3319_v8 = vand.u32 2147483648, %v6749_v15 }
 0x2e6   : > { %v4382_v44 = vpop.eup %4381  ;;  %v3246_v19 = vsel %vm3243_vm7, %v3245_v3, %v3241_v20  ;;  %v6765_v48 = vadd.f32 1.0, %v4380_v60  ;;  %vm3253_vm8 = vweird.f32 %v6746_v47  ;;  %vm3313_vm9 = vweird.f32 %v6749_v15 }
 0x2e7   : > { %v4384_v24 = vpop.eup %4383  ;;  %3905 = vst [vmem:[%s5989_s10 + $0x240] sm:$0xff] %v3246_v19  ;;  %4389 = vrcp.f32 %v6762_v63  ;;  %v4113_v26 = vmul.f32 -1.442695, %v1369_v34  ;;  %vm6774_vm10 = vcmp.eq.f32.partialorder %v3257_v51, 8.507059e+37  ;;  %v3260_v10 = vor.u32 1.1754944e-38, %v3259_v5 }
 0x2e8   : > { %v4386_v61 = vpop.eup %4385  ;;  %4391 = vrcp.f32 %v6765_v48  ;;  %v1434_v2 = vadd.f32 %v1433_v21, %v5923_v33  ;;  %vm6780_vm11 = vcmp.eq.f32.partialorder %v3317_v29, 8.507059e+37  ;;  %v3332_v49 = vand.u32 2147483647, %v6762_v63 }
 0x2e9   : > { %v4388_v12 = vpop.eup %4387  ;;  %v3249_v4 = vmul.f32 %v4386_v61, %v6746_v47  ;;  %v3334_v45 = vand.u32 2147483648, %v6762_v63  ;;  %v3349_v37 = vand.u32 2147483648, %v6765_v48  ;;  %v3320_v53 = vor.u32 1.1754944e-38, %v3319_v8  ;;  %v1436_v8 = vpop.f32.mrf.mxu2 }
 0x2ea   : > { %v3309_v57 = vmul.f32 %v4388_v12, %v6749_v15  ;;  %v3347_v22 = vand.u32 2147483647, %v6765_v48  ;;  %v6788_v9 = vadd.f32 1.0, %v4382_v44  ;;  %vm3328_vm12 = vweird.f32 %v6762_v63 }
 0x2eb   : > { %v3250_v32 = vsub.f32 1.0, %v3249_v4  ;;  %v6791_v17 = vadd.f32 1.0, %v4384_v24  ;;  %4393 = vpow2.f32 %v4113_v26  ;;  %vm3254_vm13 = vweird.f32 %v4386_v61  ;;  %v1501_v28 = vpop.f32.mrf.mxu3 }
 0x2ec   : > { %v3310_v40 = vsub.f32 1.0, %v3309_v57  ;;  %vm3314_vm14 = vweird.f32 %v4388_v12  ;;  %vm3343_vm15 = vweird.f32 %v6765_v48  ;;  %4395 = vrcp.f32 %v6788_v9  ;;  %vm3255_vm3 = vmor %vm3253_vm8, %vm3254_vm13 }
 0x2ed   : > { %v4390_v1 = vpop.eup %4389  ;;  %v3251_v31 = vmul.f32 %v4386_v61, %v3250_v32  ;;  %vm6798_vm1 = vcmp.eq.f32.partialorder %v3332_v49, 8.507059e+37  ;;  %v3335_v36 = vor.u32 1.1754944e-38, %v3334_v45  ;;  %v3350_v52 = vor.u32 1.1754944e-38, %v3349_v37  ;;  %vm3315_vm4 = vmor %vm3313_vm9, %vm3314_vm14 }
 0x2ee   : > { %v4392_v30 = vpop.eup %4391  ;;  %v3311_v7 = vmul.f32 %v4388_v12, %v3310_v40  ;;  %v3324_v46 = vmul.f32 %v4390_v1, %v6762_v63  ;;  %vm6803_vm2 = vcmp.eq.f32.partialorder %v3347_v22, 8.507059e+37  ;;  %v4114_v56 = vmul.f32 -1.442695, %v1434_v2  ;;  %v1371_v63 = vpop.f32.mrf.mxu1 }
 0x2ef   : > { %v3252_v38 = vadd.f32 %v4386_v61, %v3251_v31  ;;  %v3339_v0 = vmul.f32 %v4392_v30, %v6765_v48  ;;  %v1499_v27 = vadd.f32 %v1498_v23, %v5925_v18  ;;  %v3362_v54 = vand.u32 2147483647, %v6788_v9  ;;  %v1309_v48 = vpop.f32.mrf.mxu0 }
 0x2f0   : > { %v3312_v25 = vadd.f32 %v4388_v12, %v3311_v7  ;;  %v3325_v55 = vsub.f32 1.0, %v3324_v46  ;;  %4397 = vrcp.f32 %v6791_v17  ;;  %vm3329_vm5 = vweird.f32 %v4390_v1 }
 0x2f1   : > { %v3256_v16 = vsel %vm3255_vm3, %v4386_v61, %v3252_v38  ;;  %v3340_v39 = vsub.f32 1.0, %v3339_v0  ;;  %v3364_v59 = vand.u32 2147483648, %v6788_v9  ;;  %v4394_v35 = vpop.eup %4393  ;;  %vm3344_vm6 = vweird.f32 %v4392_v30  ;;  %vm3330_vm9 = vmor %vm3328_vm12, %vm3329_vm5 }
 0x2f2   : > { %v3261_v47 = vsel %vm6774_vm10, %v3260_v10, %v3256_v16  ;;  %v3316_v62 = vsel %vm3315_vm4, %v4388_v12, %v3312_v25  ;;  %v3326_v58 = vmul.f32 %v4390_v1, %v3325_v55  ;;  %v4396_v6 = vpop.eup %4395  ;;  %v3422_v15 = vand.u32 2147483647, %v6791_v17 }
 0x2f3   : > { %3906 = vst [vmem:[%s5989_s10 + $0x248] sm:$0xff] %v3261_v47  ;;  %v3321_v50 = vsel %vm6780_vm11, %v3320_v53, %v3316_v62  ;;  %v3341_v3 = vmul.f32 %v4392_v30, %v3340_v39  ;;  %v6823_v34 = vadd.f32 1.0, %v4394_v35  ;;  %v3354_v20 = vmul.f32 %v4396_v6, %v6788_v9  ;;  %vm3345_vm11 = vmor %vm3343_vm15, %vm3344_vm6  ;;  %v1439_v39 = vpop.f32.mrf.mxu2 }
 0x2f4   : > { %3910 = vst [vmem:[%s5989_s10 + $0x268] sm:$0xff] %v3321_v50  ;;  %v3327_v60 = vadd.f32 %v4390_v1, %v3326_v58  ;;  %vm3358_vm7 = vweird.f32 %v6788_v9  ;;  %vm6828_vm8 = vcmp.eq.f32.partialorder %v3362_v54, 8.507059e+37  ;;  %v3365_v44 = vor.u32 1.1754944e-38, %v3364_v59 }
 0x2f5   : > { %v3342_v5 = vadd.f32 %v4392_v30, %v3341_v3  ;;  %vm3418_vm10 = vweird.f32 %v6791_v17  ;;  %4399 = vrcp.f32 %v6823_v34  ;;  %v3355_v21 = vsub.f32 1.0, %v3354_v20 }
 0x2f6   : > { %v4398_v19 = vpop.eup %4397  ;;  %v3331_v29 = vsel %vm3330_vm9, %v4390_v1, %v3327_v60  ;;  %v3424_v24 = vand.u32 2147483648, %v6791_v17  ;;  %4401 = vpow2.f32 %v4114_v56  ;;  %vm6844_vm12 = vcmp.eq.f32.partialorder %v3422_v15, 8.507059e+37 }
 0x2f7   : > { %v3336_v61 = vsel %vm6798_vm1, %v3335_v36, %v3331_v29  ;;  %v3346_v26 = vsel %vm3345_vm11, %v4392_v30, %v3342_v5  ;;  %v3414_v12 = vmul.f32 %v4398_v19, %v6791_v17  ;;  %v3356_v2 = vmul.f32 %v4396_v6, %v3355_v21  ;;  %v1374_v17 = vpop.f32.mrf.mxu1  ;;  %v1504_v21 = vpop.f32.mrf.mxu3 }
 0x2f8   : > { %3911 = vst [vmem:[%s5989_s10 + $0x270] sm:$0xff] %v3336_v61  ;;  %v3351_v10 = vsel %vm6803_vm2, %v3350_v52, %v3346_v26  ;;  %vm3359_vm13 = vweird.f32 %v4396_v6  ;;  %vm3419_vm14 = vweird.f32 %v4398_v19  ;;  %v4115_v13 = vmul.f32 -1.442695, %v1499_v27 }
 0x2f9   : > { %3912 = vst [vmem:[%s5989_s10 + $0x278] sm:$0xff] %v3351_v10  ;;  %v3415_v57 = vsub.f32 1.0, %v3414_v12  ;;  %v1307_v49 = vadd.f32 %v6795_v14, %v5914_v43  ;;  %v1372_v45 = vadd.f32 %v1371_v63, %v5916_v11  ;;  %v3357_v37 = vadd.f32 %v4396_v6, %v3356_v2  ;;  %vm3360_vm15 = vmor %vm3358_vm7, %vm3359_vm13 }
 0x2fa   : > { %v1437_v32 = vadd.f32 %v1436_v8, %v5923_v33  ;;  %v1502_v53 = vadd.f32 %v1501_v28, %v5925_v18  ;;  %v1310_v22 = vadd.f32 %v1309_v48, %v5914_v43  ;;  %4403 = vpow2.f32 %v4115_v13  ;;  %vm3420_vm1 = vmor %vm3418_vm10, %vm3419_vm14 }
 0x2fb   : > { %v4400_v40 = vpop.eup %4399  ;;  %v3416_v23 = vmul.f32 %v4398_v19, %v3415_v57  ;;  %v4119_v1 = vmul.f32 -1.442695, %v1307_v49  ;;  %v4120_v31 = vmul.f32 -1.442695, %v1372_v45  ;;  %v3361_v14 = vsel %vm3360_vm15, %v4396_v6, %v3357_v37 }
 0x2fc   : > { %v4402_v30 = vpop.eup %4401  ;;  %v3425_v7 = vor.u32 1.1754944e-38, %v3424_v24  ;;  %v3429_v46 = vmul.f32 %v4400_v40, %v6823_v34  ;;  %v4121_v41 = vmul.f32 -1.442695, %v1437_v32  ;;  %v3366_v36 = vsel %vm6828_vm8, %v3365_v44, %v3361_v14  ;;  %v1312_v24 = vpop.f32.mrf.mxu0 }
 0x2fd   : > { %v3417_v52 = vadd.f32 %v4398_v19, %v3416_v23  ;;  %v6863_v38 = vadd.f32 1.0, %v4402_v30  ;;  %4405 = vpow2.f32 %v4119_v1  ;;  %3913 = vst [vmem:[%s5989_s10 + $0x280] sm:$0xff] %v3366_v36  ;;  %v3437_v0 = vand.u32 2147483647, %v6823_v34 }
 0x2fe   : > { %v3430_v9 = vsub.f32 1.0, %v3429_v46  ;;  %4407 = vpow2.f32 %v4120_v31  ;;  %v4122_v42 = vmul.f32 -1.442695, %v1502_v53  ;;  %v3439_v27 = vand.u32 2147483648, %v6823_v34 }
 0x2ff   : > { %v3421_v56 = vsel %vm3420_vm1, %v4398_v19, %v3417_v52  ;;  %4409 = vrcp.f32 %v6863_v38  ;;  %v4126_v25 = vmul.f32 -1.442695, %v1310_v22  ;;  %vm3434_vm2 = vweird.f32 %v4400_v40 }
 0x300   : > { %v3426_v55 = vsel %vm6844_vm12, %v3425_v7, %v3421_v56  ;;  %v3431_v54 = vmul.f32 %v4400_v40, %v3430_v9  ;;  %4411 = vpow2.f32 %v4121_v41  ;;  %v4404_v16 = vpop.eup %4403  ;;  %vm3433_vm3 = vweird.f32 %v6823_v34 }
 0x301   : > { %3917 = vst [vmem:[%s5989_s10 + $0x2a0] sm:$0xff] %v3426_v55  ;;  %4413 = vpow2.f32 %v4122_v42  ;;  %v3452_v35 = vand.u32 2147483647, %v6863_v38  ;;  %v6877_v47 = vadd.f32 1.0, %v4404_v16  ;;  %vm3435_vm4 = vmor %vm3433_vm3, %vm3434_vm2  ;;  %vm3438_vm5 = vcmp.eq.f32.partialorder %v3437_v0, 8.507059e+37 }
 0x302   : > { %v3432_v59 = vadd.f32 %v4400_v40, %v3431_v54  ;;  %v3440_v58 = vor.u32 1.1754944e-38, %v3439_v27  ;;  %4415 = vpow2.f32 %v4126_v25  ;;  %v1375_v6 = vadd.f32 %v1374_v17, %v5916_v11 }
 0x303   : > { %v4406_v62 = vpop.eup %4405  ;;  %v3454_v15 = vand.u32 2147483648, %v6863_v38  ;;  %4417 = vrcp.f32 %v6877_v47  ;;  %v1440_v34 = vadd.f32 %v1439_v39, %v5923_v33  ;;  %vm3448_vm6 = vweird.f32 %v6863_v38 }
 0x304   : > { %v4408_v50 = vpop.eup %4407  ;;  %v3436_v3 = vsel %vm3435_vm4, %v4400_v40, %v3432_v59  ;;  %v6883_v51 = vadd.f32 1.0, %v4406_v62  ;;  %vm6890_vm7 = vcmp.eq.f32.partialorder %v3452_v35, 8.507059e+37  ;;  %v3467_v8 = vand.u32 2147483647, %v6877_v47 }
 0x305   : > { %v4410_v60 = vpop.eup %4409  ;;  %v3441_v20 = vsel %vm3438_vm5, %v3440_v58, %v3436_v3  ;;  %v6885_v5 = vadd.f32 1.0, %v4408_v50  ;;  %v3469_v61 = vand.u32 2147483648, %v6877_v47  ;;  %v4127_v26 = vmul.f32 -1.442695, %v1375_v6 }
 0x306   : > { %v4412_v44 = vpop.eup %4411  ;;  %3918 = vst [vmem:[%s5989_s10 + $0x2a8] sm:$0xff] %v3441_v20  ;;  %v3444_v19 = vmul.f32 %v4410_v60, %v6863_v38  ;;  %4419 = vrcp.f32 %v6883_v51  ;;  %v3455_v4 = vor.u32 1.1754944e-38, %v3454_v15  ;;  %v6898_v28 = vmul.f32 -1.442695, %v1440_v34 }
 0x307   : > { %v4414_v63 = vpop.eup %4413  ;;  %4421 = vrcp.f32 %v6885_v5  ;;  %vm3463_vm8 = vweird.f32 %v6877_v47  ;;  %v6901_v10 = vadd.f32 1.0, %v4412_v44  ;;  %v6904_v2 = vadd.f32 %v1504_v21, %v5925_v18 }
 0x308   : > { %v3445_v12 = vsub.f32 1.0, %v3444_v19  ;;  %v4416_v48 = vpop.eup %4415  ;;  %v6907_v57 = vadd.f32 %v1312_v24, %v5914_v43  ;;  %vm3449_vm9 = vweird.f32 %v4410_v60  ;;  %v3527_v45 = vand.u32 2147483647, %v6883_v51 }
 0x309   : > { %v4418_v13 = vpop.eup %4417  ;;  %v6910_v37 = vadd.f32 1.0, %v4414_v63  ;;  %vm6913_vm10 = vcmp.eq.f32.partialorder %v3467_v8, 8.507059e+37  ;;  %v3470_v22 = vor.u32 1.1754944e-38, %v3469_v61  ;;  %4423 = vpow2.f32 %v4127_v26  ;;  %vm3450_vm12 = vmor %vm3448_vm6, %vm3449_vm9 }
 0x30a   : > { %v3446_v49 = vmul.f32 %v4410_v60, %v3445_v12  ;;  %v3459_v32 = vmul.f32 %v4418_v13, %v6877_v47  ;;  %vm3523_vm11 = vweird.f32 %v6883_v51  ;;  %v3529_v43 = vand.u32 2147483648, %v6883_v51 }
 0x30b   : > { %v3542_v23 = vand.u32 2147483647, %v6885_v5  ;;  %4425 = vrcp.f32 %v6901_v10  ;;  %vm3538_vm13 = vweird.f32 %v6885_v5  ;;  %v3544_v30 = vand.u32 2147483648, %v6885_v5 }
 0x30c   : > { %v3447_v40 = vadd.f32 %v4410_v60, %v3446_v49  ;;  %v4420_v1 = vpop.eup %4419  ;;  %v3460_v31 = vsub.f32 1.0, %v3459_v32  ;;  %4427 = vrcp.f32 %v6910_v37  ;;  %v6926_v14 = vadd.f32 1.0, %v4416_v48 }
 0x30d   : > { %v4422_v7 = vpop.eup %4421  ;;  %vm3464_vm14 = vweird.f32 %v4418_v13  ;;  %v3519_v41 = vmul.f32 %v4420_v1, %v6883_v51  ;;  %vm6929_vm15 = vcmp.eq.f32.partialorder %v3527_v45, 8.507059e+37  ;;  %v3557_v0 = vand.u32 2147483647, %v6901_v10 }
 0x30e   : > { %v3451_v46 = vsel %vm3450_vm12, %v4410_v60, %v3447_v40  ;;  %v3461_v38 = vmul.f32 %v4418_v13, %v3460_v31  ;;  %v3534_v9 = vmul.f32 %v4422_v7, %v6885_v5  ;;  %v3530_v56 = vor.u32 1.1754944e-38, %v3529_v43  ;;  %vm3465_vm2 = vmor %vm3463_vm8, %vm3464_vm14 }
 0x30f   : > { %v3456_v52 = vsel %vm6890_vm7, %v3455_v4, %v3451_v46  ;;  %v3520_v42 = vsub.f32 1.0, %v3519_v41  ;;  %vm6938_vm1 = vcmp.eq.f32.partialorder %v3542_v23, 8.507059e+37  ;;  %v3559_v25 = vand.u32 2147483648, %v6901_v10  ;;  %v4424_v55 = vpop.eup %4423  ;;  %v1377_v4 = vpop.f32.mrf.mxu1 }
 0x310   : > { %3919 = vst [vmem:[%s5989_s10 + $0x2b0] sm:$0xff] %v3456_v52  ;;  %v3462_v54 = vadd.f32 %v4418_v13, %v3461_v38  ;;  %v3535_v17 = vsub.f32 1.0, %v3534_v9  ;;  %v3545_v16 = vor.u32 1.1754944e-38, %v3544_v30  ;;  %4429 = vrcp.f32 %v6926_v14  ;;  %v1527_v52 = vpop.f32.mrf.mxu0 }
 0x311   : > { %v4426_v39 = vpop.eup %4425  ;;  %v3521_v59 = vmul.f32 %v4420_v1, %v3520_v42  ;;  %vm3524_vm3 = vweird.f32 %v4420_v1  ;;  %vm3553_vm4 = vweird.f32 %v6901_v10  ;;  %vm3568_vm5 = vweird.f32 %v6910_v37 }
 0x312   : > { %v4428_v35 = vpop.eup %4427  ;;  %v3466_v62 = vsel %vm3465_vm2, %v4418_v13, %v3462_v54  ;;  %v3536_v58 = vmul.f32 %v4422_v7, %v3535_v17  ;;  %vm3539_vm6 = vweird.f32 %v4422_v7  ;;  %v3549_v6 = vmul.f32 %v4426_v39, %v6901_v10  ;;  %vm3525_vm8 = vmor %vm3523_vm11, %vm3524_vm3  ;;  %v1442_v10 = vpop.f32.mrf.mxu2 }
 0x313   : > { %vm6950_vm7 = vcmp.eq.f32.partialorder %v3557_v0, 8.507059e+37  ;;  %v3471_v47 = vsel %vm6913_vm10, %v3470_v22, %v3466_v62  ;;  %v3522_v3 = vadd.f32 %v4420_v1, %v3521_v59  ;;  %v3560_v15 = vor.u32 1.1754944e-38, %v3559_v25  ;;  %vm3540_vm9 = vmor %vm3538_vm13, %vm3539_vm6 }
 0x314   : > { %v3564_v34 = vmul.f32 %v4428_v35, %v6910_v37  ;;  %3920 = vst [vmem:[%s5989_s10 + $0x2b8] sm:$0xff] %v3471_v47  ;;  %v3537_v60 = vadd.f32 %v4422_v7, %v3536_v58  ;;  %v3550_v20 = vsub.f32 1.0, %v3549_v6  ;;  %v3572_v44 = vand.u32 2147483647, %v6910_v37 }
 0x315   : > { %v3574_v19 = vand.u32 2147483648, %v6910_v37  ;;  %v3526_v29 = vsel %vm3525_vm8, %v4420_v1, %v3522_v3  ;;  %vm3628_vm10 = vweird.f32 %v6926_v14  ;;  %v6965_v24 = vadd.f32 1.0, %v4424_v55  ;;  %v1507_v1 = vpop.f32.mrf.mxu3 }
 0x316   : > { %v3565_v21 = vsub.f32 1.0, %v3564_v34  ;;  %4431 = vpow2.f32 %v6898_v28  ;;  %v4430_v51 = vpop.eup %4429  ;;  %v3531_v63 = vsel %vm6929_vm15, %v3530_v56, %v3526_v29  ;;  %v3541_v8 = vsel %vm3540_vm9, %v4422_v7, %v3537_v60 }
 0x317   : > { %v3551_v61 = vmul.f32 %v4426_v39, %v3550_v20  ;;  %vm3554_vm11 = vweird.f32 %v4426_v39  ;;  %3924 = vst [vmem:[%s5989_s10 + $0x2d8] sm:$0xff] %v3531_v63  ;;  %v3546_v5 = vsel %vm6938_vm1, %v3545_v16, %v3541_v8  ;;  %vm3569_vm12 = vweird.f32 %v4428_v35  ;;  %v4649_v16 = vld [vmem:[%s7911_s6] sm:$0x7f] }
 0x318   : > { %v3566_v26 = vmul.f32 %v4428_v35, %v3565_v21  ;;  %v3624_v12 = vmul.f32 %v4430_v51, %v6926_v14  ;;  %3925 = vst [vmem:[%s5989_s10 + $0x2e0] sm:$0xff] %v3546_v5  ;;  %vm6975_vm13 = vcmp.eq.f32.partialorder %v3572_v44, 8.507059e+37  ;;  %v3575_v13 = vor.u32 1.1754944e-38, %v3574_v19  ;;  %vm3555_vm14 = vmor %vm3553_vm4, %vm3554_vm11 }
 0x319   : > { %v3552_v48 = vadd.f32 %v4426_v39, %v3551_v61  ;;  %4433 = vrcp.f32 %v6965_v24  ;;  %v3632_v32 = vand.u32 2147483647, %v6926_v14  ;;  %v4129_v53 = vmul.f32 -1.442695, %v6904_v2  ;;  %vm3570_vm15 = vmor %vm3568_vm5, %vm3569_vm12  ;;  %v1530_v61 = vpop.f32.mrf.mxu0 }
 0x31a   : > { %v3567_v49 = vadd.f32 %v4428_v35, %v3566_v26  ;;  %v3625_v45 = vsub.f32 1.0, %v3624_v12  ;;  %v3634_v40 = vand.u32 2147483648, %v6926_v14  ;;  %v4133_v43 = vmul.f32 -1.442695, %v6907_v57  ;;  %v1657_v8 = vpop.f32.mrf.mxu2 }
 0x31b   : > { %v3556_v22 = vsel %vm3555_vm14, %v4426_v39, %v3552_v48  ;;  %v1378_v23 = vadd.f32 %v1377_v4, %v5916_v11  ;;  %vm3629_vm1 = vweird.f32 %v4430_v51  ;;  %4435 = vpow2.f32 %v4129_v53 }
 0x31c   : > { %v4432_v31 = vpop.eup %4431  ;;  %v3561_v30 = vsel %vm6950_vm7, %v3560_v15, %v3556_v22  ;;  %v3571_v7 = vsel %vm3570_vm15, %v4428_v35, %v3567_v49  ;;  %v3626_v46 = vmul.f32 %v4430_v51, %v3625_v45  ;;  %4437 = vpow2.f32 %v4133_v43  ;;  %vm3630_vm2 = vmor %vm3628_vm10, %vm3629_vm1  ;;  %v1592_v15 = vpop.f32.mrf.mxu1 }
 0x31d   : > { %3926 = vst [vmem:[%s5989_s10 + $0x2e8] sm:$0xff] %v3561_v30  ;;  %v3576_v2 = vsel %vm6975_vm13, %v3575_v13, %v3571_v7  ;;  %v6994_v37 = vadd.f32 1.0, %v4432_v31  ;;  %v4134_v41 = vmul.f32 -1.442695, %v1378_v23  ;;  %v1443_v11 = vadd.f32 %v1442_v10, %v5923_v33 }
 0x31e   : > { %3927 = vst [vmem:[%s5989_s10 + $0x2f0] sm:$0xff] %v3576_v2  ;;  %v3627_v57 = vadd.f32 %v4430_v51, %v3626_v46  ;;  %v1508_v36 = vadd.f32 %v1507_v1, %v5925_v18  ;;  %v3635_v9 = vor.u32 1.1754944e-38, %v3634_v40  ;;  %vm3633_vm3 = vcmp.eq.f32.partialorder %v3632_v32, 8.507059e+37 }
 0x31f   : > { %v4434_v38 = vpop.eup %4433  ;;  %4439 = vrcp.f32 %v6994_v37  ;;  %v3647_v56 = vand.u32 2147483647, %v6965_v24  ;;  %v3649_v25 = vand.u32 2147483648, %v6965_v24  ;;  %v4135_v33 = vmul.f32 -1.442695, %v1443_v11 }
 0x320   : > { %v3631_v0 = vsel %vm3630_vm2, %v4430_v51, %v3627_v57  ;;  %v3639_v42 = vmul.f32 %v4434_v38, %v6965_v24  ;;  %4441 = vpow2.f32 %v4134_v41  ;;  %v3662_v55 = vand.u32 2147483647, %v6994_v37 }
 0x321   : > { %v3636_v27 = vsel %vm3633_vm3, %v3635_v9, %v3631_v0  ;;  %v4136_v14 = vmul.f32 -1.442695, %v1508_v36  ;;  %v4436_v54 = vpop.eup %4435  ;;  %vm3644_vm4 = vweird.f32 %v4434_v38  ;;  %v3664_v17 = vand.u32 2147483648, %v6994_v37 }
 0x322   : > { %3931 = vst [vmem:[%s5989_s10 + $0x310] sm:$0xff] %v3636_v27  ;;  %v3640_v18 = vsub.f32 1.0, %v3639_v42  ;;  %4443 = vpow2.f32 %v4135_v33  ;;  %v7011_v39 = vperm.slane %v4649_v16, 4  ;;  %v4438_v59 = vpop.eup %4437  ;;  %v7013_v62 = vadd.f32 1.0, %v4436_v54 }
 0x323   : > { %4445 = vpow2.f32 %v4136_v14  ;;  %v7015_v58 = vperm.slane %v4649_v16, 5  ;;  %vm3643_vm5 = vweird.f32 %v6965_v24  ;;  %vm7018_vm6 = vcmp.eq.f32.partialorder %v3647_v56, 8.507059e+37 }
 0x324   : > { %v3641_v35 = vmul.f32 %v4434_v38, %v3640_v18  ;;  %v3650_v47 = vor.u32 1.1754944e-38, %v3649_v25  ;;  %v7022_v3 = vadd.f32 1.0, %v4438_v59  ;;  %vm3658_vm7 = vweird.f32 %v6994_v37  ;;  %vm3645_vm8 = vmor %vm3643_vm5, %vm3644_vm4 }
 0x325   : > { %v4440_v6 = vpop.eup %4439  ;;  %4447 = vrcp.f32 %v7013_v62  ;;  %vm7028_vm9 = vcmp.eq.f32.partialorder %v3662_v55, 8.507059e+37  ;;  %v3665_v19 = vor.u32 1.1754944e-38, %v3664_v17  ;;  %v7033_v29 = vperm.slane %v4649_v16, 6 }
 0x326   : > { %v3642_v34 = vadd.f32 %v4434_v38, %v3641_v35  ;;  %v3654_v60 = vmul.f32 %v4440_v6, %v6994_v37  ;;  %v4442_v20 = vpop.eup %4441  ;;  %4449 = vrcp.f32 %v7022_v3  ;;  %v1528_v51 = vadd.f32 %v1527_v52, %v7011_v39 }
 0x327   : > { %v1593_v63 = vadd.f32 %v1592_v15, %v7015_v58  ;;  %vm3659_vm10 = vweird.f32 %v4440_v6  ;;  %v3677_v12 = vand.u32 2147483647, %v7013_v62  ;;  %v3679_v4 = vand.u32 2147483648, %v7013_v62 }
 0x328   : > { %v3646_v21 = vsel %vm3645_vm8, %v4434_v38, %v3642_v34  ;;  %v3655_v24 = vsub.f32 1.0, %v3654_v60  ;;  %v4444_v5 = vpop.eup %4443  ;;  %v3737_v13 = vand.u32 2147483647, %v7022_v3  ;;  %v7043_v49 = vadd.f32 1.0, %v4442_v20  ;;  %vm3660_vm13 = vmor %vm3658_vm7, %vm3659_vm10  ;;  %v1595_v34 = vpop.f32.mrf.mxu1 }
 0x329   : > { %v3651_v26 = vsel %vm7018_vm6, %v3650_v47, %v3646_v21  ;;  %v4446_v48 = vpop.eup %4445  ;;  %v7045_v45 = vadd.f32 1.0, %v4444_v5  ;;  %vm3673_vm11 = vweird.f32 %v7013_v62  ;;  %v3739_v32 = vand.u32 2147483648, %v7022_v3  ;;  %v1660_v60 = vpop.f32.mrf.mxu2 }
 0x32a   : > { %3932 = vst [vmem:[%s5989_s10 + $0x318] sm:$0xff] %v3651_v26  ;;  %v3656_v28 = vmul.f32 %v4440_v6, %v3655_v24  ;;  %v1658_v53 = vadd.f32 %v1657_v8, %v7033_v29  ;;  %v1531_v22 = vadd.f32 %v1530_v61, %v7011_v39  ;;  %vm3733_vm12 = vweird.f32 %v7022_v3 }
 0x32b   : > { %v4448_v40 = vpop.eup %4447  ;;  %4451 = vrcp.f32 %v7043_v49  ;;  %v7053_v23 = vadd.f32 1.0, %v4446_v48  ;;  %vm7059_vm14 = vcmp.eq.f32.partialorder %v3677_v12, 8.507059e+37  ;;  %v3680_v30 = vor.u32 1.1754944e-38, %v3679_v4 }
 0x32c   : > { %v3657_v43 = vadd.f32 %v4440_v6, %v3656_v28  ;;  %v4450_v10 = vpop.eup %4449  ;;  %v3669_v1 = vmul.f32 %v4448_v40, %v7013_v62  ;;  %v3754_v7 = vand.u32 2147483648, %v7043_v49  ;;  %4453 = vrcp.f32 %v7045_v45 }
 0x32d   : > { %v3729_v2 = vmul.f32 %v4450_v10, %v7022_v3  ;;  %vm7066_vm15 = vcmp.eq.f32.partialorder %v3737_v13, 8.507059e+37  ;;  %v4032_v37 = vmul.f32 -1.442695, %v1528_v51  ;;  %v3740_v36 = vor.u32 1.1754944e-38, %v3739_v32 }
 0x32e   : > { %v3661_v46 = vsel %vm3660_vm13, %v4440_v6, %v3657_v43  ;;  %v3670_v11 = vsub.f32 1.0, %v3669_v1  ;;  %v3752_v52 = vand.u32 2147483647, %v7043_v49  ;;  %v3769_v9 = vand.u32 2147483648, %v7045_v45 }
 0x32f   : > { %v3666_v57 = vsel %vm7028_vm9, %v3665_v19, %v3661_v46  ;;  %v3730_v38 = vsub.f32 1.0, %v3729_v2  ;;  %4455 = vrcp.f32 %v7053_v23  ;;  %v4033_v0 = vmul.f32 -1.442695, %v1593_v63  ;;  %v1533_v63 = vpop.f32.mrf.mxu0 }
 0x330   : > { %3933 = vst [vmem:[%s5989_s10 + $0x320] sm:$0xff] %v3666_v57  ;;  %v3671_v42 = vmul.f32 %v4448_v40, %v3670_v11  ;;  %vm3674_vm1 = vweird.f32 %v4448_v40  ;;  %vm3734_vm2 = vweird.f32 %v4450_v10  ;;  %vm3748_vm3 = vweird.f32 %v7043_v49  ;;  %v1598_v57 = vpop.f32.mrf.mxu1 }
 0x331   : > { %v3755_v56 = vor.u32 1.1754944e-38, %v3754_v7  ;;  %v4452_v27 = vpop.eup %4451  ;;  %v3731_v25 = vmul.f32 %v4450_v10, %v3730_v38  ;;  %vm3763_vm4 = vweird.f32 %v7045_v45  ;;  %v3767_v33 = vand.u32 2147483647, %v7045_v45  ;;  %vm3675_vm6 = vmor %vm3673_vm11, %vm3674_vm1 }
 0x332   : > { %4457 = vpow2.f32 %v4032_v37  ;;  %v4454_v18 = vpop.eup %4453  ;;  %v3672_v55 = vadd.f32 %v4448_v40, %v3671_v42  ;;  %v3744_v14 = vmul.f32 %v4452_v27, %v7043_v49  ;;  %vm7080_vm5 = vcmp.eq.f32.partialorder %v3752_v52, 8.507059e+37  ;;  %vm3735_vm8 = vmor %vm3733_vm12, %vm3734_vm2 }
 0x333   : > { %v3782_v17 = vand.u32 2147483647, %v7053_v23  ;;  %v3784_v16 = vand.u32 2147483648, %v7053_v23  ;;  %v3732_v59 = vadd.f32 %v4450_v10, %v3731_v25  ;;  %vm3749_vm7 = vweird.f32 %v4452_v27 }
 0x334   : > { %v3759_v35 = vmul.f32 %v4454_v18, %v7045_v45  ;;  %v3770_v6 = vor.u32 1.1754944e-38, %v3769_v9  ;;  %v3676_v50 = vsel %vm3675_vm6, %v4448_v40, %v3672_v55  ;;  %v3745_v47 = vsub.f32 1.0, %v3744_v14  ;;  %vm3750_vm10 = vmor %vm3748_vm3, %vm3749_vm7 }
 0x335   : > { %4459 = vpow2.f32 %v4033_v0  ;;  %v4034_v15 = vmul.f32 -1.442695, %v1658_v53  ;;  %v4456_v20 = vpop.eup %4455  ;;  %v3681_v62 = vsel %vm7059_vm14, %v3680_v30, %v3676_v50  ;;  %v3736_v44 = vsel %vm3735_vm8, %v4450_v10, %v3732_v59 }
 0x336   : > { %v3760_v19 = vsub.f32 1.0, %v3759_v35  ;;  %v4039_v21 = vmul.f32 -1.442695, %v1531_v22  ;;  %3934 = vst [vmem:[%s5989_s10 + $0x328] sm:$0xff] %v3681_v62  ;;  %v3741_v24 = vsel %vm7066_vm15, %v3740_v36, %v3736_v44  ;;  %v3746_v51 = vmul.f32 %v4452_v27, %v3745_v47 }
 0x337   : > { %vm3764_vm9 = vweird.f32 %v4454_v18  ;;  %v3774_v3 = vmul.f32 %v4456_v20, %v7053_v23  ;;  %3938 = vst [vmem:[%s5989_s10 + $0x348] sm:$0xff] %v3741_v24  ;;  %4461 = vpow2.f32 %v4034_v15  ;;  %v1596_v5 = vadd.f32 %v1595_v34, %v7015_v58 }
 0x338   : > { %v4458_v8 = vpop.eup %4457  ;;  %v3761_v61 = vmul.f32 %v4454_v18, %v3760_v19  ;;  %v1661_v26 = vadd.f32 %v1660_v60, %v7033_v29  ;;  %v3747_v12 = vadd.f32 %v4452_v27, %v3746_v51  ;;  %4463 = vpow2.f32 %v4039_v21  ;;  %vm3765_vm11 = vmor %vm3763_vm4, %vm3764_vm9 }
 0x339   : > { %v3775_v4 = vsub.f32 1.0, %v3774_v3  ;;  %v7102_v48 = vadd.f32 1.0, %v4458_v8  ;;  %v4040_v13 = vmul.f32 -1.442695, %v1596_v5  ;;  %v1534_v53 = vadd.f32 %v1533_v63, %v7011_v39  ;;  %v1601_v8 = vpop.f32.mrf.mxu1 }
 0x33a   : > { %v3762_v28 = vadd.f32 %v4454_v18, %v3761_v61  ;;  %v4041_v32 = vmul.f32 -1.442695, %v1661_v26  ;;  %v3751_v40 = vsel %vm3750_vm10, %v4452_v27, %v3747_v12  ;;  %vm3779_vm12 = vweird.f32 %v4456_v20 }
 0x33b   : > { %v4460_v22 = vpop.eup %4459  ;;  %v3776_v43 = vmul.f32 %v4456_v20, %v3775_v4  ;;  %4465 = vrcp.f32 %v7102_v48  ;;  %v3756_v49 = vsel %vm7080_vm5, %v3755_v56, %v3751_v40  ;;  %vm3768_vm13 = vcmp.eq.f32.partialorder %v3767_v33, 8.507059e+37  ;;  %v1663_v56 = vpop.f32.mrf.mxu2 }
 0x33c   : > { %v3766_v10 = vsel %vm3765_vm11, %v4454_v18, %v3762_v28  ;;  %vm3778_vm14 = vweird.f32 %v7053_v23  ;;  %3939 = vst [vmem:[%s5989_s10 + $0x350] sm:$0xff] %v3756_v49  ;;  %v7116_v30 = vadd.f32 1.0, %v4460_v22  ;;  %4467 = vpow2.f32 %v4040_v13 }
 0x33d   : > { %v3771_v1 = vsel %vm3768_vm13, %v3770_v6, %v3766_v10  ;;  %v3777_v31 = vadd.f32 %v4456_v20, %v3776_v43  ;;  %v4462_v7 = vpop.eup %4461  ;;  %vm3780_vm15 = vmor %vm3778_vm14, %vm3779_vm12  ;;  %v3785_v45 = vor.u32 1.1754944e-38, %v3784_v16  ;;  %4469 = vpow2.f32 %v4041_v32  ;;  %v7147_v6 = vpop.f32.mrf.mxu0 }
 0x33e   : > { %3940 = vst [vmem:[%s5989_s10 + $0x358] sm:$0xff] %v3771_v1  ;;  %v4046_v46 = vmul.f32 -1.442695, %v1534_v53  ;;  %v4464_v2 = vpop.eup %4463  ;;  %vm3783_vm1 = vcmp.eq.f32.partialorder %v3782_v17, 8.507059e+37  ;;  %v2222_v37 = vand.u32 2147483647, %v7102_v48  ;;  %4471 = vrcp.f32 %v7116_v30 }
 0x33f   : > { %v3781_v41 = vsel %vm3780_vm15, %v4456_v20, %v3777_v31  ;;  %v2224_v36 = vand.u32 2147483648, %v7102_v48  ;;  %v7124_v52 = vadd.f32 1.0, %v4462_v7  ;;  %v7126_v38 = vadd.f32 1.0, %v4464_v2 }
 0x340   : > { %v3786_v11 = vsel %vm3783_vm1, %v3785_v45, %v3781_v41  ;;  %4473 = vpow2.f32 %v4046_v46  ;;  %v2237_v23 = vand.u32 2147483647, %v7116_v30  ;;  %v2239_v42 = vand.u32 2147483648, %v7116_v30 }
 0x341   : > { %v4466_v9 = vpop.eup %4465  ;;  %3941 = vst [vmem:[%s5989_s10 + $0x360] sm:$0xff] %v3786_v11  ;;  %4475 = vrcp.f32 %v7124_v52  ;;  %vm2218_vm2 = vweird.f32 %v7102_v48  ;;  %vm7134_vm3 = vcmp.eq.f32.partialorder %v2222_v37, 8.507059e+37  ;;  %v2225_v55 = vor.u32 1.1754944e-38, %v2224_v36 }
 0x342   : > { %v2214_v0 = vmul.f32 %v4466_v9, %v7102_v48  ;;  %v4468_v27 = vpop.eup %4467  ;;  %4477 = vrcp.f32 %v7126_v38  ;;  %vm2233_vm4 = vweird.f32 %v7116_v30  ;;  %v1599_v14 = vadd.f32 %v1598_v57, %v7015_v58 }
 0x343   : > { %v4470_v33 = vpop.eup %4469  ;;  %v2252_v17 = vand.u32 2147483647, %v7124_v52  ;;  %v7142_v16 = vadd.f32 1.0, %v4468_v27  ;;  %v1664_v35 = vadd.f32 %v1663_v56, %v7033_v29  ;;  %vm2219_vm5 = vweird.f32 %v4466_v9  ;;  %v1666_v1 = vpop.f32.mrf.mxu2 }
 0x344   : > { %v2215_v18 = vsub.f32 1.0, %v2214_v0  ;;  %v4472_v54 = vpop.eup %4471  ;;  %v7144_v59 = vadd.f32 1.0, %v4470_v33  ;;  %vm7150_vm6 = vcmp.eq.f32.partialorder %v2237_v23, 8.507059e+37  ;;  %v2240_v34 = vor.u32 1.1754944e-38, %v2239_v42  ;;  %vm2220_vm8 = vmor %vm2218_vm2, %vm2219_vm5 }
 0x345   : > { %v2229_v47 = vmul.f32 %v4472_v54, %v7116_v30  ;;  %vm2248_vm7 = vweird.f32 %v7124_v52  ;;  %v2254_v20 = vand.u32 2147483648, %v7124_v52  ;;  %v2327_v62 = vand.u32 2147483647, %v7126_v38  ;;  %v1539_v11 = vpop.f32.mrf.mxu0 }
 0x346   : > { %v2216_v50 = vmul.f32 %v4466_v9, %v2215_v18  ;;  %v4474_v60 = vpop.eup %4473  ;;  %4479 = vrcp.f32 %v7142_v16  ;;  %v2329_v24 = vand.u32 2147483648, %v7126_v38  ;;  %vm2234_vm9 = vweird.f32 %v4472_v54 }
 0x347   : > { %v4476_v44 = vpop.eup %4475  ;;  %v2230_v21 = vsub.f32 1.0, %v2229_v47  ;;  %4481 = vrcp.f32 %v7144_v59  ;;  %vm7164_vm10 = vcmp.eq.f32.partialorder %v2252_v17, 8.507059e+37  ;;  %vm2323_vm11 = vweird.f32 %v7126_v38  ;;  %vm2235_vm13 = vmor %vm2233_vm4, %vm2234_vm9 }
 0x348   : > { %v2217_v19 = vadd.f32 %v4466_v9, %v2216_v50  ;;  %v4478_v51 = vpop.eup %4477  ;;  %v2244_v3 = vmul.f32 %v4476_v44, %v7124_v52  ;;  %v2342_v12 = vand.u32 2147483647, %v7142_v16  ;;  %v2255_v28 = vor.u32 1.1754944e-38, %v2254_v20 }
 0x349   : > { %v2231_v5 = vmul.f32 %v4472_v54, %v2230_v21  ;;  %v2319_v26 = vmul.f32 %v4478_v51, %v7126_v38  ;;  %vm7173_vm12 = vcmp.eq.f32.partialorder %v2327_v62, 8.507059e+37  ;;  %v2330_v22 = vor.u32 1.1754944e-38, %v2329_v24  ;;  %v1604_v38 = vpop.f32.mrf.mxu1 }
 0x34a   : > { %v2221_v61 = vsel %vm2220_vm8, %v4466_v9, %v2217_v19  ;;  %v2245_v48 = vsub.f32 1.0, %v2244_v3  ;;  %v7178_v40 = vadd.f32 1.0, %v4474_v60  ;;  %vm2249_vm14 = vweird.f32 %v4476_v44 }
 0x34b   : > { %v2226_v4 = vsel %vm7134_vm3, %v2225_v55, %v2221_v61  ;;  %v2232_v32 = vadd.f32 %v4472_v54, %v2231_v5  ;;  %v2320_v53 = vsub.f32 1.0, %v2319_v26  ;;  %vm2338_vm15 = vweird.f32 %v7142_v16  ;;  %vm2250_vm3 = vmor %vm2248_vm7, %vm2249_vm14 }
 0x34c   : > { %3837 = vst [vmem:[%s5989_s10 + $0x20] sm:$0xff] %v2226_v4  ;;  %v4480_v43 = vpop.eup %4479  ;;  %v2246_v49 = vmul.f32 %v4476_v44, %v2245_v48  ;;  %v2344_v10 = vand.u32 2147483648, %v7142_v16  ;;  %vm2324_vm1 = vweird.f32 %v4478_v51  ;;  %vm7186_vm2 = vcmp.eq.f32.partialorder %v2342_v12, 8.507059e+37 }
 0x34d   : > { %v4482_v31 = vpop.eup %4481  ;;  %v2236_v7 = vsel %vm2235_vm13, %v4472_v54, %v2232_v32  ;;  %v2321_v45 = vmul.f32 %v4478_v51, %v2320_v53  ;;  %v2334_v46 = vmul.f32 %v4480_v43, %v7142_v16  ;;  %v4047_v57 = vmul.f32 -1.442695, %v1599_v14  ;;  %vm2325_vm4 = vmor %vm2323_vm11, %vm2324_vm1  ;;  %v1542_v5 = vpop.f32.mrf.mxu0 }
 0x34e   : > { %v2241_v30 = vsel %vm7150_vm6, %v2240_v34, %v2236_v7  ;;  %v2247_v41 = vadd.f32 %v4476_v44, %v2246_v49  ;;  %v2349_v37 = vmul.f32 %v4482_v31, %v7144_v59  ;;  %4483 = vrcp.f32 %v7178_v40 }
 0x34f   : > { %3838 = vst [vmem:[%s5989_s10 + $0x28] sm:$0xff] %v2241_v30  ;;  %v2322_v36 = vadd.f32 %v4478_v51, %v2321_v45  ;;  %v2335_v9 = vsub.f32 1.0, %v2334_v46  ;;  %v4048_v0 = vmul.f32 -1.442695, %v1664_v35  ;;  %v2357_v56 = vand.u32 2147483647, %v7144_v59 }
 0x350   : > { %v2251_v23 = vsel %vm2250_vm3, %v4476_v44, %v2247_v41  ;;  %v2350_v42 = vsub.f32 1.0, %v2349_v37  ;;  %v2359_v27 = vand.u32 2147483648, %v7144_v59  ;;  %vm2339_vm5 = vweird.f32 %v4480_v43  ;;  %v1669_v44 = vpop.f32.mrf.mxu2 }
 0x351   : > { %v2256_v52 = vsel %vm7164_vm10, %v2255_v28, %v2251_v23  ;;  %v2326_v25 = vsel %vm2325_vm4, %v4478_v51, %v2322_v36  ;;  %v2336_v33 = vmul.f32 %v4480_v43, %v2335_v9  ;;  %vm2354_vm6 = vweird.f32 %v4482_v31  ;;  %vm2340_vm8 = vmor %vm2338_vm15, %vm2339_vm5 }
 0x352   : > { %3839 = vst.msk [vmem:[%s5989_s10 + $0x30] sm:$0xff] %vm501_vm0, %v2256_v52  ;;  %v2331_v18 = vsel %vm7173_vm12, %v2330_v22, %v2326_v25  ;;  %v2351_v55 = vmul.f32 %v4482_v31, %v2350_v42  ;;  %4485 = vpow2.f32 %v4047_v57  ;;  %vm2353_vm7 = vweird.f32 %v7144_v59  ;;  %v1607_v22 = vpop.f32.mrf.mxu1 }
 0x353   : > { %3844 = vst [vmem:[%s5989_s10 + $0x58] sm:$0xff] %v2331_v18  ;;  %v2337_v14 = vadd.f32 %v4480_v43, %v2336_v33  ;;  %4487 = vpow2.f32 %v4048_v0  ;;  %v1537_v54 = vadd.f32 %v7147_v6, %v7011_v39  ;;  %v2345_v17 = vor.u32 1.1754944e-38, %v2344_v10  ;;  %vm2355_vm9 = vmor %vm2353_vm7, %vm2354_vm6 }
 0x354   : > { %v2352_v35 = vadd.f32 %v4482_v31, %v2351_v55  ;;  %v1602_v50 = vadd.f32 %v1601_v8, %v7015_v58  ;;  %v1667_v47 = vadd.f32 %v1666_v1, %v7033_v29  ;;  %v4484_v15 = vpop.eup %4483  ;;  %v2360_v59 = vor.u32 1.1754944e-38, %v2359_v27 }
 0x355   : > { %v2341_v34 = vsel %vm2340_vm8, %v4480_v43, %v2337_v14  ;;  %v4053_v60 = vmul.f32 -1.442695, %v1537_v54  ;;  %v1540_v20 = vadd.f32 %v1539_v11, %v7011_v39  ;;  %vm2358_vm10 = vcmp.eq.f32.partialorder %v2357_v56, 8.507059e+37 }
 0x356   : > { %v2346_v16 = vsel %vm7186_vm2, %v2345_v17, %v2341_v34  ;;  %v2356_v6 = vsel %vm2355_vm9, %v4482_v31, %v2352_v35  ;;  %v2424_v62 = vmul.f32 %v4484_v15, %v7178_v40  ;;  %v4054_v21 = vmul.f32 -1.442695, %v1602_v50 }
 0x357   : > { %3845 = vst [vmem:[%s5989_s10 + $0x60] sm:$0xff] %v2346_v16  ;;  %v2361_v19 = vsel %vm2358_vm10, %v2360_v59, %v2356_v6  ;;  %4489 = vpow2.f32 %v4053_v60  ;;  %v4055_v24 = vmul.f32 -1.442695, %v1667_v47  ;;  %v2432_v63 = vand.u32 2147483647, %v7178_v40 }
 0x358   : > { %v4486_v51 = vpop.eup %4485  ;;  %3846 = vst.msk [vmem:[%s5989_s10 + $0x68] sm:$0xff] %vm501_vm0, %v2361_v19  ;;  %v2425_v3 = vsub.f32 1.0, %v2424_v62  ;;  %v2434_v8 = vand.u32 2147483648, %v7178_v40  ;;  %v1605_v61 = vadd.f32 %v1604_v38, %v7015_v58  ;;  %4491 = vpow2.f32 %v4054_v21  ;;  %v1672_v55 = vpop.f32.mrf.mxu2 }
 0x359   : > { %v4488_v26 = vpop.eup %4487  ;;  %v7228_v12 = vadd.f32 1.0, %v4486_v51  ;;  %v4060_v4 = vmul.f32 -1.442695, %v1540_v20  ;;  %v1670_v48 = vadd.f32 %v1669_v44, %v7033_v29  ;;  %vm2429_vm11 = vweird.f32 %v4484_v15 }
 0x35a   : > { %v2426_v28 = vmul.f32 %v4484_v15, %v2425_v3  ;;  %v7231_v13 = vadd.f32 1.0, %v4488_v26  ;;  %4493 = vpow2.f32 %v4055_v24  ;;  %v1543_v32 = vadd.f32 %v1542_v5, %v7011_v39 }
 0x35b   : > { %4495 = vrcp.f32 %v7228_v12  ;;  %vm2428_vm12 = vweird.f32 %v7178_v40  ;;  %vm2433_vm13 = vcmp.eq.f32.partialorder %v2432_v63, 8.507059e+37  ;;  %v2435_v49 = vor.u32 1.1754944e-38, %v2434_v8 }
 0x35c   : > { %v2427_v53 = vadd.f32 %v4484_v15, %v2426_v28  ;;  %4497 = vrcp.f32 %v7231_v13  ;;  %vm2430_vm14 = vmor %vm2428_vm12, %vm2429_vm11  ;;  %v4061_v10 = vmul.f32 -1.442695, %v1605_v61  ;;  %v4062_v1 = vmul.f32 -1.442695, %v1670_v48 }
 0x35d   : > { %v4490_v43 = vpop.eup %4489  ;;  %4499 = vpow2.f32 %v4060_v4  ;;  %v2447_v7 = vand.u32 2147483647, %v7228_v12  ;;  %v2449_v45 = vand.u32 2147483648, %v7228_v12  ;;  %v4067_v30 = vmul.f32 -1.442695, %v1543_v32 }
 0x35e   : > { %v2431_v31 = vsel %vm2430_vm14, %v4484_v15, %v2427_v53  ;;  %v7239_v46 = vadd.f32 1.0, %v4490_v43  ;;  %v4492_v2 = vpop.eup %4491  ;;  %v1608_v41 = vadd.f32 %v1607_v22, %v7015_v58  ;;  %vm2443_vm15 = vweird.f32 %v7228_v12 }
 0x35f   : > { %v2436_v40 = vsel %vm2433_vm13, %v2435_v49, %v2431_v31  ;;  %v2462_v57 = vand.u32 2147483647, %v7231_v13  ;;  %v2464_v11 = vand.u32 2147483648, %v7231_v13  ;;  %vm2458_vm1 = vweird.f32 %v7231_v13 }
 0x360   : > { %v4494_v37 = vpop.eup %4493  ;;  %3851 = vst [vmem:[%s5989_s10 + $0x90] sm:$0xff] %v2436_v40  ;;  %4501 = vrcp.f32 %v7239_v46  ;;  %v7248_v9 = vadd.f32 1.0, %v4492_v2  ;;  %vm7253_vm2 = vcmp.eq.f32.partialorder %v2447_v7, 8.507059e+37  ;;  %v2450_v27 = vor.u32 1.1754944e-38, %v2449_v45 }
 0x361   : > { %v4496_v36 = vpop.eup %4495  ;;  %v7250_v0 = vadd.f32 1.0, %v4494_v37  ;;  %4503 = vpow2.f32 %v4061_v10  ;;  %v2537_v33 = vand.u32 2147483647, %v7239_v46  ;;  %v2539_v18 = vand.u32 2147483648, %v7239_v46 }
 0x362   : > { %v4498_v23 = vpop.eup %4497  ;;  %v2439_v42 = vmul.f32 %v4496_v36, %v7228_v12  ;;  %4505 = vpow2.f32 %v4062_v1  ;;  %vm7261_vm3 = vcmp.eq.f32.partialorder %v2462_v57, 8.507059e+37  ;;  %v2465_v54 = vor.u32 1.1754944e-38, %v2464_v11 }
 0x363   : > { %v4500_v52 = vpop.eup %4499  ;;  %v2454_v25 = vmul.f32 %v4498_v23, %v7231_v13  ;;  %4507 = vrcp.f32 %v7248_v9  ;;  %vm2533_vm4 = vweird.f32 %v7239_v46  ;;  %v7267_v35 = vmul.f32 -1.442695, %v1608_v41 }
 0x364   : > { %v2440_v38 = vsub.f32 1.0, %v2439_v42  ;;  %4509 = vrcp.f32 %v7250_v0  ;;  %vm2444_vm5 = vweird.f32 %v4496_v36  ;;  %v7269_v15 = vadd.f32 1.0, %v4500_v52 }
 0x365   : > { %v2455_v17 = vsub.f32 1.0, %v2454_v25  ;;  %4511 = vpow2.f32 %v4067_v30  ;;  %v7272_v34 = vadd.f32 %v1672_v55, %v7033_v29  ;;  %vm2459_vm6 = vweird.f32 %v4498_v23  ;;  %vm2445_vm9 = vmor %vm2443_vm15, %vm2444_vm5  ;;  %v1545_v30 = vpop.f32.mrf.mxu0 }
 0x366   : > { %v4502_v50 = vpop.eup %4501  ;;  %v2441_v47 = vmul.f32 %v4496_v36, %v2440_v38  ;;  %vm7275_vm7 = vcmp.eq.f32.partialorder %v2537_v33, 8.507059e+37  ;;  %v2540_v6 = vor.u32 1.1754944e-38, %v2539_v18  ;;  %vm2548_vm8 = vweird.f32 %v7248_v9  ;;  %vm2460_vm11 = vmor %vm2458_vm1, %vm2459_vm6  ;;  %v1610_v18 = vpop.f32.mrf.mxu1 }
 0x367   : > { %v4504_v59 = vpop.eup %4503  ;;  %v2456_v60 = vmul.f32 %v4498_v23, %v2455_v17  ;;  %v2529_v20 = vmul.f32 %v4502_v50, %v7239_v46  ;;  %v2552_v19 = vand.u32 2147483647, %v7248_v9  ;;  %v2554_v21 = vand.u32 2147483648, %v7248_v9 }
 0x368   : > { %v4506_v62 = vpop.eup %4505  ;;  %v2442_v44 = vadd.f32 %v4496_v36, %v2441_v47  ;;  %4513 = vrcp.f32 %v7269_v15  ;;  %vm2563_vm10 = vweird.f32 %v7250_v0  ;;  %v2567_v63 = vand.u32 2147483647, %v7250_v0 }
 0x369   : > { %v4508_v24 = vpop.eup %4507  ;;  %v2457_v51 = vadd.f32 %v4498_v23, %v2456_v60  ;;  %v2530_v3 = vsub.f32 1.0, %v2529_v20  ;;  %v2569_v8 = vand.u32 2147483648, %v7250_v0  ;;  %vm2534_vm12 = vweird.f32 %v4502_v50 }
 0x36a   : > { %v4510_v61 = vpop.eup %4509  ;;  %v2446_v5 = vsel %vm2445_vm9, %v4496_v36, %v2442_v44  ;;  %v2544_v26 = vmul.f32 %v4508_v24, %v7248_v9  ;;  %v7293_v12 = vadd.f32 1.0, %v4504_v59  ;;  %vm7301_vm13 = vcmp.eq.f32.partialorder %v2552_v19, 8.507059e+37  ;;  %vm2535_vm15 = vmor %vm2533_vm4, %vm2534_vm12  ;;  %v1675_v59 = vpop.f32.mrf.mxu2 }
 0x36b   : > { %v4512_v4 = vpop.eup %4511  ;;  %v2451_v48 = vsel %vm7253_vm2, %v2450_v27, %v2446_v5  ;;  %v2461_v28 = vsel %vm2460_vm11, %v4498_v23, %v2457_v51  ;;  %v2531_v32 = vmul.f32 %v4502_v50, %v2530_v3  ;;  %v2559_v53 = vmul.f32 %v4510_v61, %v7250_v0 }
 0x36c   : > { %3852 = vst [vmem:[%s5989_s10 + $0x98] sm:$0xff] %v2451_v48  ;;  %v2466_v22 = vsel %vm7261_vm3, %v2465_v54, %v2461_v28  ;;  %v2545_v43 = vsub.f32 1.0, %v2544_v26  ;;  %v2555_v49 = vor.u32 1.1754944e-38, %v2554_v21  ;;  %vm7307_vm14 = vcmp.eq.f32.partialorder %v2567_v63, 8.507059e+37 }
 0x36d   : > { %3853 = vst.msk [vmem:[%s5989_s10 + $0xa0] sm:$0xff] %vm501_vm0, %v2466_v22  ;;  %v2532_v10 = vadd.f32 %v4502_v50, %v2531_v32  ;;  %v2560_v1 = vsub.f32 1.0, %v2559_v53  ;;  %4515 = vrcp.f32 %v7293_v12  ;;  %vm2549_vm1 = vweird.f32 %v4508_v24  ;;  %v1548_v44 = vpop.f32.mrf.mxu0 }
 0x36e   : > { %v4514_v7 = vpop.eup %4513  ;;  %v2546_v45 = vmul.f32 %v4508_v24, %v2545_v43  ;;  %v2570_v2 = vor.u32 1.1754944e-38, %v2569_v8  ;;  %v2642_v40 = vand.u32 2147483647, %v7269_v15  ;;  %vm2564_vm2 = vweird.f32 %v4510_v61  ;;  %vm2550_vm3 = vmor %vm2548_vm8, %vm2549_vm1  ;;  %v1613_v22 = vpop.f32.mrf.mxu1 }
 0x36f   : > { %v2536_v41 = vsel %vm2535_vm15, %v4502_v50, %v2532_v10  ;;  %v2561_v37 = vmul.f32 %v4510_v61, %v2560_v1  ;;  %v2634_v57 = vmul.f32 %v4514_v7, %v7269_v15  ;;  %v2644_v23 = vand.u32 2147483648, %v7269_v15  ;;  %vm2565_vm4 = vmor %vm2563_vm10, %vm2564_vm2 }
 0x370   : > { %v2541_v11 = vsel %vm7275_vm7, %v2540_v6, %v2536_v41  ;;  %v2547_v36 = vadd.f32 %v4508_v24, %v2546_v45  ;;  %v2657_v46 = vand.u32 2147483647, %v7293_v12  ;;  %v7324_v27 = vadd.f32 1.0, %v4506_v62 }
 0x371   : > { %3858 = vst [vmem:[%s5989_s10 + $0xc8] sm:$0xff] %v2541_v11  ;;  %v2562_v42 = vadd.f32 %v4510_v61, %v2561_v37  ;;  %v2635_v56 = vsub.f32 1.0, %v2634_v57  ;;  %v7326_v52 = vadd.f32 1.0, %v4512_v4  ;;  %vm2639_vm5 = vweird.f32 %v4514_v7 }
 0x372   : > { %v2551_v25 = vsel %vm2550_vm3, %v4508_v24, %v2547_v36  ;;  %4517 = vpow2.f32 %v7267_v35  ;;  %v4069_v33 = vmul.f32 -1.442695, %v7272_v34  ;;  %v2659_v17 = vand.u32 2147483648, %v7293_v12  ;;  %v1678_v37 = vpop.f32.mrf.mxu2 }
 0x373   : > { %v4516_v9 = vpop.eup %4515  ;;  %v2556_v55 = vsel %vm7301_vm13, %v2555_v49, %v2551_v25  ;;  %v2566_v38 = vsel %vm2565_vm4, %v4510_v61, %v2562_v42  ;;  %v2636_v14 = vmul.f32 %v4514_v7, %v2635_v56  ;;  %4519 = vrcp.f32 %v7324_v27 }
 0x374   : > { %3859 = vst [vmem:[%s5989_s10 + $0xd0] sm:$0xff] %v2556_v55  ;;  %v2571_v54 = vsel %vm7307_vm14, %v2570_v2, %v2566_v38  ;;  %v2649_v0 = vmul.f32 %v4516_v9, %v7293_v12  ;;  %vm2638_vm6 = vweird.f32 %v7269_v15  ;;  %4521 = vrcp.f32 %v7326_v52 }
 0x375   : > { %3860 = vst.msk [vmem:[%s5989_s10 + $0xd8] sm:$0xff] %vm501_vm0, %v2571_v54  ;;  %v2637_v35 = vadd.f32 %v4514_v7, %v2636_v14  ;;  %v1546_v50 = vadd.f32 %v1545_v30, %v7011_v39  ;;  %vm2640_vm7 = vmor %vm2638_vm6, %vm2639_vm5  ;;  %vm2643_vm8 = vcmp.eq.f32.partialorder %v2642_v40, 8.507059e+37  ;;  %v2645_v47 = vor.u32 1.1754944e-38, %v2644_v23 }
 0x376   : > { %v2650_v34 = vsub.f32 1.0, %v2649_v0  ;;  %vm2653_vm9 = vweird.f32 %v7293_v12  ;;  %vm7347_vm10 = vcmp.eq.f32.partialorder %v2657_v46, 8.507059e+37  ;;  %4523 = vpow2.f32 %v4069_v33  ;;  %v1551_v33 = vpop.f32.mrf.mxu0 }
 0x377   : > { %v2641_v60 = vsel %vm2640_vm7, %v4514_v7, %v2637_v35  ;;  %vm2654_vm11 = vweird.f32 %v4516_v9  ;;  %v2660_v62 = vor.u32 1.1754944e-38, %v2659_v17  ;;  %vm2668_vm12 = vweird.f32 %v7324_v27 }
 0x378   : > { %v4518_v15 = vpop.eup %4517  ;;  %v2646_v16 = vsel %vm2643_vm8, %v2645_v47, %v2641_v60  ;;  %v2651_v6 = vmul.f32 %v4516_v9, %v2650_v34  ;;  %v2672_v21 = vand.u32 2147483647, %v7324_v27  ;;  %v4074_v51 = vmul.f32 -1.442695, %v1546_v50  ;;  %vm2655_vm13 = vmor %vm2653_vm9, %vm2654_vm11 }
 0x379   : > { %v4520_v19 = vpop.eup %4519  ;;  %3865 = vst [vmem:[%s5989_s10 + $0x100] sm:$0xff] %v2646_v16  ;;  %v7354_v24 = vadd.f32 1.0, %v4518_v15  ;;  %v2674_v8 = vand.u32 2147483648, %v7324_v27  ;;  %v1611_v61 = vadd.f32 %v1610_v18, %v7015_v58  ;;  %vm2743_vm14 = vweird.f32 %v7326_v52 }
 0x37a   : > { %v2652_v3 = vadd.f32 %v4516_v9, %v2651_v6  ;;  %v2664_v63 = vmul.f32 %v4520_v19, %v7324_v27  ;;  %v4522_v5 = vpop.eup %4521  ;;  %v2747_v26 = vand.u32 2147483647, %v7326_v52  ;;  %v1676_v4 = vadd.f32 %v1675_v59, %v7033_v29 }
 0x37b   : > { %4525 = vrcp.f32 %v7354_v24  ;;  %v2739_v32 = vmul.f32 %v4522_v5, %v7326_v52  ;;  %v1549_v53 = vadd.f32 %v1548_v44, %v7011_v39  ;;  %vm2669_vm15 = vweird.f32 %v4520_v19 }
 0x37c   : > { %v2656_v48 = vsel %vm2655_vm13, %v4516_v9, %v2652_v3  ;;  %v2665_v28 = vsub.f32 1.0, %v2664_v63  ;;  %v4524_v43 = vpop.eup %4523  ;;  %v2749_v13 = vand.u32 2147483648, %v7326_v52  ;;  %4527 = vpow2.f32 %v4074_v51  ;;  %vm2670_vm3 = vmor %vm2668_vm12, %vm2669_vm15 }
 0x37d   : > { %v2661_v12 = vsel %vm7347_vm10, %v2660_v62, %v2656_v48  ;;  %v2740_v10 = vsub.f32 1.0, %v2739_v32  ;;  %v7371_v1 = vadd.f32 1.0, %v4524_v43  ;;  %v4075_v31 = vmul.f32 -1.442695, %v1611_v61 }
 0x37e   : > { %3866 = vst [vmem:[%s5989_s10 + $0x108] sm:$0xff] %v2661_v12  ;;  %v2666_v49 = vmul.f32 %v4520_v19, %v2665_v28  ;;  %vm7373_vm1 = vcmp.eq.f32.partialorder %v2672_v21, 8.507059e+37  ;;  %vm2744_vm2 = vweird.f32 %v4522_v5  ;;  %v4076_v45 = vmul.f32 -1.442695, %v1676_v4  ;;  %v1616_v12 = vpop.f32.mrf.mxu1 }
 0x37f   : > { %v1614_v2 = vadd.f32 %v1613_v22, %v7015_v58  ;;  %v2741_v30 = vmul.f32 %v4522_v5, %v2740_v10  ;;  %4529 = vrcp.f32 %v7371_v1  ;;  %v4081_v41 = vmul.f32 -1.442695, %v1549_v53  ;;  %vm2745_vm5 = vmor %vm2743_vm14, %vm2744_vm2 }
 0x380   : > { %v2667_v40 = vadd.f32 %v4520_v19, %v2666_v49  ;;  %v2675_v11 = vor.u32 1.1754944e-38, %v2674_v8  ;;  %vm7382_vm4 = vcmp.eq.f32.partialorder %v2747_v26, 8.507059e+37  ;;  %4531 = vpow2.f32 %v4075_v31 }
 0x381   : > { %v4526_v57 = vpop.eup %4525  ;;  %v4082_v23 = vmul.f32 -1.442695, %v1614_v2  ;;  %v2742_v42 = vadd.f32 %v4522_v5, %v2741_v30  ;;  %v2750_v56 = vor.u32 1.1754944e-38, %v2749_v13  ;;  %v2762_v9 = vand.u32 2147483647, %v7354_v24  ;;  %v1681_v13 = vpop.f32.mrf.mxu2 }
 0x382   : > { %v2671_v46 = vsel %vm2670_vm3, %v4520_v19, %v2667_v40  ;;  %v2754_v25 = vmul.f32 %v4526_v57, %v7354_v24  ;;  %v4528_v18 = vpop.eup %4527  ;;  %4533 = vpow2.f32 %v4076_v45  ;;  %v1679_v55 = vadd.f32 %v1678_v37, %v7033_v29 }
 0x383   : > { %v2676_v27 = vsel %vm7373_vm1, %v2675_v11, %v2671_v46  ;;  %v2746_v38 = vsel %vm2745_vm5, %v4522_v5, %v2742_v42  ;;  %v7396_v54 = vadd.f32 1.0, %v4528_v18  ;;  %4535 = vpow2.f32 %v4081_v41  ;;  %v7455_v46 = vpop.f32.mrf.mxu0 }
 0x384   : > { %3867 = vst.msk [vmem:[%s5989_s10 + $0x110] sm:$0xff] %vm501_vm0, %v2676_v27  ;;  %v2755_v14 = vsub.f32 1.0, %v2754_v25  ;;  %v2751_v0 = vsel %vm7382_vm4, %v2750_v56, %v2746_v38  ;;  %v2764_v17 = vand.u32 2147483648, %v7354_v24  ;;  %4537 = vpow2.f32 %v4082_v23 }
 0x385   : > { %v1552_v52 = vadd.f32 %v1551_v33, %v7011_v39  ;;  %v4530_v35 = vpop.eup %4529  ;;  %3872 = vst [vmem:[%s5989_s10 + $0x138] sm:$0xff] %v2751_v0  ;;  %vm2758_vm6 = vweird.f32 %v7354_v24  ;;  %vm2759_vm7 = vweird.f32 %v4526_v57  ;;  %4539 = vrcp.f32 %v7396_v54 }
 0x386   : > { %v2756_v50 = vmul.f32 %v4526_v57, %v2755_v14  ;;  %v4532_v47 = vpop.eup %4531  ;;  %vm7405_vm8 = vcmp.eq.f32.partialorder %v2762_v9, 8.507059e+37  ;;  %v2769_v59 = vmul.f32 %v4530_v35, %v7371_v1  ;;  %v2777_v60 = vand.u32 2147483647, %v7371_v1  ;;  %vm2760_vm9 = vmor %vm2758_vm6, %vm2759_vm7 }
 0x387   : > { %v4083_v20 = vmul.f32 -1.442695, %v1679_v55  ;;  %v2779_v16 = vand.u32 2147483648, %v7371_v1  ;;  %v7412_v6 = vadd.f32 1.0, %v4532_v47  ;;  %v4088_v62 = vmul.f32 -1.442695, %v1552_v52 }
 0x388   : > { %v2757_v15 = vadd.f32 %v4526_v57, %v2756_v50  ;;  %v4534_v44 = vpop.eup %4533  ;;  %v2765_v19 = vor.u32 1.1754944e-38, %v2764_v17  ;;  %v2770_v21 = vsub.f32 1.0, %v2769_v59  ;;  %vm2773_vm10 = vweird.f32 %v7371_v1 }
 0x389   : > { %v2852_v24 = vand.u32 2147483647, %v7396_v54  ;;  %v4536_v51 = vpop.eup %4535  ;;  %vm2774_vm11 = vweird.f32 %v4530_v35  ;;  %v2854_v63 = vand.u32 2147483648, %v7396_v54  ;;  %4541 = vrcp.f32 %v7412_v6 }
 0x38a   : > { %v2761_v3 = vsel %vm2760_vm9, %v4526_v57, %v2757_v15  ;;  %v4538_v8 = vpop.eup %4537  ;;  %v2771_v5 = vmul.f32 %v4530_v35, %v2770_v21  ;;  %v7420_v26 = vadd.f32 1.0, %v4534_v44  ;;  %4543 = vpow2.f32 %v4083_v20  ;;  %vm2775_vm15 = vmor %vm2773_vm10, %vm2774_vm11 }
 0x38b   : > { %v2766_v61 = vsel %vm7405_vm8, %v2765_v19, %v2761_v3  ;;  %v4540_v4 = vpop.eup %4539  ;;  %vm7423_vm12 = vcmp.eq.f32.partialorder %v2777_v60, 8.507059e+37  ;;  %v2780_v28 = vor.u32 1.1754944e-38, %v2779_v16  ;;  %v7427_v32 = vadd.f32 1.0, %v4536_v51 }
 0x38c   : > { %3873 = vst [vmem:[%s5989_s10 + $0x140] sm:$0xff] %v2766_v61  ;;  %4545 = vpow2.f32 %v4088_v62  ;;  %v2772_v53 = vadd.f32 %v4530_v35, %v2771_v5  ;;  %v2844_v22 = vmul.f32 %v4540_v4, %v7396_v54  ;;  %vm2848_vm13 = vweird.f32 %v7396_v54  ;;  %v1619_v62 = vpop.f32.mrf.mxu1 }
 0x38d   : > { %vm7431_vm14 = vcmp.eq.f32.partialorder %v2852_v24, 8.507059e+37  ;;  %v2855_v49 = vor.u32 1.1754944e-38, %v2854_v63  ;;  %v2867_v10 = vand.u32 2147483647, %v7412_v6  ;;  %4547 = vrcp.f32 %v7420_v26 }
 0x38e   : > { %v7440_v31 = vadd.f32 1.0, %v4538_v8  ;;  %v2776_v7 = vsel %vm2775_vm15, %v4530_v35, %v2772_v53  ;;  %v2845_v45 = vsub.f32 1.0, %v2844_v22  ;;  %v2869_v2 = vand.u32 2147483648, %v7412_v6  ;;  %v1684_v8 = vpop.f32.mrf.mxu2  ;;  %v1557_v22 = vpop.f32.mrf.mxu0 }
 0x38f   : > { %4549 = vrcp.f32 %v7427_v32  ;;  %v4542_v40 = vpop.eup %4541  ;;  %v2781_v30 = vsel %vm7423_vm12, %v2780_v28, %v2776_v7  ;;  %v2884_v1 = vand.u32 2147483648, %v7420_v26  ;;  %v1617_v41 = vadd.f32 %v1616_v12, %v7015_v58 }
 0x390   : > { %v7449_v37 = vadd.f32 %v1681_v13, %v7033_v29  ;;  %v4544_v57 = vpop.eup %4543  ;;  %3874 = vst.msk [vmem:[%s5989_s10 + $0x148] sm:$0xff] %vm501_vm0, %v2781_v30  ;;  %v2846_v11 = vmul.f32 %v4540_v4, %v2845_v45  ;;  %vm2849_vm1 = vweird.f32 %v4540_v4  ;;  %v2859_v36 = vmul.f32 %v4542_v40, %v7412_v6 }
 0x391   : > { %v2882_v23 = vand.u32 2147483647, %v7420_v26  ;;  %vm2863_vm2 = vweird.f32 %v7412_v6  ;;  %vm7458_vm3 = vcmp.eq.f32.partialorder %v2867_v10, 8.507059e+37  ;;  %v2957_v25 = vand.u32 2147483647, %v7427_v32  ;;  %vm2850_vm5 = vmor %vm2848_vm13, %vm2849_vm1 }
 0x392   : > { %v4546_v42 = vpop.eup %4545  ;;  %4551 = vrcp.f32 %v7440_v31  ;;  %v2847_v33 = vadd.f32 %v4540_v4, %v2846_v11  ;;  %v2860_v18 = vsub.f32 1.0, %v2859_v36  ;;  %v2870_v27 = vor.u32 1.1754944e-38, %v2869_v2 }
 0x393   : > { %vm2878_vm4 = vweird.f32 %v7420_v26  ;;  %v4548_v9 = vpop.eup %4547  ;;  %v2885_v55 = vor.u32 1.1754944e-38, %v2884_v1  ;;  %vm2953_vm6 = vweird.f32 %v7427_v32  ;;  %v2959_v38 = vand.u32 2147483648, %v7427_v32 }
 0x394   : > { %v7469_v14 = vadd.f32 1.0, %v4544_v57  ;;  %v7471_v0 = vadd.f32 1.0, %v4546_v42  ;;  %v2851_v52 = vsel %vm2850_vm5, %v4540_v4, %v2847_v33  ;;  %v2861_v35 = vmul.f32 %v4542_v40, %v2860_v18  ;;  %v1622_v33 = vpop.f32.mrf.mxu1 }
 0x395   : > { %v4550_v17 = vpop.eup %4549  ;;  %vm2864_vm7 = vweird.f32 %v4542_v40  ;;  %v2874_v50 = vmul.f32 %v4548_v9, %v7420_v26  ;;  %vm7474_vm8 = vcmp.eq.f32.partialorder %v2882_v23, 8.507059e+37  ;;  %v2856_v54 = vsel %vm7431_vm14, %v2855_v49, %v2851_v52 }
 0x396   : > { %v2949_v34 = vmul.f32 %v4550_v17, %v7427_v32  ;;  %vm7481_vm9 = vcmp.eq.f32.partialorder %v2957_v25, 8.507059e+37  ;;  %v2972_v60 = vand.u32 2147483647, %v7440_v31  ;;  %3879 = vst [vmem:[%s5989_s10 + $0x170] sm:$0xff] %v2856_v54  ;;  %v2862_v20 = vadd.f32 %v4542_v40, %v2861_v35  ;;  %vm2865_vm11 = vmor %vm2863_vm2, %vm2864_vm7  ;;  %v1687_v52 = vpop.f32.mrf.mxu2  ;;  %v1560_v59 = vpop.f32.mrf.mxu0 }
 0x397   : > { %v2875_v15 = vsub.f32 1.0, %v2874_v50  ;;  %vm2968_vm10 = vweird.f32 %v7440_v31  ;;  %v2974_v16 = vand.u32 2147483648, %v7440_v31  ;;  %4553 = vrcp.f32 %v7469_v14 }
 0x398   : > { %v4552_v44 = vpop.eup %4551  ;;  %v2950_v19 = vsub.f32 1.0, %v2949_v34  ;;  %v2960_v21 = vor.u32 1.1754944e-38, %v2959_v38  ;;  %4555 = vrcp.f32 %v7471_v0  ;;  %v4089_v24 = vmul.f32 -1.442695, %v1617_v41 }
 0x399   : > { %v2866_v51 = vsel %vm2865_vm11, %v4542_v40, %v2862_v20  ;;  %v2876_v3 = vmul.f32 %v4548_v9, %v2875_v15  ;;  %vm2879_vm12 = vweird.f32 %v4548_v9  ;;  %v2964_v63 = vmul.f32 %v4552_v44, %v7440_v31 }
 0x39a   : > { %v2871_v61 = vsel %vm7458_vm3, %v2870_v27, %v2866_v51  ;;  %v2951_v5 = vmul.f32 %v4550_v17, %v2950_v19  ;;  %vm2954_vm13 = vweird.f32 %v4550_v17  ;;  %v2987_v4 = vand.u32 2147483647, %v7469_v14  ;;  %vm2880_vm15 = vmor %vm2878_vm4, %vm2879_vm12 }
 0x39b   : > { %3880 = vst [vmem:[%s5989_s10 + $0x178] sm:$0xff] %v2871_v61  ;;  %v2877_v6 = vadd.f32 %v4548_v9, %v2876_v3  ;;  %v2965_v48 = vsub.f32 1.0, %v2964_v63  ;;  %vm7499_vm14 = vcmp.eq.f32.partialorder %v2972_v60, 8.507059e+37  ;;  %v2975_v53 = vor.u32 1.1754944e-38, %v2974_v16  ;;  %vm2955_vm2 = vmor %vm2953_vm6, %vm2954_vm13 }
 0x39c   : > { %v2952_v43 = vadd.f32 %v4550_v17, %v2951_v5  ;;  %vm2983_vm1 = vweird.f32 %v7469_v14  ;;  %v2989_v12 = vand.u32 2147483648, %v7469_v14  ;;  %4557 = vpow2.f32 %v4089_v24  ;;  %v1625_v5 = vpop.f32.mrf.mxu1 }
 0x39d   : > { %v4090_v13 = vmul.f32 -1.442695, %v7449_v37  ;;  %v4554_v49 = vpop.eup %4553  ;;  %v2881_v10 = vsel %vm2880_vm15, %v4548_v9, %v2877_v6  ;;  %v2966_v7 = vmul.f32 %v4552_v44, %v2965_v48  ;;  %vm2969_vm3 = vweird.f32 %v4552_v44 }
 0x39e   : > { %v1555_v26 = vadd.f32 %v7455_v46, %v7011_v39  ;;  %v4556_v45 = vpop.eup %4555  ;;  %v2886_v2 = vsel %vm7474_vm8, %v2885_v55, %v2881_v10  ;;  %v2956_v40 = vsel %vm2955_vm2, %v4550_v17, %v2952_v43  ;;  %v2979_v30 = vmul.f32 %v4554_v49, %v7469_v14  ;;  %vm2970_vm5 = vmor %vm2968_vm10, %vm2969_vm3 }
 0x39f   : > { %vm7516_vm4 = vcmp.eq.f32.partialorder %v2987_v4, 8.507059e+37  ;;  %v3062_v32 = vand.u32 2147483647, %v7471_v0  ;;  %3881 = vst.msk [vmem:[%s5989_s10 + $0x180] sm:$0xff] %vm501_vm0, %v2886_v2  ;;  %v2961_v41 = vsel %vm7481_vm9, %v2960_v21, %v2956_v40  ;;  %v2967_v37 = vadd.f32 %v4552_v44, %v2966_v7 }
 0x3a0   : > { %v3054_v57 = vmul.f32 %v4556_v45, %v7471_v0  ;;  %v3064_v11 = vand.u32 2147483648, %v7471_v0  ;;  %3886 = vst [vmem:[%s5989_s10 + $0x1a8] sm:$0xff] %v2961_v41  ;;  %v2980_v36 = vsub.f32 1.0, %v2979_v30  ;;  %vm2984_vm6 = vweird.f32 %v4554_v49  ;;  %v1563_v30 = vpop.f32.mrf.mxu0 }
 0x3a1   : > { %4559 = vpow2.f32 %v4090_v13  ;;  %v4095_v23 = vmul.f32 -1.442695, %v1555_v26  ;;  %v2971_v46 = vsel %vm2970_vm5, %v4552_v44, %v2967_v37  ;;  %v1620_v56 = vadd.f32 %v1619_v62, %v7015_v58  ;;  %vm2985_vm8 = vmor %vm2983_vm1, %vm2984_vm6 }
 0x3a2   : > { %v3055_v42 = vsub.f32 1.0, %v3054_v57  ;;  %v1685_v25 = vadd.f32 %v1684_v8, %v7033_v29  ;;  %v4558_v18 = vpop.eup %4557  ;;  %v2976_v27 = vsel %vm7499_vm14, %v2975_v53, %v2971_v46  ;;  %v2981_v9 = vmul.f32 %v4554_v49, %v2980_v36 }
 0x3a3   : > { %4561 = vpow2.f32 %v4095_v23  ;;  %v1558_v31 = vadd.f32 %v1557_v22, %v7011_v39  ;;  %3887 = vst [vmem:[%s5989_s10 + $0x1b0] sm:$0xff] %v2976_v27  ;;  %vm3059_vm7 = vweird.f32 %v4556_v45  ;;  %v7536_v38 = vadd.f32 1.0, %v4558_v18 }
 0x3a4   : > { %v3056_v55 = vmul.f32 %v4556_v45, %v3055_v42  ;;  %v4096_v17 = vmul.f32 -1.442695, %v1620_v56  ;;  %v2982_v35 = vadd.f32 %v4554_v49, %v2981_v9  ;;  %v2990_v50 = vor.u32 1.1754944e-38, %v2989_v12  ;;  %v1690_v12 = vpop.f32.mrf.mxu2 }
 0x3a5   : > { %v4097_v47 = vmul.f32 -1.442695, %v1685_v25  ;;  %v1623_v54 = vadd.f32 %v1622_v33, %v7015_v58  ;;  %vm3058_vm9 = vweird.f32 %v7471_v0  ;;  %vm3063_vm10 = vcmp.eq.f32.partialorder %v3062_v32, 8.507059e+37 }
 0x3a6   : > { %v3057_v34 = vadd.f32 %v4556_v45, %v3056_v55  ;;  %4563 = vrcp.f32 %v7536_v38  ;;  %v2986_v20 = vsel %vm2985_vm8, %v4554_v49, %v2982_v35  ;;  %vm3060_vm11 = vmor %vm3058_vm9, %vm3059_vm7  ;;  %v3065_v15 = vor.u32 1.1754944e-38, %v3064_v11 }
 0x3a7   : > { %v4560_v60 = vpop.eup %4559  ;;  %4565 = vpow2.f32 %v4096_v17  ;;  %v4102_v16 = vmul.f32 -1.442695, %v1558_v31  ;;  %v2991_v14 = vsel %vm7516_vm4, %v2990_v50, %v2986_v20  ;;  %v4103_v19 = vmul.f32 -1.442695, %v1623_v54 }
 0x3a8   : > { %v3061_v62 = vsel %vm3060_vm11, %v4556_v45, %v3057_v34  ;;  %v7547_v44 = vadd.f32 1.0, %v4560_v60  ;;  %3888 = vst.msk [vmem:[%s5989_s10 + $0x1b8] sm:$0xff] %vm501_vm0, %v2991_v14  ;;  %4567 = vpow2.f32 %v4097_v47  ;;  %v3077_v24 = vand.u32 2147483647, %v7536_v38 }
 0x3a9   : > { %v4562_v0 = vpop.eup %4561  ;;  %v3066_v21 = vsel %vm3063_vm10, %v3065_v15, %v3061_v62  ;;  %v1688_v51 = vadd.f32 %v1687_v52, %v7033_v29  ;;  %v3079_v3 = vand.u32 2147483648, %v7536_v38  ;;  %vm3073_vm12 = vweird.f32 %v7536_v38 }
 0x3aa   : > { %3893 = vst [vmem:[%s5989_s10 + $0x1e0] sm:$0xff] %v3066_v21  ;;  %4569 = vrcp.f32 %v7547_v44  ;;  %v7556_v63 = vadd.f32 1.0, %v4562_v0  ;;  %v3094_v61 = vand.u32 2147483648, %v7547_v44  ;;  %v3092_v48 = vand.u32 2147483647, %v7547_v44 }
 0x3ab   : > { %4571 = vpow2.f32 %v4102_v16  ;;  %vm7563_vm13 = vcmp.eq.f32.partialorder %v3077_v24, 8.507059e+37  ;;  %v4104_v22 = vmul.f32 -1.442695, %v1688_v51  ;;  %v1561_v43 = vadd.f32 %v1560_v59, %v7011_v39 }
 0x3ac   : > { %v4564_v8 = vpop.eup %4563  ;;  %4573 = vpow2.f32 %v4103_v19  ;;  %v3080_v10 = vor.u32 1.1754944e-38, %v3079_v3  ;;  %vm3088_vm14 = vweird.f32 %v7547_v44  ;;  %v1626_v7 = vadd.f32 %v1625_v5, %v7015_v58 }
 0x3ad   : > { %v4566_v4 = vpop.eup %4565  ;;  %v3069_v6 = vmul.f32 %v4564_v8, %v7536_v38  ;;  %4575 = vrcp.f32 %v7556_v63  ;;  %v3095_v45 = vor.u32 1.1754944e-38, %v3094_v61  ;;  %v3167_v2 = vand.u32 2147483647, %v7556_v63 }
 0x3ae   : > { %v7567_v53 = vadd.f32 1.0, %v4566_v4  ;;  %v4568_v13 = vpop.eup %4567  ;;  %v3169_v40 = vand.u32 2147483648, %v7556_v63  ;;  %vm3074_vm15 = vweird.f32 %v4564_v8  ;;  %vm7576_vm1 = vcmp.eq.f32.partialorder %v3092_v48, 8.507059e+37 }
 0x3af   : > { %v3070_v49 = vsub.f32 1.0, %v3069_v6  ;;  %v7581_v57 = vadd.f32 %v1690_v12, %v7033_v29  ;;  %vm3163_vm2 = vweird.f32 %v7556_v63  ;;  %v7584_v36 = vadd.f32 1.0, %v4568_v13  ;;  %vm3075_vm3 = vmor %vm3073_vm12, %vm3074_vm15 }
 0x3b0   : > { %v4570_v26 = vpop.eup %4569  ;;  %4577 = vrcp.f32 %v7567_v53  ;;  %v4109_v46 = vmul.f32 -1.442695, %v1561_v43  ;;  %v7588_v33 = vmul.f32 -1.442695, %v1626_v7  ;;  %v7591_v18 = vadd.f32 %v1563_v30, %v7011_v39 }
 0x3b1   : > { %v4572_v1 = vpop.eup %4571  ;;  %v3071_v32 = vmul.f32 %v4564_v8, %v3070_v49  ;;  %v3084_v41 = vmul.f32 %v4570_v26, %v7547_v44  ;;  %4579 = vpow2.f32 %v4104_v22  ;;  %vm3089_vm4 = vweird.f32 %v4570_v26 }
 0x3b2   : > { %v4574_v11 = vpop.eup %4573  ;;  %v7586_v23 = vadd.f32 1.0, %v4572_v1  ;;  %vm7597_vm5 = vcmp.eq.f32.partialorder %v3167_v2, 8.507059e+37  ;;  %v3170_v31 = vor.u32 1.1754944e-38, %v3169_v40  ;;  %4581 = vrcp.f32 %v7584_v36  ;;  %vm3090_vm7 = vmor %vm3088_vm14, %vm3089_vm4  ;;  %v1628_v2 = vpop.f32.mrf.mxu1 }
 0x3b3   : > { %v4576_v42 = vpop.eup %4575  ;;  %v3072_v56 = vadd.f32 %v4564_v8, %v3071_v32  ;;  %v3085_v25 = vsub.f32 1.0, %v3084_v41  ;;  %v3182_v52 = vand.u32 2147483647, %v7567_v53  ;;  %v7603_v35 = vadd.f32 1.0, %v4574_v11 }
 0x3b4   : > { %v3159_v27 = vmul.f32 %v4576_v42, %v7556_v63  ;;  %v3184_v54 = vand.u32 2147483648, %v7567_v53  ;;  %4583 = vrcp.f32 %v7586_v23  ;;  %vm3178_vm6 = vweird.f32 %v7567_v53 }
 0x3b5   : > { %v3076_v55 = vsel %vm3075_vm3, %v4564_v8, %v3072_v56  ;;  %v3086_v17 = vmul.f32 %v4570_v26, %v3085_v25  ;;  %4585 = vpow2.f32 %v4109_v46  ;;  %vm3164_vm8 = vweird.f32 %v4576_v42 }
 0x3b6   : > { %v4578_v50 = vpop.eup %4577  ;;  %v3081_v38 = vsel %vm7563_vm13, %v3080_v10, %v3076_v55  ;;  %v3160_v47 = vsub.f32 1.0, %v3159_v27  ;;  %v3197_v15 = vand.u32 2147483647, %v7584_v36  ;;  %v3199_v16 = vand.u32 2147483648, %v7584_v36  ;;  %vm3165_vm10 = vmor %vm3163_vm2, %vm3164_vm8 }
 0x3b7   : > { %3894 = vst [vmem:[%s5989_s10 + $0x1e8] sm:$0xff] %v3081_v38  ;;  %v3087_v34 = vadd.f32 %v4570_v26, %v3086_v17  ;;  %v3174_v59 = vmul.f32 %v4578_v50, %v7567_v53  ;;  %v4580_v60 = vpop.eup %4579  ;;  %vm7617_vm9 = vcmp.eq.f32.partialorder %v3182_v52, 8.507059e+37  ;;  %4587 = vrcp.f32 %v7603_v35  ;;  %v1693_v17 = vpop.f32.mrf.mxu2 }
 0x3b8   : > { %v3161_v20 = vmul.f32 %v4576_v42, %v3160_v47  ;;  %v4582_v0 = vpop.eup %4581  ;;  %v3185_v24 = vor.u32 1.1754944e-38, %v3184_v54  ;;  %v3272_v51 = vand.u32 2147483647, %v7586_v23  ;;  %vm3179_vm11 = vweird.f32 %v4578_v50  ;;  %v1566_v52 = vpop.f32.mrf.mxu0 }
 0x3b9   : > { %v3091_v14 = vsel %vm3090_vm7, %v4570_v26, %v3087_v34  ;;  %v3175_v62 = vsub.f32 1.0, %v3174_v59  ;;  %v3189_v8 = vmul.f32 %v4582_v0, %v7584_v36  ;;  %vm3193_vm12 = vweird.f32 %v7584_v36  ;;  %vm3180_vm14 = vmor %vm3178_vm6, %vm3179_vm11 }
 0x3ba   : > { %v3096_v21 = vsel %vm7576_vm1, %v3095_v45, %v3091_v14  ;;  %v3162_v44 = vadd.f32 %v4576_v42, %v3161_v20  ;;  %v4584_v61 = vpop.eup %4583  ;;  %vm7631_vm13 = vcmp.eq.f32.partialorder %v3197_v15, 8.507059e+37  ;;  %v3200_v6 = vor.u32 1.1754944e-38, %v3199_v16 }
 0x3bb   : > { %3895 = vst.msk [vmem:[%s5989_s10 + $0x1f0] sm:$0xff] %vm501_vm0, %v3096_v21  ;;  %v3176_v3 = vmul.f32 %v4578_v50, %v3175_v62  ;;  %v7635_v48 = vadd.f32 1.0, %v4580_v60  ;;  %v4586_v28 = vpop.eup %4585  ;;  %v3190_v43 = vsub.f32 1.0, %v3189_v8  ;;  %v3264_v12 = vmul.f32 %v4584_v61, %v7586_v23 }
 0x3bc   : > { %v3166_v5 = vsel %vm3165_vm10, %v4576_v42, %v3162_v44  ;;  %vm3268_vm15 = vweird.f32 %v7586_v23  ;;  %vm7644_vm1 = vcmp.eq.f32.partialorder %v3272_v51, 8.507059e+37  ;;  %v3274_v49 = vand.u32 2147483648, %v7586_v23 }
 0x3bd   : > { %v3171_v63 = vsel %vm7597_vm5, %v3170_v31, %v3166_v5  ;;  %v3177_v22 = vadd.f32 %v4578_v50, %v3176_v3  ;;  %4589 = vrcp.f32 %v7635_v48  ;;  %v4588_v10 = vpop.eup %4587  ;;  %v3191_v26 = vmul.f32 %v4582_v0, %v3190_v43 }
 0x3be   : > { %3900 = vst [vmem:[%s5989_s10 + $0x218] sm:$0xff] %v3171_v63  ;;  %vm3194_vm2 = vweird.f32 %v4582_v0  ;;  %v3265_v45 = vsub.f32 1.0, %v3264_v12  ;;  %v3279_v40 = vmul.f32 %v4588_v10, %v7603_v35  ;;  %v3287_v30 = vand.u32 2147483647, %v7603_v35 }
 0x3bf   : > { %v3181_v7 = vsel %vm3180_vm14, %v4578_v50, %v3177_v22  ;;  %v3289_v1 = vand.u32 2147483648, %v7603_v35  ;;  %v3192_v32 = vadd.f32 %v4582_v0, %v3191_v26  ;;  %vm3269_vm3 = vweird.f32 %v4584_v61  ;;  %vm3195_vm4 = vmor %vm3193_vm12, %vm3194_vm2 }
 0x3c0   : > { %v3186_v53 = vsel %vm7617_vm9, %v3185_v24, %v3181_v7  ;;  %v3266_v41 = vmul.f32 %v4584_v61, %v3265_v45  ;;  %v7656_v37 = vadd.f32 1.0, %v4586_v28  ;;  %v3280_v11 = vsub.f32 1.0, %v3279_v40  ;;  %vm3270_vm6 = vmor %vm3268_vm15, %vm3269_vm3 }
 0x3c1   : > { %3901 = vst [vmem:[%s5989_s10 + $0x220] sm:$0xff] %v3186_v53  ;;  %vm3283_vm5 = vweird.f32 %v7603_v35  ;;  %4591 = vpow2.f32 %v7588_v33  ;;  %v4111_v46 = vmul.f32 -1.442695, %v7581_v57  ;;  %v3196_v42 = vsel %vm3195_vm4, %v4582_v0, %v3192_v32  ;;  %v1631_v0 = vpop.f32.mrf.mxu1  ;;  %v1696_v32 = vpop.f32.mrf.mxu2 }
 0x3c2   : > { %v3267_v56 = vadd.f32 %v4584_v61, %v3266_v41  ;;  %v3275_v25 = vor.u32 1.1754944e-38, %v3274_v49  ;;  %4593 = vrcp.f32 %v7656_v37  ;;  %v3201_v9 = vsel %vm7631_vm13, %v3200_v6, %v3196_v42 }
 0x3c3   : > { %v4590_v27 = vpop.eup %4589  ;;  %v3281_v36 = vmul.f32 %v4588_v10, %v3280_v11  ;;  %vm3284_vm7 = vweird.f32 %v4588_v10  ;;  %vm7668_vm8 = vcmp.eq.f32.partialorder %v3287_v30, 8.507059e+37  ;;  %3902 = vst.msk [vmem:[%s5989_s10 + $0x228] sm:$0xff] %vm501_vm0, %v3201_v9  ;;  %v3290_v33 = vor.u32 1.1754944e-38, %v3289_v1 }
 0x3c4   : > { %v3271_v57 = vsel %vm3270_vm6, %v4584_v61, %v3267_v56  ;;  %v3294_v55 = vmul.f32 %v4590_v27, %v7635_v48  ;;  %vm3298_vm9 = vweird.f32 %v7635_v48  ;;  %v3302_v38 = vand.u32 2147483647, %v7635_v48  ;;  %vm3285_vm10 = vmor %vm3283_vm5, %vm3284_vm7 }
 0x3c5   : > { %v3276_v23 = vsel %vm7644_vm1, %v3275_v25, %v3271_v57  ;;  %v3282_v50 = vadd.f32 %v4588_v10, %v3281_v36  ;;  %4595 = vpow2.f32 %v4111_v46  ;;  %v3304_v54 = vand.u32 2147483648, %v7635_v48  ;;  %v1569_v36 = vpop.f32.mrf.mxu0 }
 0x3c6   : > { %3907 = vst [vmem:[%s5989_s10 + $0x250] sm:$0xff] %v3276_v23  ;;  %v3295_v47 = vsub.f32 1.0, %v3294_v55  ;;  %v4116_v34 = vmul.f32 -1.442695, %v7591_v18  ;;  %v1629_v59 = vadd.f32 %v1628_v2, %v7015_v58  ;;  %vm3299_vm11 = vweird.f32 %v4590_v27 }
 0x3c7   : > { %v4592_v60 = vpop.eup %4591  ;;  %v3286_v20 = vsel %vm3285_vm10, %v4588_v10, %v3282_v50  ;;  %v1694_v15 = vadd.f32 %v1693_v17, %v7033_v29  ;;  %v1567_v16 = vadd.f32 %v1566_v52, %v7011_v39  ;;  %vm7692_vm12 = vcmp.eq.f32.partialorder %v3302_v38, 8.507059e+37  ;;  %vm3300_vm13 = vmor %vm3298_vm9, %vm3299_vm11 }
 0x3c8   : > { %v4594_v14 = vpop.eup %4593  ;;  %v3291_v35 = vsel %vm7668_vm8, %v3290_v33, %v3286_v20  ;;  %v3296_v62 = vmul.f32 %v4590_v27, %v3295_v47  ;;  %v7689_v19 = vadd.f32 1.0, %v4592_v60  ;;  %4597 = vpow2.f32 %v4116_v34 }
 0x3c9   : > { %3908 = vst [vmem:[%s5989_s10 + $0x258] sm:$0xff] %v3291_v35  ;;  %v3369_v21 = vmul.f32 %v4594_v14, %v7656_v37  ;;  %v4117_v44 = vmul.f32 -1.442695, %v1629_v59  ;;  %v4118_v24 = vmul.f32 -1.442695, %v1694_v15  ;;  %v3305_v3 = vor.u32 1.1754944e-38, %v3304_v54  ;;  %v1634_v17 = vpop.f32.mrf.mxu1 }
 0x3ca   : > { %v3297_v51 = vadd.f32 %v4590_v27, %v3296_v62  ;;  %v3377_v8 = vand.u32 2147483647, %v7656_v37  ;;  %4599 = vrcp.f32 %v7689_v19  ;;  %v4123_v4 = vmul.f32 -1.442695, %v1567_v16 }
 0x3cb   : > { %v4596_v61 = vpop.eup %4595  ;;  %v3370_v5 = vsub.f32 1.0, %v3369_v21  ;;  %4601 = vpow2.f32 %v4117_v44  ;;  %v1632_v6 = vadd.f32 %v1631_v0, %v7015_v58  ;;  %v3379_v63 = vand.u32 2147483648, %v7656_v37 }
 0x3cc   : > { %v3301_v28 = vsel %vm3300_vm13, %v4590_v27, %v3297_v51  ;;  %v7704_v22 = vadd.f32 1.0, %v4596_v61  ;;  %4603 = vpow2.f32 %v4118_v24  ;;  %vm3374_vm14 = vweird.f32 %v4594_v14 }
 0x3cd   : > { %v3306_v43 = vsel %vm7692_vm12, %v3305_v3, %v3301_v28  ;;  %v3371_v12 = vmul.f32 %v4594_v14, %v3370_v5  ;;  %4605 = vpow2.f32 %v4123_v4  ;;  %v3392_v48 = vand.u32 2147483647, %v7689_v19 }
 0x3ce   : > { %v4598_v13 = vpop.eup %4597  ;;  %3909 = vst.msk [vmem:[%s5989_s10 + $0x260] sm:$0xff] %vm501_vm0, %v3306_v43  ;;  %v3394_v49 = vand.u32 2147483648, %v7689_v19  ;;  %4607 = vrcp.f32 %v7704_v22  ;;  %vm3373_vm15 = vweird.f32 %v7656_v37  ;;  %v4124_v26 = vmul.f32 -1.442695, %v1632_v6 }
 0x3cf   : > { %v3372_v10 = vadd.f32 %v4594_v14, %v3371_v12  ;;  %v7714_v7 = vadd.f32 1.0, %v4598_v13  ;;  %vm3375_vm1 = vmor %vm3373_vm15, %vm3374_vm14  ;;  %vm3378_vm2 = vcmp.eq.f32.partialorder %v3377_v8, 8.507059e+37  ;;  %v3380_v2 = vor.u32 1.1754944e-38, %v3379_v63  ;;  %v1699_v63 = vpop.f32.mrf.mxu2 }
 0x3d0   : > { %v4600_v45 = vpop.eup %4599  ;;  %vm3388_vm3 = vweird.f32 %v7689_v19  ;;  %v3407_v1 = vand.u32 2147483647, %v7704_v22  ;;  %vm7720_vm4 = vcmp.eq.f32.partialorder %v3392_v48, 8.507059e+37  ;;  %v3395_v46 = vor.u32 1.1754944e-38, %v3394_v49 }
 0x3d1   : > { %v4602_v53 = vpop.eup %4601  ;;  %v3376_v40 = vsel %vm3375_vm1, %v4594_v14, %v3372_v10  ;;  %v3384_v30 = vmul.f32 %v4600_v45, %v7689_v19  ;;  %4609 = vrcp.f32 %v7714_v7  ;;  %v3409_v42 = vand.u32 2147483648, %v7704_v22  ;;  %v1637_v11 = vpop.f32.mrf.mxu1 }
 0x3d2   : > { %v4604_v41 = vpop.eup %4603  ;;  %v3381_v37 = vsel %vm3378_vm2, %v3380_v2, %v3376_v40  ;;  %v7726_v27 = vadd.f32 1.0, %v4602_v53  ;;  %4611 = vpow2.f32 %v4124_v26  ;;  %vm3403_vm5 = vweird.f32 %v7704_v22 }
 0x3d3   : > { %v4606_v56 = vpop.eup %4605  ;;  %3914 = vst [vmem:[%s5989_s10 + $0x288] sm:$0xff] %v3381_v37  ;;  %v3385_v25 = vsub.f32 1.0, %v3384_v30  ;;  %v7728_v9 = vadd.f32 1.0, %v4604_v41  ;;  %v3482_v57 = vand.u32 2147483647, %v7714_v7  ;;  %v3484_v33 = vand.u32 2147483648, %v7714_v7  ;;  %v1572_v37 = vpop.f32.mrf.mxu0 }
 0x3d4   : > { %v4608_v31 = vpop.eup %4607  ;;  %v1697_v55 = vadd.f32 %v1696_v32, %v7033_v29  ;;  %vm3389_vm6 = vweird.f32 %v4600_v45  ;;  %vm7735_vm7 = vcmp.eq.f32.partialorder %v3407_v1, 8.507059e+37  ;;  %4613 = vrcp.f32 %v7726_v27 }
 0x3d5   : > { %v3386_v52 = vmul.f32 %v4600_v45, %v3385_v25  ;;  %v3399_v23 = vmul.f32 %v4608_v31, %v7704_v22  ;;  %v3410_v38 = vor.u32 1.1754944e-38, %v3409_v42  ;;  %4615 = vrcp.f32 %v7728_v9  ;;  %vm3390_vm9 = vmor %vm3388_vm3, %vm3389_vm6 }
 0x3d6   : > { %v7741_v47 = vadd.f32 1.0, %v4606_v56  ;;  %v7744_v54 = vadd.f32 %v1569_v36, %v7011_v39  ;;  %vm3478_vm8 = vweird.f32 %v7714_v7  ;;  %v1635_v20 = vadd.f32 %v1634_v17, %v7015_v58 }
 0x3d7   : > { %v4610_v34 = vpop.eup %4609  ;;  %v3387_v59 = vadd.f32 %v4600_v45, %v3386_v52  ;;  %v3400_v60 = vsub.f32 1.0, %v3399_v23  ;;  %vm3404_vm10 = vweird.f32 %v4608_v31  ;;  %vm7751_vm11 = vcmp.eq.f32.partialorder %v3482_v57, 8.507059e+37 }
 0x3d8   : > { %v3474_v15 = vmul.f32 %v4610_v34, %v7714_v7  ;;  %v3485_v14 = vor.u32 1.1754944e-38, %v3484_v33  ;;  %v4125_v35 = vmul.f32 -1.442695, %v1697_v55  ;;  %v4612_v62 = vpop.eup %4611  ;;  %v3497_v21 = vand.u32 2147483647, %v7726_v27  ;;  %vm3405_vm14 = vmor %vm3403_vm5, %vm3404_vm10 }
 0x3d9   : > { %v3391_v0 = vsel %vm3390_vm9, %v4600_v45, %v3387_v59  ;;  %v3401_v18 = vmul.f32 %v4608_v31, %v3400_v60  ;;  %v3499_v44 = vand.u32 2147483648, %v7726_v27  ;;  %v3512_v51 = vand.u32 2147483647, %v7728_v9 }
 0x3da   : > { %v3396_v19 = vsel %vm7720_vm4, %v3395_v46, %v3391_v0  ;;  %v3475_v24 = vsub.f32 1.0, %v3474_v15  ;;  %4617 = vrcp.f32 %v7741_v47  ;;  %v4614_v3 = vpop.eup %4613  ;;  %vm3493_vm12 = vweird.f32 %v7726_v27 }
 0x3db   : > { %3915 = vst [vmem:[%s5989_s10 + $0x290] sm:$0xff] %v3396_v19  ;;  %v3402_v8 = vadd.f32 %v4608_v31, %v3401_v18  ;;  %vm3508_vm13 = vweird.f32 %v7728_v9  ;;  %v3514_v61 = vand.u32 2147483648, %v7728_v9  ;;  %v4616_v5 = vpop.eup %4615  ;;  %vm3479_vm15 = vweird.f32 %v4610_v34 }
 0x3dc   : > { %v3476_v4 = vmul.f32 %v4610_v34, %v3475_v24  ;;  %v3489_v6 = vmul.f32 %v4614_v3, %v7726_v27  ;;  %v7769_v28 = vadd.f32 1.0, %v4612_v62  ;;  %vm7771_vm1 = vcmp.eq.f32.partialorder %v3497_v21, 8.507059e+37  ;;  %vm3480_vm3 = vmor %vm3478_vm8, %vm3479_vm15 }
 0x3dd   : > { %v3406_v43 = vsel %vm3405_vm14, %v4608_v31, %v3402_v8  ;;  %v3500_v13 = vor.u32 1.1754944e-38, %v3499_v44  ;;  %v3504_v48 = vmul.f32 %v4616_v5, %v7728_v9  ;;  %vm7778_vm2 = vcmp.eq.f32.partialorder %v3512_v51, 8.507059e+37 }
 0x3de   : > { %v3411_v49 = vsel %vm7735_vm7, %v3410_v38, %v3406_v43  ;;  %v3477_v22 = vadd.f32 %v4610_v34, %v3476_v4  ;;  %v3490_v10 = vsub.f32 1.0, %v3489_v6  ;;  %v3515_v2 = vor.u32 1.1754944e-38, %v3514_v61 }
 0x3df   : > { %3916 = vst.msk [vmem:[%s5989_s10 + $0x298] sm:$0xff] %vm501_vm0, %v3411_v49  ;;  %v3505_v45 = vsub.f32 1.0, %v3504_v48  ;;  %vm3583_vm4 = vweird.f32 %v7741_v47  ;;  %v3587_v53 = vand.u32 2147483647, %v7741_v47  ;;  %4619 = vrcp.f32 %v7769_v28 }
 0x3e0   : > { %v4618_v40 = vpop.eup %4617  ;;  %v3481_v30 = vsel %vm3480_vm3, %v4610_v34, %v3477_v22  ;;  %v3491_v1 = vmul.f32 %v4614_v3, %v3490_v10  ;;  %vm3494_vm5 = vweird.f32 %v4614_v3  ;;  %4621 = vpow2.f32 %v4125_v35 }
 0x3e1   : > { %v3486_v32 = vsel %vm7751_vm11, %v3485_v14, %v3481_v30  ;;  %v3506_v41 = vmul.f32 %v4616_v5, %v3505_v45  ;;  %vm3509_vm6 = vweird.f32 %v4616_v5  ;;  %v3579_v7 = vmul.f32 %v4618_v40, %v7741_v47  ;;  %vm3495_vm8 = vmor %vm3493_vm12, %vm3494_vm5 }
 0x3e2   : > { %3921 = vst [vmem:[%s5989_s10 + $0x2c0] sm:$0xff] %v3486_v32  ;;  %v3492_v46 = vadd.f32 %v4614_v3, %v3491_v1  ;;  %vm3584_vm7 = vweird.f32 %v4618_v40  ;;  %v3589_v42 = vand.u32 2147483648, %v7741_v47  ;;  %v4130_v56 = vmul.f32 -1.442695, %v7744_v54  ;;  %vm3510_vm9 = vmor %vm3508_vm13, %vm3509_vm6 }
 0x3e3   : > { %v3507_v25 = vadd.f32 %v4616_v5, %v3506_v41  ;;  %v3580_v36 = vsub.f32 1.0, %v3579_v7  ;;  %v4131_v31 = vmul.f32 -1.442695, %v1635_v20  ;;  %v1700_v57 = vadd.f32 %v1699_v63, %v7033_v29  ;;  %vm3585_vm11 = vmor %vm3583_vm4, %vm3584_vm7 }
 0x3e4   : > { %v3496_v33 = vsel %vm3495_vm8, %v4614_v3, %v3492_v46  ;;  %4623 = vpow2.f32 %v4130_v56  ;;  %v1573_v55 = vadd.f32 %v1572_v37, %v7011_v39  ;;  %v1638_v17 = vadd.f32 %v1637_v11, %v7015_v58  ;;  %v1702_v58 = vpop.f32.mrf.mxu2 }
 0x3e5   : > { %v4620_v52 = vpop.eup %4619  ;;  %v3501_v27 = vsel %vm7771_vm1, %v3500_v13, %v3496_v33  ;;  %v3511_v23 = vsel %vm3510_vm9, %v4616_v5, %v3507_v25  ;;  %v3581_v50 = vmul.f32 %v4618_v40, %v3580_v36  ;;  %4625 = vpow2.f32 %v4131_v31 }
 0x3e6   : > { %v4622_v38 = vpop.eup %4621  ;;  %3922 = vst [vmem:[%s5989_s10 + $0x2c8] sm:$0xff] %v3501_v27  ;;  %v3516_v54 = vsel %vm7778_vm2, %v3515_v2, %v3511_v23  ;;  %vm7808_vm10 = vcmp.eq.f32.partialorder %v3587_v53, 8.507059e+37  ;;  %v3594_v39 = vmul.f32 %v4620_v52, %v7769_v28  ;;  %v4132_v34 = vmul.f32 -1.442695, %v1700_v57 }
 0x3e7   : > { %3923 = vst.msk [vmem:[%s5989_s10 + $0x2d0] sm:$0xff] %vm501_vm0, %v3516_v54  ;;  %v3582_v59 = vadd.f32 %v4618_v40, %v3581_v50  ;;  %v3590_v60 = vor.u32 1.1754944e-38, %v3589_v42  ;;  %v7815_v20 = vadd.f32 1.0, %v4622_v38  ;;  %v4137_v15 = vmul.f32 -1.442695, %v1573_v55 }
 0x3e8   : > { %v3595_v16 = vsub.f32 1.0, %v3594_v39  ;;  %v3602_v14 = vand.u32 2147483647, %v7769_v28  ;;  %4627 = vpow2.f32 %v4132_v34  ;;  %v4138_v35 = vmul.f32 -1.442695, %v1638_v17 }
 0x3e9   : > { %v3586_v62 = vsel %vm3585_vm11, %v4618_v40, %v3582_v59  ;;  %v3604_v0 = vand.u32 2147483648, %v7769_v28  ;;  %4629 = vrcp.f32 %v7815_v20  ;;  %v1703_v18 = vadd.f32 %v1702_v58, %v7033_v29 }
 0x3ea   : > { %v4624_v21 = vpop.eup %4623  ;;  %v3591_v44 = vsel %vm7808_vm10, %v3590_v60, %v3586_v62  ;;  %v3596_v19 = vmul.f32 %v4620_v52, %v3595_v16  ;;  %vm3599_vm12 = vweird.f32 %v4620_v52  ;;  %4631 = vpow2.f32 %v4137_v15 }
 0x3eb   : > { %v4626_v47 = vpop.eup %4625  ;;  %3928 = vst [vmem:[%s5989_s10 + $0x2f8] sm:$0xff] %v3591_v44  ;;  %v7827_v24 = vadd.f32 1.0, %v4624_v21  ;;  %vm3598_vm13 = vweird.f32 %v7769_v28  ;;  %4633 = vpow2.f32 %v4138_v35  ;;  %v3605_v29 = vor.u32 1.1754944e-38, %v3604_v0 }
 0x3ec   : > { %v3597_v51 = vadd.f32 %v4620_v52, %v3596_v19  ;;  %v7830_v3 = vadd.f32 1.0, %v4626_v47  ;;  %vm3600_vm14 = vmor %vm3598_vm13, %vm3599_vm12  ;;  %v4139_v8 = vmul.f32 -1.442695, %v1703_v18  ;;  %vm3603_vm15 = vcmp.eq.f32.partialorder %v3602_v14, 8.507059e+37 }
 0x3ed   : > { %4635 = vrcp.f32 %v7827_v24  ;;  %v3617_v28 = vand.u32 2147483647, %v7815_v20  ;;  %v3619_v13 = vand.u32 2147483648, %v7815_v20  ;;  %vm3613_vm1 = vweird.f32 %v7815_v20 }
 0x3ee   : > { %v4628_v61 = vpop.eup %4627  ;;  %v3601_v5 = vsel %vm3600_vm14, %v4620_v52, %v3597_v51  ;;  %4637 = vrcp.f32 %v7830_v3  ;;  %v3692_v26 = vand.u32 2147483647, %v7827_v24  ;;  %v3694_v45 = vand.u32 2147483648, %v7827_v24 }
 0x3ef   : > { %v4630_v4 = vpop.eup %4629  ;;  %v3606_v6 = vsel %vm3603_vm15, %v3605_v29, %v3601_v5  ;;  %v7837_v12 = vadd.f32 1.0, %v4628_v61  ;;  %4639 = vpow2.f32 %v4139_v8  ;;  %v3707_v2 = vand.u32 2147483647, %v7830_v3 }
 0x3f0   : > { %v4632_v63 = vpop.eup %4631  ;;  %3929 = vst [vmem:[%s5989_s10 + $0x300] sm:$0xff] %v3606_v6  ;;  %v3609_v43 = vmul.f32 %v4630_v4, %v7815_v20  ;;  %vm3614_vm2 = vweird.f32 %v4630_v4  ;;  %vm7848_vm3 = vcmp.eq.f32.partialorder %v3617_v28, 8.507059e+37  ;;  %v3620_v32 = vor.u32 1.1754944e-38, %v3619_v13 }
 0x3f1   : > { %v7840_v48 = vadd.f32 1.0, %v4632_v63  ;;  %v4634_v49 = vpop.eup %4633  ;;  %4641 = vrcp.f32 %v7837_v12  ;;  %vm3688_vm4 = vweird.f32 %v7827_v24  ;;  %vm3703_vm5 = vweird.f32 %v7830_v3  ;;  %vm3615_vm6 = vmor %vm3613_vm1, %vm3614_vm2 }
 0x3f2   : > { %v3610_v22 = vsub.f32 1.0, %v3609_v43  ;;  %v3709_v11 = vand.u32 2147483648, %v7830_v3  ;;  %v7857_v46 = vadd.f32 1.0, %v4634_v49  ;;  %vm7861_vm7 = vcmp.eq.f32.partialorder %v3692_v26, 8.507059e+37 }
 0x3f3   : > { %v4636_v10 = vpop.eup %4635  ;;  %4643 = vrcp.f32 %v7840_v48  ;;  %v3695_v25 = vor.u32 1.1754944e-38, %v3694_v45  ;;  %vm7865_vm8 = vcmp.eq.f32.partialorder %v3707_v2, 8.507059e+37  ;;  %v3722_v54 = vand.u32 2147483647, %v7837_v12 }
 0x3f4   : > { %v4638_v53 = vpop.eup %4637  ;;  %v3611_v40 = vmul.f32 %v4630_v4, %v3610_v22  ;;  %v3684_v1 = vmul.f32 %v4636_v10, %v7827_v24  ;;  %vm3689_vm9 = vweird.f32 %v4636_v10  ;;  %4645 = vrcp.f32 %v7857_v46 }
 0x3f5   : > { %v3699_v41 = vmul.f32 %v4638_v53, %v7830_v3  ;;  %v4640_v42 = vpop.eup %4639  ;;  %vm3704_vm10 = vweird.f32 %v4638_v53  ;;  %v3710_v38 = vor.u32 1.1754944e-38, %v3709_v11  ;;  %vm3690_vm11 = vmor %vm3688_vm4, %vm3689_vm9  ;;  %v3724_v58 = vand.u32 2147483648, %v7837_v12 }
 0x3f6   : > { %v3612_v7 = vadd.f32 %v4630_v4, %v3611_v40  ;;  %v3685_v37 = vsub.f32 1.0, %v3684_v1  ;;  %v3797_v59 = vand.u32 2147483647, %v7840_v48  ;;  %vm3705_vm12 = vmor %vm3703_vm5, %vm3704_vm10  ;;  %v3799_v15 = vand.u32 2147483648, %v7840_v48 }
 0x3f7   : > { %v3700_v36 = vsub.f32 1.0, %v3699_v41  ;;  %v4642_v57 = vpop.eup %4641  ;;  %v2152_v16 = vadd.f32 1.0, %v4640_v42  ;;  %vm3718_vm15 = vweird.f32 %v7837_v12  ;;  %v3725_v47 = vor.u32 1.1754944e-38, %v3724_v58 }
 0x3f8   : > { %v3616_v33 = vsel %vm3615_vm6, %v4630_v4, %v3612_v7  ;;  %v3686_v55 = vmul.f32 %v4636_v10, %v3685_v37  ;;  %v3714_v23 = vmul.f32 %v4642_v57, %v7837_v12  ;;  %vm3719_vm13 = vweird.f32 %v4642_v57 }
 0x3f9   : > { %v4644_v17 = vpop.eup %4643  ;;  %v3621_v52 = vsel %vm7848_vm3, %v3620_v32, %v3616_v33  ;;  %v3701_v27 = vmul.f32 %v4638_v53, %v3700_v36  ;;  %4647 = vrcp.f32 %v2152_v16  ;;  %vm3720_vm1 = vmor %vm3718_vm15, %vm3719_vm13  ;;  %vm3793_vm2 = vweird.f32 %v7840_v48 }
 0x3fa   : > { %3930 = vst.msk [vmem:[%s5989_s10 + $0x308] sm:$0xff] %vm501_vm0, %v3621_v52  ;;  %v3687_v50 = vadd.f32 %v4636_v10, %v3686_v55  ;;  %v3789_v9 = vmul.f32 %v4644_v17, %v7840_v48  ;;  %v3715_v34 = vsub.f32 1.0, %v3714_v23  ;;  %v4646_v0 = vpop.eup %4645  ;;  %vm3794_vm14 = vweird.f32 %v4644_v17 }
 0x3fb   : > { %v3702_v39 = vadd.f32 %v4638_v53, %v3701_v27  ;;  %v3804_v19 = vmul.f32 %v4646_v0, %v7857_v46  ;;  %vm3723_vm3 = vcmp.eq.f32.partialorder %v3722_v54, 8.507059e+37  ;;  %vm3795_vm4 = vmor %vm3793_vm2, %vm3794_vm14  ;;  %v3800_v3 = vor.u32 1.1754944e-38, %v3799_v15 }
 0x3fc   : > { %v3691_v60 = vsel %vm3690_vm11, %v4636_v10, %v3687_v50  ;;  %v3790_v20 = vsub.f32 1.0, %v3789_v9  ;;  %v3716_v62 = vmul.f32 %v4642_v57, %v3715_v34  ;;  %vm3798_vm5 = vcmp.eq.f32.partialorder %v3797_v59, 8.507059e+37 }
 0x3fd   : > { %v3696_v14 = vsel %vm7861_vm7, %v3695_v25, %v3691_v60  ;;  %v3706_v35 = vsel %vm3705_vm12, %v4638_v53, %v3702_v39  ;;  %v3805_v29 = vsub.f32 1.0, %v3804_v19  ;;  %v3814_v5 = vand.u32 2147483648, %v7857_v46 }
 0x3fe   : > { %3935 = vst [vmem:[%s5989_s10 + $0x330] sm:$0xff] %v3696_v14  ;;  %v3711_v18 = vsel %vm7865_vm8, %v3710_v38, %v3706_v35  ;;  %v3791_v21 = vmul.f32 %v4644_v17, %v3790_v20  ;;  %v3717_v44 = vadd.f32 %v4642_v57, %v3716_v62  ;;  %vm3809_vm6 = vweird.f32 %v4646_v0 }
 0x3ff   : > { %3936 = vst [vmem:[%s5989_s10 + $0x338] sm:$0xff] %v3711_v18  ;;  %v3806_v6 = vmul.f32 %v4646_v0, %v3805_v29  ;;  %v3812_v63 = vand.u32 2147483647, %v7857_v46  ;;  %v4648_v43 = vpop.eup %4647  ;;  %vm3808_vm7 = vweird.f32 %v7857_v46  ;;  %v3815_v13 = vor.u32 1.1754944e-38, %v3814_v5 }
 0x400   : > { %v3792_v24 = vadd.f32 %v4644_v17, %v3791_v21  ;;  %v3721_v51 = vsel %vm3720_vm1, %v4642_v57, %v3717_v44  ;;  %v3819_v12 = vmul.f32 %v4648_v43, %v2152_v16  ;;  %vm3810_vm8 = vmor %vm3808_vm7, %vm3809_vm6  ;;  %v3829_v10 = vand.u32 2147483648, %v2152_v16 }
 0x401   : > { %v3726_v8 = vsel %vm3723_vm3, %v3725_v47, %v3721_v51  ;;  %v3807_v28 = vadd.f32 %v4646_v0, %v3806_v6  ;;  %vm3813_vm9 = vcmp.eq.f32.partialorder %v3812_v63, 8.507059e+37  ;;  %vm3824_vm10 = vweird.f32 %v4648_v43 }
 0x402   : > { %v3796_v61 = vsel %vm3795_vm4, %v4644_v17, %v3792_v24  ;;  %3937 = vst.msk [vmem:[%s5989_s10 + $0x340] sm:$0xff] %vm501_vm0, %v3726_v8  ;;  %v3820_v49 = vsub.f32 1.0, %v3819_v12  ;;  %v3827_v45 = vand.u32 2147483647, %v2152_v16  ;;  %vm3823_vm11 = vweird.f32 %v2152_v16 }
 0x403   : > { %v3801_v4 = vsel %vm3798_vm5, %v3800_v3, %v3796_v61  ;;  %v3811_v48 = vsel %vm3810_vm8, %v4646_v0, %v3807_v28  ;;  %vm3825_vm12 = vmor %vm3823_vm11, %vm3824_vm10  ;;  %v3830_v53 = vor.u32 1.1754944e-38, %v3829_v10 }
 0x404   : > { %3942 = vst [vmem:[%s5989_s10 + $0x368] sm:$0xff] %v3801_v4  ;;  %v3816_v22 = vsel %vm3813_vm9, %v3815_v13, %v3811_v48  ;;  %v3821_v26 = vmul.f32 %v4648_v43, %v3820_v49  ;;  %vm3828_vm13 = vcmp.eq.f32.partialorder %v3827_v45, 8.507059e+37 }
 0x405   : > { %3943 = vst [vmem:[%s5989_s10 + $0x370] sm:$0xff] %v3816_v22 }
 0x406   : > { %v3822_v2 = vadd.f32 %v4648_v43, %v3821_v26 }
 0x408   : > { %v3826_v40 = vsel %vm3825_vm12, %v4648_v43, %v3822_v2 }
 0x409   : > { %v3831_v30 = vsel %vm3828_vm13, %v3830_v53, %v3826_v40 }
 0x40a   : > { %3944 = vst.msk [vmem:[%s5989_s10 + $0x378] sm:$0xff] %vm501_vm0, %v3831_v30 }
 0x40b PF: > { %s17_s24 = sadd.s32 1, %s4656_s24  }
 0x40c   : > { %p14_p4 = scmp.ge.s32.totalorder %s17_s24, 4  }
 0x40e   :  { %16 = sbr.rel (!%p14_p4) target bundleno = 1 (0x1), region = 78 }

</bundles_post_ra>
